<compile_context>
chip_gen: v6e
topology: v6e:2x2x1
jax: 0.10.0
libtpu: 0.0.40
codegen_flags: <defaults>
</compile_context>

<pallas_src>
import jax
import jax.numpy as jnp
from jax.experimental import pallas as pl
from jax.experimental.pallas import tpu as pltpu

C = 512  # channel width fixed by the module (Conv2d(512, 512, kernel_size=1))


def _fold_kernel(f0_ref, fcur_ref,
                 wa_ref, ba_ref,   # fused [residual_conv | f1_conv1]: (C,2C),(1,2C)
                 wb_ref, bb_ref,   # f2_conv1: (C,C),(1,C)
                 wc_ref, bc_ref,   # f1_conv2: (C,C),(1,C)
                 wd_ref, bd_ref,   # f2_conv2: (C,C),(1,C)
                 o_ref):
    j = pl.program_id(1)  # fold-step axis ("arbitrary", sequential)

    # Initialize the carry with features[0] at the first fold step of this
    # batch tile.  o_ref's block index is constant along j, so it stays
    # resident in VMEM and acts as the f32 carry across steps.
    @pl.when(j == 0)
    def _():
        o_ref[...] = f0_ref[0].astype(jnp.float32)

    f1 = o_ref[...].astype(jnp.bfloat16)   # running result (carry)
    f2 = fcur_ref[0]                       # features[j+1], already bf16

    # Fused matmul: [residual_pre | p1_pre] = f1 @ [Wr^T | W11^T]  (MXU, f32 acc)
    ra = jnp.dot(f1, wa_ref[...], preferred_element_type=jnp.float32) + ba_ref[...]
    residual = ra[:, :C]
    p1 = jnp.tanh(ra[:, C:])

    p2 = jnp.tanh(jnp.dot(f2, wb_ref[...],
                          preferred_element_type=jnp.float32) + bb_ref[...])
    p1 = jnp.tanh(jnp.dot(p1.astype(jnp.bfloat16), wc_ref[...],
                          preferred_element_type=jnp.float32) + bc_ref[...])
    p2 = jnp.tanh(jnp.dot(p2.astype(jnp.bfloat16), wd_ref[...],
                          preferred_element_type=jnp.float32) + bd_ref[...])

    # Elementwise combine in f32 (VPU); becomes the carry for step j+1.
    o_ref[...] = residual + p1 * p2


def _prepare_params(params):
    """Pre-transpose conv weights (out,in)->(in,out), fuse the two f1-input
    layers horizontally, cast weights to bf16 (MXU), keep biases in f32."""
    (wr, br), (w11, b11), (w12, b12), (w21, b21), (w22, b22) = params
    wa = jnp.concatenate([wr.T, w11.T], axis=1).astype(jnp.bfloat16)   # (C, 2C)
    ba = jnp.concatenate([br, b11]).reshape(1, 2 * C).astype(jnp.float32)
    wb = w21.T.astype(jnp.bfloat16)
    bb = b21.reshape(1, C).astype(jnp.float32)
    wc = w12.T.astype(jnp.bfloat16)
    bc = b12.reshape(1, C).astype(jnp.float32)
    wd = w22.T.astype(jnp.bfloat16)
    bd = b22.reshape(1, C).astype(jnp.float32)
    return wa, ba, wb, bb, wc, bc, wd, bd


def _round_up(x, m):
    return ((x + m - 1) // m) * m


def _mrn_forward_impl(feats, params):
    """feats: (n_features, B, C) float32 stacked feature list."""
    n, B, c = feats.shape
    assert c == C
    if n == 1:
        return feats[0]

    wa, ba, wb, bb, wc, bc, wd, bd = _prepare_params(params)

    # Batch tiling: biggest tile up to 512 rows; pad B so it divides evenly.
    TM = min(_round_up(B, 8), 512)
    B_pad = _round_up(B, TM)

    feats_b = feats.astype(jnp.bfloat16)      # halves activation HBM traffic
    if B_pad != B:
        feats_b = jnp.pad(feats_b, ((0, 0), (0, B_pad - B), (0, 0)))

    n_steps = n - 1
    grid = (B_pad // TM, n_steps)

    in_specs = [
        # features[0] (carry init): constant along j -> DMA'd once per batch tile
        pl.BlockSpec((1, TM, C), lambda i, j: (0, i, 0)),
        # features[j+1]
        pl.BlockSpec((1, TM, C), lambda i, j: (j + 1, i, 0)),
        # weights / biases: constant index_map -> resident in VMEM for the run
        pl.BlockSpec((C, 2 * C), lambda i, j: (0, 0)),
        pl.BlockSpec((1, 2 * C), lambda i, j: (0, 0)),
        pl.BlockSpec((C, C), lambda i, j: (0, 0)),
        pl.BlockSpec((1, C), lambda i, j: (0, 0)),
        pl.BlockSpec((C, C), lambda i, j: (0, 0)),
        pl.BlockSpec((1, C), lambda i, j: (0, 0)),
        pl.BlockSpec((C, C), lambda i, j: (0, 0)),
        pl.BlockSpec((1, C), lambda i, j: (0, 0)),
    ]
    out_spec = pl.BlockSpec((TM, C), lambda i, j: (i, 0))  # revisited along j

    out = pl.pallas_call(
        _fold_kernel,
        out_shape=jax.ShapeDtypeStruct((B_pad, C), jnp.float32),
        grid=grid,
        in_specs=in_specs,
        out_specs=out_spec,
        compiler_params=pltpu.CompilerParams(
            dimension_semantics=("parallel", "arbitrary"),
            vmem_limit_bytes=48 * 1024 * 1024,
        ),
    )(feats_b, feats_b, wa, ba, wb, bb, wc, bc, wd, bd)

    return out[:B]


_mrn_forward_jit = jax.jit(_mrn_forward_impl)


def mrn_combiner_forward(features, params):
    """Replicates MrnCombiner.forward (left-fold combine over the feature list).
    features: list of (B, C) float32 arrays.  Returns (B, C)."""
    feats = jnp.stack(features, axis=0)
    return _mrn_forward_jit(feats, params)


# ----------------------- pure-JAX f32 reference -----------------------------
def _combine_ref(f1, f2, params):
    (wr, br), (w11, b11), (w12, b12), (w21, b21), (w22, b22) = params
    residual = f1 @ wr.T + br
    p1 = jnp.tanh(f1 @ w11.T + b11)
    p1 = jnp.tanh(p1 @ w12.T + b12)
    p2 = jnp.tanh(f2 @ w21.T + b21)
    p2 = jnp.tanh(p2 @ w22.T + b22)
    return residual + p1 * p2


def mrn_combiner_forward_ref(features, params):
    rez = features[0]
    for i in range(1, len(features)):
        rez = _combine_ref(rez, features[i], params)
    return rez


# ----------------------------- harness --------------------------------------
def _init_params(key):
    """Deterministic synthetic weights matching nn.Conv2d(512, 512, 1) shapes."""
    params = []
    scale = 1.0 / jnp.sqrt(jnp.float32(C))
    for i in range(5):
        kw, kb = jax.random.split(jax.random.fold_in(key, i))
        w = jax.random.normal(kw, (C, C), jnp.float32) * scale  # (out_ch, in_ch)
        b = jax.random.normal(kb, (C,), jnp.float32) * 0.01
        params.append((w, b))
    return tuple(params)  # (residual, f1_conv1, f1_conv2, f2_conv1, f2_conv2)


if __name__ == "__main__":
    key = jax.random.PRNGKey(0)
    params = _init_params(jax.random.fold_in(key, 100))

    B = 2
    n_features = 3
    features = [
        jax.random.normal(jax.random.fold_in(key, 200 + i), (B, C), jnp.float32)
        for i in range(n_features)
    ]

    out = mrn_combiner_forward(features, params)
    jax.block_until_ready(out)

    assert out.shape == (B, C), out.shape
    assert bool(jnp.all(jnp.isfinite(out)))

    # Loose check vs f32 reference (kernel uses bf16 MXU inputs, f32 accumulate).
    ref = mrn_combiner_forward_ref(features, params)
    max_err = float(jnp.max(jnp.abs(out - ref)))
    assert max_err < 0.25, f"max abs err vs f32 reference: {max_err}"

    print("KERNEL_OK")
</pallas_src>

<mosaic_0001>
module attributes {stable_mosaic.version = 11 : i64} {
  func.func @_fold_kernel(%arg0: i32, %arg1: i32, %arg2: memref<1x8x512xbf16, #tpu.memory_space<vmem>>, %arg3: memref<1x8x512xbf16, #tpu.memory_space<vmem>>, %arg4: memref<512x1024xbf16, #tpu.memory_space<vmem>>, %arg5: memref<1x1024xf32, #tpu.memory_space<vmem>>, %arg6: memref<512x512xbf16, #tpu.memory_space<vmem>>, %arg7: memref<1x512xf32, #tpu.memory_space<vmem>>, %arg8: memref<512x512xbf16, #tpu.memory_space<vmem>>, %arg9: memref<1x512xf32, #tpu.memory_space<vmem>>, %arg10: memref<512x512xbf16, #tpu.memory_space<vmem>>, %arg11: memref<1x512xf32, #tpu.memory_space<vmem>>, %arg12: memref<8x512xf32, #tpu.memory_space<vmem>>) attributes {dimension_semantics = [#tpu.dimension_semantics<parallel>, #tpu.dimension_semantics<arbitrary>], iteration_bounds = array<i64: 1, 2>, scalar_prefetch = 0 : i64, scratch_operands = 0 : i64, tpu.core_type = #tpu.core_type<tc>, window_params = [{transform_indices = @transform_0, window_bounds = array<i64: 1, 8, 512>}, {transform_indices = @transform_1, window_bounds = array<i64: 1, 8, 512>}, {pipeline_mode = #tpu.pipeline_mode<synchronous>, transform_indices = @transform_2, window_bounds = array<i64: 512, 1024>}, {pipeline_mode = #tpu.pipeline_mode<synchronous>, transform_indices = @transform_3, window_bounds = array<i64: 1, 1024>}, {pipeline_mode = #tpu.pipeline_mode<synchronous>, transform_indices = @transform_4, window_bounds = array<i64: 512, 512>}, {pipeline_mode = #tpu.pipeline_mode<synchronous>, transform_indices = @transform_5, window_bounds = array<i64: 1, 512>}, {pipeline_mode = #tpu.pipeline_mode<synchronous>, transform_indices = @transform_6, window_bounds = array<i64: 512, 512>}, {pipeline_mode = #tpu.pipeline_mode<synchronous>, transform_indices = @transform_7, window_bounds = array<i64: 1, 512>}, {pipeline_mode = #tpu.pipeline_mode<synchronous>, transform_indices = @transform_8, window_bounds = array<i64: 512, 512>}, {pipeline_mode = #tpu.pipeline_mode<synchronous>, transform_indices = @transform_9, window_bounds = array<i64: 1, 512>}, {transform_indices = @transform_10, window_bounds = array<i64: 8, 512>}]} {
    %c0_i32 = arith.constant 0 : i32
    %0 = arith.cmpi eq, %arg1, %c0_i32 : i32
    %1 = arith.extui %0 : i1 to i32
    %c0_i32_0 = arith.constant 0 : i32
    %2 = arith.cmpi ne, %1, %c0_i32_0 : i32
    scf.if %2 {
      %c0_26 = arith.constant 0 : index
      %c0_27 = arith.constant 0 : index
      %c0_28 = arith.constant 0 : index
      %38 = vector.load %arg2[%c0_26, %c0_27, %c0_28] : memref<1x8x512xbf16, #tpu.memory_space<vmem>>, vector<1x8x512xbf16>
      %39 = vector.shape_cast %38 : vector<1x8x512xbf16> to vector<8x512xbf16>
      %40 = arith.extf %39 : vector<8x512xbf16> to vector<8x512xf32>
      %c0_29 = arith.constant 0 : index
      %c0_30 = arith.constant 0 : index
      %41 = vector.load %arg12[%c0_29, %c0_30] : memref<8x512xf32, #tpu.memory_space<vmem>>, vector<8x512xf32>
      tpu.vector_store %arg12[%c0_29, %c0_30], %40 {strides = array<i32>} : memref<8x512xf32, #tpu.memory_space<vmem>>, vector<8x512xf32>,
    } else {
    }
    %c0 = arith.constant 0 : index
    %c0_1 = arith.constant 0 : index
    %3 = vector.load %arg12[%c0, %c0_1] : memref<8x512xf32, #tpu.memory_space<vmem>>, vector<8x512xf32>
    %4 = arith.truncf %3 : vector<8x512xf32> to vector<8x512xbf16>
    %c0_2 = arith.constant 0 : index
    %c0_3 = arith.constant 0 : index
    %c0_4 = arith.constant 0 : index
    %5 = vector.load %arg3[%c0_2, %c0_3, %c0_4] : memref<1x8x512xbf16, #tpu.memory_space<vmem>>, vector<1x8x512xbf16>
    %6 = vector.shape_cast %5 : vector<1x8x512xbf16> to vector<8x512xbf16>
    %c0_5 = arith.constant 0 : index
    %c0_6 = arith.constant 0 : index
    %7 = vector.load %arg4[%c0_5, %c0_6] : memref<512x1024xbf16, #tpu.memory_space<vmem>>, vector<512x1024xbf16>
    %cst = arith.constant dense<0.000000e+00> : vector<8x1024xf32>
    %8 = tpu.matmul %4, %7, %cst {dimension_numbers = #tpu.dot_dimension_numbers<[1], [0], [0], [1], [0, 0, 1, 1], [], []>} : vector<8x512xbf16>, vector<512x1024xbf16>, vector<8x1024xf32> -> vector<8x1024xf32>
    %c0_7 = arith.constant 0 : index
    %c0_8 = arith.constant 0 : index
    %9 = vector.load %arg5[%c0_7, %c0_8] : memref<1x1024xf32, #tpu.memory_space<vmem>>, vector<1x1024xf32>
    %10 = vector.broadcast %9 : vector<1x1024xf32> to vector<8x1024xf32>
    %11 = arith.addf %8, %10 : vector<8x1024xf32>
    %12 = vector.extract_strided_slice %11 {offsets = [0, 0], sizes = [8, 512], strides = [1, 1]} : vector<8x1024xf32> to vector<8x512xf32>
    %13 = vector.extract_strided_slice %11 {offsets = [0, 512], sizes = [8, 512], strides = [1, 1]} : vector<8x1024xf32> to vector<8x512xf32>
    %14 = math.tanh %13 : vector<8x512xf32>
    %c0_9 = arith.constant 0 : index
    %c0_10 = arith.constant 0 : index
    %15 = vector.load %arg6[%c0_9, %c0_10] : memref<512x512xbf16, #tpu.memory_space<vmem>>, vector<512x512xbf16>
    %cst_11 = arith.constant dense<0.000000e+00> : vector<8x512xf32>
    %16 = tpu.matmul %6, %15, %cst_11 {dimension_numbers = #tpu.dot_dimension_numbers<[1], [0], [0], [1], [0, 0, 1, 1], [], []>} : vector<8x512xbf16>, vector<512x512xbf16>, vector<8x512xf32> -> vector<8x512xf32>
    %c0_12 = arith.constant 0 : index
    %c0_13 = arith.constant 0 : index
    %17 = vector.load %arg7[%c0_12, %c0_13] : memref<1x512xf32, #tpu.memory_space<vmem>>, vector<1x512xf32>
    %18 = vector.broadcast %17 : vector<1x512xf32> to vector<8x512xf32>
    %19 = arith.addf %16, %18 : vector<8x512xf32>
    %20 = math.tanh %19 : vector<8x512xf32>
    %21 = arith.truncf %14 : vector<8x512xf32> to vector<8x512xbf16>
    %c0_14 = arith.constant 0 : index
    %c0_15 = arith.constant 0 : index
    %22 = vector.load %arg8[%c0_14, %c0_15] : memref<512x512xbf16, #tpu.memory_space<vmem>>, vector<512x512xbf16>
    %cst_16 = arith.constant dense<0.000000e+00> : vector<8x512xf32>
    %23 = tpu.matmul %21, %22, %cst_16 {dimension_numbers = #tpu.dot_dimension_numbers<[1], [0], [0], [1], [0, 0, 1, 1], [], []>} : vector<8x512xbf16>, vector<512x512xbf16>, vector<8x512xf32> -> vector<8x512xf32>
    %c0_17 = arith.constant 0 : index
    %c0_18 = arith.constant 0 : index
    %24 = vector.load %arg9[%c0_17, %c0_18] : memref<1x512xf32, #tpu.memory_space<vmem>>, vector<1x512xf32>
    %25 = vector.broadcast %24 : vector<1x512xf32> to vector<8x512xf32>
    %26 = arith.addf %23, %25 : vector<8x512xf32>
    %27 = math.tanh %26 : vector<8x512xf32>
    %28 = arith.truncf %20 : vector<8x512xf32> to vector<8x512xbf16>
    %c0_19 = arith.constant 0 : index
    %c0_20 = arith.constant 0 : index
    %29 = vector.load %arg10[%c0_19, %c0_20] : memref<512x512xbf16, #tpu.memory_space<vmem>>, vector<512x512xbf16>
    %cst_21 = arith.constant dense<0.000000e+00> : vector<8x512xf32>
    %30 = tpu.matmul %28, %29, %cst_21 {dimension_numbers = #tpu.dot_dimension_numbers<[1], [0], [0], [1], [0, 0, 1, 1], [], []>} : vector<8x512xbf16>, vector<512x512xbf16>, vector<8x512xf32> -> vector<8x512xf32>
    %c0_22 = arith.constant 0 : index
    %c0_23 = arith.constant 0 : index
    %31 = vector.load %arg11[%c0_22, %c0_23] : memref<1x512xf32, #tpu.memory_space<vmem>>, vector<1x512xf32>
    %32 = vector.broadcast %31 : vector<1x512xf32> to vector<8x512xf32>
    %33 = arith.addf %30, %32 : vector<8x512xf32>
    %34 = math.tanh %33 : vector<8x512xf32>
    %35 = arith.mulf %27, %34 : vector<8x512xf32>
    %36 = arith.addf %12, %35 : vector<8x512xf32>
    %c0_24 = arith.constant 0 : index
    %c0_25 = arith.constant 0 : index
    %37 = vector.load %arg12[%c0_24, %c0_25] : memref<8x512xf32, #tpu.memory_space<vmem>>, vector<8x512xf32>
    tpu.vector_store %arg12[%c0_24, %c0_25], %36 {strides = array<i32>} : memref<8x512xf32, #tpu.memory_space<vmem>>, vector<8x512xf32>,
    return
  }
  func.func @transform_0(%arg0: i32, %arg1: i32) -> (i32, i32, i32) {
    %c0_i32 = arith.constant 0 : i32
    %c0_i32_0 = arith.constant 0 : i32
    %c0_i32_1 = arith.constant 0 : i32
    return %c0_i32, %arg0, %c0_i32_0 : i32, i32, i32
  }
  func.func @transform_1(%arg0: i32, %arg1: i32) -> (i32, i32, i32) {
    %c1_i32 = arith.constant 1 : i32
    %0 = arith.addi %arg1, %c1_i32 : i32
    %c0_i32 = arith.constant 0 : i32
    %c0_i32_0 = arith.constant 0 : i32
    return %0, %arg0, %c0_i32 : i32, i32, i32
  }
  func.func @transform_2(%arg0: i32, %arg1: i32) -> (i32, i32) {
    %c0_i32 = arith.constant 0 : i32
    %c0_i32_0 = arith.constant 0 : i32
    %c0_i32_1 = arith.constant 0 : i32
    return %c0_i32, %c0_i32_0 : i32, i32
  }
  func.func @transform_3(%arg0: i32, %arg1: i32) -> (i32, i32) {
    %c0_i32 = arith.constant 0 : i32
    %c0_i32_0 = arith.constant 0 : i32
    %c0_i32_1 = arith.constant 0 : i32
    return %c0_i32, %c0_i32_0 : i32, i32
  }
  func.func @transform_4(%arg0: i32, %arg1: i32) -> (i32, i32) {
    %c0_i32 = arith.constant 0 : i32
    %c0_i32_0 = arith.constant 0 : i32
    %c0_i32_1 = arith.constant 0 : i32
    return %c0_i32, %c0_i32_0 : i32, i32
  }
  func.func @transform_5(%arg0: i32, %arg1: i32) -> (i32, i32) {
    %c0_i32 = arith.constant 0 : i32
    %c0_i32_0 = arith.constant 0 : i32
    %c0_i32_1 = arith.constant 0 : i32
    return %c0_i32, %c0_i32_0 : i32, i32
  }
  func.func @transform_6(%arg0: i32, %arg1: i32) -> (i32, i32) {
    %c0_i32 = arith.constant 0 : i32
    %c0_i32_0 = arith.constant 0 : i32
    %c0_i32_1 = arith.constant 0 : i32
    return %c0_i32, %c0_i32_0 : i32, i32
  }
  func.func @transform_7(%arg0: i32, %arg1: i32) -> (i32, i32) {
    %c0_i32 = arith.constant 0 : i32
    %c0_i32_0 = arith.constant 0 : i32
    %c0_i32_1 = arith.constant 0 : i32
    return %c0_i32, %c0_i32_0 : i32, i32
  }
  func.func @transform_8(%arg0: i32, %arg1: i32) -> (i32, i32) {
    %c0_i32 = arith.constant 0 : i32
    %c0_i32_0 = arith.constant 0 : i32
    %c0_i32_1 = arith.constant 0 : i32
    return %c0_i32, %c0_i32_0 : i32, i32
  }
  func.func @transform_9(%arg0: i32, %arg1: i32) -> (i32, i32) {
    %c0_i32 = arith.constant 0 : i32
    %c0_i32_0 = arith.constant 0 : i32
    %c0_i32_1 = arith.constant 0 : i32
    return %c0_i32, %c0_i32_0 : i32, i32
  }
  func.func @transform_10(%arg0: i32, %arg1: i32) -> (i32, i32) {
    %c0_i32 = arith.constant 0 : i32
    %c0_i32_0 = arith.constant 0 : i32
    return %arg0, %c0_i32 : i32, i32
  }
}

</mosaic_0001>

<bundles_post_ra>
// kernel: _mrn_forward_impl.1
= control target key start
LH: loop header
LB: loop body
LE: loop exit
PB: predicated region body
PF: predicated region fallthrough
CT: control target
= control target key end

     0   :  { %s6711_s13 = smov 0   ;;  %s6713_s14 = smov 0   ;;  %s8869_s0 = inlined_call_operand.vmem [shape: bf16[3,8,512], index: 0, kind: input, shape index: {}, may-alias: {0,1}]   ;;  %s8870_s1 = inlined_call_operand.vmem [shape: bf16[3,8,512], index: 1, kind: input, shape index: {}, may-alias: {0,1}]   ;;  %s8871_s2 = inlined_call_operand.vmem [shape: bf16[512,1024], index: 2, kind: input, shape index: {}]   ;;  %s8872_s3 = inlined_call_operand.vmem [shape: f32[1,1024], index: 3, kind: input, shape index: {}]   ;;  %s8873_s4 = inlined_call_operand.vmem [shape: bf16[512,512], index: 4, kind: input, shape index: {}]   ;;  %s8874_s5 = inlined_call_operand.vmem [shape: f32[1,512], index: 5, kind: input, shape index: {}]   ;;  %s8875_s6 = inlined_call_operand.vmem [shape: bf16[512,512], index: 6, kind: input, shape index: {}]   ;;  %s8876_s7 = inlined_call_operand.vmem [shape: f32[1,512], index: 7, kind: input, shape index: {}]   ;;  %s8877_s8 = inlined_call_operand.vmem [shape: bf16[512,512], index: 8, kind: input, shape index: {}]   ;;  %s8878_s9 = inlined_call_operand.vmem [shape: f32[1,512], index: 9, kind: input, shape index: {}]   ;;  %s8879_s10 = inlined_call_operand.vmem [shape: f32[8,512], index: 10, kind: output, shape index: {}]  }
   0x1   :  { %s6715_s15 = smov 0  }
   0x2 LB: > { %s29_s16 = sadd.s32 1, %s6650_s14  ;;  %p5344_p0 = scmp.ge.s32.totalorder %s6654_s15, 1  ;;  %s6654_s15 = sphi %s6715_s15, %s20_s15   ;;  %s6650_s14 = sphi %s6713_s14, %s8881_s14   ;;  %s6646_s13 = sphi %s6711_s13, %s8880_s13  }
   0x3   : > { %p30_p1 = scmp.ge.s32.totalorder %s29_s16, 2  ;;  %p344_p2 = scmp.lt.s32.totalorder %s6654_s15, 3 }
   0x5   : > { %s8883_s16 = smov (%p30_p1, %s29_s16), 0  ;;  %p345_p3 = pnand %p5344_p0, %p344_p2 }
   0x6   : > { %s397_s17 = sadd.s32 (!%p345_p3), 1, %s6646_s13  ;;  %p5347_p5 = scmp.ne.s32.totalorder (!%p345_p3), %s6646_s13, 0 }
   0x7   : > { %348 = sbr.rel (%p345_p3) target bundleno = 906 (0x38a), region = 60  ;;  %p398_p4 = scmp.lt.s32.totalorder (!%p345_p3), %s397_s17, 2 }
   0xc   : > { %s8885_s17 = smov (!%p398_p4, %s397_s17), 2  ;;  %416 = sbr.rel (%p5347_p5) target bundleno = 22 (0x16), region = 64 }
   0xd   : > { %s5995_s18 = sshll.u32 %s8885_s17, 4 }
   0xe   : > { %s6732_s21 = scalar_lea.vmem %s8870_s1, %s5995_s18 }
  0x11   : > { %v417_v0 = vld [vmem:[%s8869_s0] sm:$0xff]  ;;  %v418_v1 = vld [vmem:[%s8869_s0 + $0x8] sm:$0xff] }
  0x12   : > { %v419_v2 = vunpack.c.l.bf16 %v417_v0  ;;  %v420_v3 = vunpack.c.h.bf16 %v417_v0  ;;  %v421_v4 = vunpack.c.l.bf16 %v418_v1  ;;  %v422_v5 = vunpack.c.h.bf16 %v418_v1 }
  0x14   : > { %423 = vst [vmem:[%s8879_s10] sm:$0xff] %v419_v2  ;;  %424 = vst [vmem:[%s8879_s10 + $0x8] sm:$0xff] %v420_v3 }
  0x15   : > { %425 = vst [vmem:[%s8879_s10 + $0x10] sm:$0xff] %v421_v4  ;;  %426 = vst [vmem:[%s8879_s10 + $0x18] sm:$0xff] %v422_v5 }
  0x16 PF: > { %v493_v6 = vld [vmem:[%s8871_s2 + $0x1c0] sm:$0xff] }
  0x17   : > { %v497_v7 = vld [vmem:[%s8871_s2 + $0x1e0] sm:$0xff] }
  0x18   : > { %v621_v8 = vld [vmem:[%s8871_s2 + $0x5c0] sm:$0xff]  ;;  %v5405_v9 = vcombine.high %v493_v6, %v497_v7  ;;  %v5404_v11 = vcombine.low %v493_v6, %v497_v7 }
  0x19   : > { %v625_v10 = vld [vmem:[%s8871_s2 + $0x5e0] sm:$0xff] }
  0x1a   : > { %v485_v12 = vld [vmem:[%s8871_s2 + $0x180] sm:$0xff]  ;;  %v5533_v14 = vcombine.high %v621_v8, %v625_v10  ;;  %v5532_v15 = vcombine.low %v621_v8, %v625_v10  ;;  %2015 = vmatprep.subr.bf16.mxu0 %v5405_v9 }
  0x1b   : > { %v489_v13 = vld [vmem:[%s8871_s2 + $0x1a0] sm:$0xff]  ;;  %2016 = vmatpush1.bf16.msra.mxu0 %v5404_v11  ;;  %v428_v59 = vld [vmem:[%s8879_s10 + $0x8] sm:$0xff] }
  0x1c   : > { %v5397_v16 = vcombine.high %v485_v12, %v489_v13  ;;  %v613_v17 = vld [vmem:[%s8871_s2 + $0x580] sm:$0xff]  ;;  %2056 = vmatprep.subr.bf16.mxu1 %v5533_v14  ;;  %v5396_v24 = vcombine.low %v485_v12, %v489_v13  ;;  %v430_v60 = vld [vmem:[%s8879_s10 + $0x18] sm:$0xff]  ;;  %v6848_v0 = vpack.c.bf16 %v428_v59, %v428_v59 }
  0x1d   : > { %v617_v18 = vld [vmem:[%s8871_s2 + $0x5a0] sm:$0xff]  ;;  %2057 = vmatpush1.bf16.msra.mxu1 %v5532_v15  ;;  %v6850_v1 = vpack.c.bf16 %v430_v60, %v430_v60 }
  0x1e   : > { %v477_v19 = vld [vmem:[%s8871_s2 + $0x140] sm:$0xff]  ;;  %v5525_v20 = vcombine.high %v613_v17, %v617_v18  ;;  %2017 = vmatprep.subr.bf16.mxu0 %v5397_v16  ;;  %v5524_v25 = vcombine.low %v613_v17, %v617_v18  ;;  %2047 = vmatprep.mubr.bf16.mxu0 %v6848_v0 }
  0x1f   : > { %v481_v21 = vld [vmem:[%s8871_s2 + $0x160] sm:$0xff]  ;;  %2018 = vmatpush1.bf16.msra.mxu0 %v5396_v24  ;;  %2088 = vmatprep.mubr.bf16.mxu1 %v6850_v1 }
  0x20   : > { %v605_v22 = vld [vmem:[%s8871_s2 + $0x540] sm:$0xff]  ;;  %v5389_v26 = vcombine.high %v477_v19, %v481_v21  ;;  %2058 = vmatprep.subr.bf16.mxu1 %v5525_v20  ;;  %v5388_v32 = vcombine.low %v477_v19, %v481_v21 }
  0x21   : > { %v609_v23 = vld [vmem:[%s8871_s2 + $0x560] sm:$0xff]  ;;  %2059 = vmatpush1.bf16.msra.mxu1 %v5524_v25 }
  0x22   : > { %v5517_v27 = vcombine.high %v605_v22, %v609_v23  ;;  %v469_v28 = vld [vmem:[%s8871_s2 + $0x100] sm:$0xff]  ;;  %2019 = vmatprep.subr.bf16.mxu0 %v5389_v26  ;;  %v5516_v33 = vcombine.low %v605_v22, %v609_v23 }
  0x23   : > { %v473_v29 = vld [vmem:[%s8871_s2 + $0x120] sm:$0xff]  ;;  %2020 = vmatpush1.bf16.msra.mxu0 %v5388_v32 }
  0x24   : > { %v597_v30 = vld [vmem:[%s8871_s2 + $0x500] sm:$0xff]  ;;  %v5381_v34 = vcombine.high %v469_v28, %v473_v29  ;;  %2060 = vmatprep.subr.bf16.mxu1 %v5517_v27  ;;  %v5380_v40 = vcombine.low %v469_v28, %v473_v29 }
  0x25   : > { %v601_v31 = vld [vmem:[%s8871_s2 + $0x520] sm:$0xff]  ;;  %2061 = vmatpush1.bf16.msra.mxu1 %v5516_v33 }
  0x26   : > { %v5509_v35 = vcombine.high %v597_v30, %v601_v31  ;;  %v461_v36 = vld [vmem:[%s8871_s2 + $0xc0] sm:$0xff]  ;;  %2021 = vmatprep.subr.bf16.mxu0 %v5381_v34  ;;  %v5508_v41 = vcombine.low %v597_v30, %v601_v31 }
  0x27   : > { %v465_v37 = vld [vmem:[%s8871_s2 + $0xe0] sm:$0xff]  ;;  %2022 = vmatpush1.bf16.msra.mxu0 %v5380_v40 }
  0x28   : > { %v589_v38 = vld [vmem:[%s8871_s2 + $0x4c0] sm:$0xff]  ;;  %v5373_v42 = vcombine.high %v461_v36, %v465_v37  ;;  %2062 = vmatprep.subr.bf16.mxu1 %v5509_v35  ;;  %v5372_v48 = vcombine.low %v461_v36, %v465_v37 }
  0x29   : > { %v593_v39 = vld [vmem:[%s8871_s2 + $0x4e0] sm:$0xff]  ;;  %2063 = vmatpush1.bf16.msra.mxu1 %v5508_v41 }
  0x2a   : > { %v5501_v43 = vcombine.high %v589_v38, %v593_v39  ;;  %v453_v44 = vld [vmem:[%s8871_s2 + $0x80] sm:$0xff]  ;;  %2023 = vmatprep.subr.bf16.mxu0 %v5373_v42  ;;  %v5500_v49 = vcombine.low %v589_v38, %v593_v39 }
  0x2b   : > { %v457_v45 = vld [vmem:[%s8871_s2 + $0xa0] sm:$0xff]  ;;  %2024 = vmatpush1.bf16.msra.mxu0 %v5372_v48 }
  0x2c   : > { %v581_v46 = vld [vmem:[%s8871_s2 + $0x480] sm:$0xff]  ;;  %v5365_v50 = vcombine.high %v453_v44, %v457_v45  ;;  %2064 = vmatprep.subr.bf16.mxu1 %v5501_v43  ;;  %v5364_v56 = vcombine.low %v453_v44, %v457_v45 }
  0x2d   : > { %v585_v47 = vld [vmem:[%s8871_s2 + $0x4a0] sm:$0xff]  ;;  %2065 = vmatpush1.bf16.msra.mxu1 %v5500_v49 }
  0x2e   : > { %v5493_v51 = vcombine.high %v581_v46, %v585_v47  ;;  %v445_v52 = vld [vmem:[%s8871_s2 + $0x40] sm:$0xff]  ;;  %2025 = vmatprep.subr.bf16.mxu0 %v5365_v50  ;;  %v5492_v57 = vcombine.low %v581_v46, %v585_v47 }
  0x2f   : > { %v449_v53 = vld [vmem:[%s8871_s2 + $0x60] sm:$0xff]  ;;  %2026 = vmatpush1.bf16.msra.mxu0 %v5364_v56 }
  0x30   : > { %v573_v54 = vld [vmem:[%s8871_s2 + $0x440] sm:$0xff]  ;;  %v5357_v58 = vcombine.high %v445_v52, %v449_v53  ;;  %2066 = vmatprep.subr.bf16.mxu1 %v5493_v51  ;;  %v5356_v4 = vcombine.low %v445_v52, %v449_v53 }
  0x31   : > { %v577_v55 = vld [vmem:[%s8871_s2 + $0x460] sm:$0xff]  ;;  %2067 = vmatpush1.bf16.msra.mxu1 %v5492_v57 }
  0x32   : > { %v5485_v61 = vcombine.high %v573_v54, %v577_v55  ;;  %v437_v62 = vld [vmem:[%s8871_s2] sm:$0xff]  ;;  %2027 = vmatprep.subr.bf16.mxu0 %v5357_v58  ;;  %v5484_v5 = vcombine.low %v573_v54, %v577_v55 }
  0x33   : > { %v441_v63 = vld [vmem:[%s8871_s2 + $0x20] sm:$0xff]  ;;  %2028 = vmatpush1.bf16.msra.mxu0 %v5356_v4 }
  0x34   : > { %v565_v2 = vld [vmem:[%s8871_s2 + $0x400] sm:$0xff]  ;;  %v5349_v6 = vcombine.high %v437_v62, %v441_v63  ;;  %2068 = vmatprep.subr.bf16.mxu1 %v5485_v61  ;;  %v5348_v12 = vcombine.low %v437_v62, %v441_v63 }
  0x35   : > { %v569_v3 = vld [vmem:[%s8871_s2 + $0x420] sm:$0xff]  ;;  %2069 = vmatpush1.bf16.msra.mxu1 %v5484_v5 }
  0x36   : > { %v5477_v7 = vcombine.high %v565_v2, %v569_v3  ;;  %v557_v8 = vld [vmem:[%s8871_s2 + $0x3c0] sm:$0xff]  ;;  %2029 = vmatprep.subr.bf16.mxu0 %v5349_v6  ;;  %v5476_v13 = vcombine.low %v565_v2, %v569_v3 }
  0x37   : > { %v561_v9 = vld [vmem:[%s8871_s2 + $0x3e0] sm:$0xff]  ;;  %2030 = vmatpush1.bf16.msra.mxu0 %v5348_v12  ;;  %v622_v12 = vld [vmem:[%s8871_s2 + $0x5c8] sm:$0xff] }
  0x38   : > { %v685_v10 = vld [vmem:[%s8871_s2 + $0x7c0] sm:$0xff]  ;;  %v5469_v14 = vcombine.high %v557_v8, %v561_v9  ;;  %2070 = vmatprep.subr.bf16.mxu1 %v5477_v7  ;;  %v5468_v20 = vcombine.low %v557_v8, %v561_v9 }
  0x39   : > { %v689_v11 = vld [vmem:[%s8871_s2 + $0x7e0] sm:$0xff]  ;;  %2071 = vmatpush1.bf16.msra.mxu1 %v5476_v13  ;;  %v626_v13 = vld [vmem:[%s8871_s2 + $0x5e8] sm:$0xff] }
  0x3a   : > { %v5597_v15 = vcombine.high %v685_v10, %v689_v11  ;;  %v549_v16 = vld [vmem:[%s8871_s2 + $0x380] sm:$0xff]  ;;  %2031 = vmatprep.subr.bf16.mxu0 %v5469_v14  ;;  %v5596_v21 = vcombine.low %v685_v10, %v689_v11  ;;  %v494_v10 = vld [vmem:[%s8871_s2 + $0x1c8] sm:$0xff] }
  0x3b   : > { %v553_v17 = vld [vmem:[%s8871_s2 + $0x3a0] sm:$0xff]  ;;  %2032 = vmatpush2.bf16.msra.mxu0 %v5468_v20  ;;  %v498_v11 = vld [vmem:[%s8871_s2 + $0x1e8] sm:$0xff] }
  0x3c   : > { %v677_v18 = vld [vmem:[%s8871_s2 + $0x780] sm:$0xff]  ;;  %v5461_v22 = vcombine.high %v549_v16, %v553_v17  ;;  %2072 = vmatprep.subr.bf16.mxu1 %v5597_v15  ;;  %v5460_v28 = vcombine.low %v549_v16, %v553_v17  ;;  %v429_v17 = vld [vmem:[%s8879_s10 + $0x10] sm:$0xff]  ;;  %v486_v20 = vld [vmem:[%s8871_s2 + $0x188] sm:$0xff] }
  0x3d   : > { %v681_v19 = vld [vmem:[%s8871_s2 + $0x7a0] sm:$0xff]  ;;  %2073 = vmatpush2.bf16.msra.mxu1 %v5596_v21  ;;  %v490_v21 = vld [vmem:[%s8871_s2 + $0x1a8] sm:$0xff] }
  0x3e   : > { %v5589_v23 = vcombine.high %v677_v18, %v681_v19  ;;  %v541_v24 = vld [vmem:[%s8871_s2 + $0x340] sm:$0xff]  ;;  %2033 = vmatprep.subr.bf16.mxu0 %v5461_v22  ;;  %v5588_v29 = vcombine.low %v677_v18, %v681_v19  ;;  %v5407_v18 = vcombine.high %v494_v10, %v498_v11  ;;  %v5535_v19 = vcombine.high %v622_v12, %v626_v13 }
  0x3f   : > { %v545_v25 = vld [vmem:[%s8871_s2 + $0x360] sm:$0xff]  ;;  %2034 = vmatpush2.bf16.msra.mxu0 %v5460_v28  ;;  %v5399_v28 = vcombine.high %v486_v20, %v490_v21 }
  0x40   : > { %v669_v26 = vld [vmem:[%s8871_s2 + $0x740] sm:$0xff]  ;;  %v5453_v30 = vcombine.high %v541_v24, %v545_v25  ;;  %2074 = vmatprep.subr.bf16.mxu1 %v5589_v23  ;;  %v5452_v36 = vcombine.low %v541_v24, %v545_v25  ;;  %v614_v23 = vld [vmem:[%s8871_s2 + $0x588] sm:$0xff]  ;;  %v6988_v25 = vpack.c.bf16 %v429_v17, %v429_v17 }
  0x41   : > { %v673_v27 = vld [vmem:[%s8871_s2 + $0x760] sm:$0xff]  ;;  %2075 = vmatpush2.bf16.msra.mxu1 %v5588_v29  ;;  %v618_v24 = vld [vmem:[%s8871_s2 + $0x5a8] sm:$0xff] }
  0x42   : > { %v5581_v31 = vcombine.high %v669_v26, %v673_v27  ;;  %v533_v32 = vld [vmem:[%s8871_s2 + $0x300] sm:$0xff]  ;;  %2035 = vmatprep.subr.bf16.mxu0 %v5453_v30  ;;  %v5580_v37 = vcombine.low %v669_v26, %v673_v27  ;;  %v5406_v26 = vcombine.low %v494_v10, %v498_v11  ;;  %v5534_v27 = vcombine.low %v622_v12, %v626_v13  ;;  %v478_v29 = vld [vmem:[%s8871_s2 + $0x148] sm:$0xff] }
  0x43   : > { %v537_v33 = vld [vmem:[%s8871_s2 + $0x320] sm:$0xff]  ;;  %2036 = vmatpush2.bf16.msra.mxu0 %v5452_v36  ;;  %v482_v30 = vld [vmem:[%s8871_s2 + $0x168] sm:$0xff] }
  0x44   : > { %v661_v34 = vld [vmem:[%s8871_s2 + $0x700] sm:$0xff]  ;;  %v5445_v38 = vcombine.high %v533_v32, %v537_v33  ;;  %2076 = vmatprep.subr.bf16.mxu1 %v5581_v31  ;;  %v5444_v44 = vcombine.low %v533_v32, %v537_v33  ;;  %v5527_v31 = vcombine.high %v614_v23, %v618_v24  ;;  %v606_v32 = vld [vmem:[%s8871_s2 + $0x548] sm:$0xff]  ;;  %v5391_v36 = vcombine.high %v478_v29, %v482_v30 }
  0x45   : > { %v665_v35 = vld [vmem:[%s8871_s2 + $0x720] sm:$0xff]  ;;  %2077 = vmatpush2.bf16.msra.mxu1 %v5580_v37  ;;  %v610_v33 = vld [vmem:[%s8871_s2 + $0x568] sm:$0xff] }
  0x46   : > { %v5573_v39 = vcombine.high %v661_v34, %v665_v35  ;;  %v525_v40 = vld [vmem:[%s8871_s2 + $0x2c0] sm:$0xff]  ;;  %2037 = vmatprep.subr.bf16.mxu0 %v5445_v38  ;;  %v5572_v45 = vcombine.low %v661_v34, %v665_v35  ;;  %v5398_v34 = vcombine.low %v486_v20, %v490_v21  ;;  %v5526_v35 = vcombine.low %v614_v23, %v618_v24  ;;  %v470_v37 = vld [vmem:[%s8871_s2 + $0x108] sm:$0xff] }
  0x47   : > { %v529_v41 = vld [vmem:[%s8871_s2 + $0x2e0] sm:$0xff]  ;;  %2038 = vmatpush2.bf16.msra.mxu0 %v5444_v44  ;;  %v474_v38 = vld [vmem:[%s8871_s2 + $0x128] sm:$0xff] }
  0x48   : > { %v653_v42 = vld [vmem:[%s8871_s2 + $0x6c0] sm:$0xff]  ;;  %v5437_v46 = vcombine.high %v525_v40, %v529_v41  ;;  %2078 = vmatprep.subr.bf16.mxu1 %v5573_v39  ;;  %v5436_v52 = vcombine.low %v525_v40, %v529_v41  ;;  %v598_v39 = vld [vmem:[%s8871_s2 + $0x508] sm:$0xff]  ;;  %v5519_v40 = vcombine.high %v606_v32, %v610_v33  ;;  %v5383_v44 = vcombine.high %v470_v37, %v474_v38 }
  0x49   : > { %v657_v43 = vld [vmem:[%s8871_s2 + $0x6e0] sm:$0xff]  ;;  %2079 = vmatpush2.bf16.msra.mxu1 %v5572_v45  ;;  %v602_v41 = vld [vmem:[%s8871_s2 + $0x528] sm:$0xff] }
  0x4a   : > { %v5565_v47 = vcombine.high %v653_v42, %v657_v43  ;;  %v517_v48 = vld [vmem:[%s8871_s2 + $0x280] sm:$0xff]  ;;  %2039 = vmatprep.subr.bf16.mxu0 %v5437_v46  ;;  %v5564_v53 = vcombine.low %v653_v42, %v657_v43  ;;  %v5390_v42 = vcombine.low %v478_v29, %v482_v30  ;;  %v5518_v43 = vcombine.low %v606_v32, %v610_v33  ;;  %v462_v45 = vld [vmem:[%s8871_s2 + $0xc8] sm:$0xff] }
  0x4b   : > { %v521_v49 = vld [vmem:[%s8871_s2 + $0x2a0] sm:$0xff]  ;;  %2040 = vmatpush2.bf16.msra.mxu0 %v5436_v52  ;;  %v466_v46 = vld [vmem:[%s8871_s2 + $0xe8] sm:$0xff] }
  0x4c   : > { %v645_v50 = vld [vmem:[%s8871_s2 + $0x680] sm:$0xff]  ;;  %v5429_v54 = vcombine.high %v517_v48, %v521_v49  ;;  %2080 = vmatprep.subr.bf16.mxu1 %v5565_v47  ;;  %v5428_v60 = vcombine.low %v517_v48, %v521_v49  ;;  %v590_v47 = vld [vmem:[%s8871_s2 + $0x4c8] sm:$0xff]  ;;  %v5511_v48 = vcombine.high %v598_v39, %v602_v41  ;;  %v5375_v52 = vcombine.high %v462_v45, %v466_v46 }
  0x4d   : > { %v649_v51 = vld [vmem:[%s8871_s2 + $0x6a0] sm:$0xff]  ;;  %2081 = vmatpush2.bf16.msra.mxu1 %v5564_v53  ;;  %v594_v49 = vld [vmem:[%s8871_s2 + $0x4e8] sm:$0xff] }
  0x4e   : > { %v5557_v55 = vcombine.high %v645_v50, %v649_v51  ;;  %v509_v56 = vld [vmem:[%s8871_s2 + $0x240] sm:$0xff]  ;;  %2041 = vmatprep.subr.bf16.mxu0 %v5429_v54  ;;  %v5556_v61 = vcombine.low %v645_v50, %v649_v51  ;;  %v5382_v50 = vcombine.low %v470_v37, %v474_v38  ;;  %v5510_v51 = vcombine.low %v598_v39, %v602_v41  ;;  %v454_v53 = vld [vmem:[%s8871_s2 + $0x88] sm:$0xff] }
  0x4f   : > { %v513_v57 = vld [vmem:[%s8871_s2 + $0x260] sm:$0xff]  ;;  %2042 = vmatpush2.bf16.msra.mxu0 %v5428_v60  ;;  %v458_v54 = vld [vmem:[%s8871_s2 + $0xa8] sm:$0xff] }
  0x50   : > { %v637_v58 = vld [vmem:[%s8871_s2 + $0x640] sm:$0xff]  ;;  %v5421_v62 = vcombine.high %v509_v56, %v513_v57  ;;  %2082 = vmatprep.subr.bf16.mxu1 %v5557_v55  ;;  %v5420_v6 = vcombine.low %v509_v56, %v513_v57  ;;  %v582_v55 = vld [vmem:[%s8871_s2 + $0x488] sm:$0xff]  ;;  %v5503_v56 = vcombine.high %v590_v47, %v594_v49  ;;  %v5367_v60 = vcombine.high %v454_v53, %v458_v54 }
  0x51   : > { %v641_v59 = vld [vmem:[%s8871_s2 + $0x660] sm:$0xff]  ;;  %2083 = vmatpush2.bf16.msra.mxu1 %v5556_v61  ;;  %v586_v57 = vld [vmem:[%s8871_s2 + $0x4a8] sm:$0xff] }
  0x52   : > { %v5549_v63 = vcombine.high %v637_v58, %v641_v59  ;;  %v501_v2 = vld [vmem:[%s8871_s2 + $0x200] sm:$0xff]  ;;  %2043 = vmatprep.subr.bf16.mxu0 %v5421_v62  ;;  %v5548_v7 = vcombine.low %v637_v58, %v641_v59  ;;  %v5374_v58 = vcombine.low %v462_v45, %v466_v46  ;;  %v5502_v59 = vcombine.low %v590_v47, %v594_v49  ;;  %v446_v61 = vld [vmem:[%s8871_s2 + $0x48] sm:$0xff] }
  0x53   : > { %v505_v3 = vld [vmem:[%s8871_s2 + $0x220] sm:$0xff]  ;;  %2044 = vmatpush2.bf16.msra.mxu0 %v5420_v6  ;;  %v450_v62 = vld [vmem:[%s8871_s2 + $0x68] sm:$0xff] }
  0x54   : > { %v629_v4 = vld [vmem:[%s8871_s2 + $0x600] sm:$0xff]  ;;  %v5413_v8 = vcombine.high %v501_v2, %v505_v3  ;;  %2084 = vmatprep.subr.bf16.mxu1 %v5549_v63  ;;  %v5412_v14 = vcombine.low %v501_v2, %v505_v3  ;;  %v574_v63 = vld [vmem:[%s8871_s2 + $0x448] sm:$0xff]  ;;  %v5495_v2 = vcombine.high %v582_v55, %v586_v57  ;;  %v5359_v6 = vcombine.high %v446_v61, %v450_v62 }
  0x55   : > { %v633_v5 = vld [vmem:[%s8871_s2 + $0x620] sm:$0xff]  ;;  %2085 = vmatpush2.bf16.msra.mxu1 %v5548_v7  ;;  %v578_v3 = vld [vmem:[%s8871_s2 + $0x468] sm:$0xff]  ;;  %v5358_v12 = vcombine.low %v446_v61, %v450_v62 }
  0x56   : > { %v5541_v9 = vcombine.high %v629_v4, %v633_v5  ;;  %v427_v15 = vld [vmem:[%s8879_s10] sm:$0xff]  ;;  %2045 = vmatprep.subr.bf16.mxu0 %v5413_v8  ;;  %v5540_v16 = vcombine.low %v629_v4, %v633_v5  ;;  %v5366_v4 = vcombine.low %v454_v53, %v458_v54  ;;  %v5494_v5 = vcombine.low %v582_v55, %v586_v57  ;;  %v438_v7 = vld [vmem:[%s8871_s2 + $0x8] sm:$0xff] }
  0x57   : > { %v6980_v22 = vpack.c.bf16 %v427_v15, %v427_v15  ;;  %2046 = vmatpush2.bf16.msra.mxu0 %v5412_v14  ;;  %v442_v8 = vld [vmem:[%s8871_s2 + $0x28] sm:$0xff]  ;;  %v5487_v10 = vcombine.high %v574_v63, %v578_v3  ;;  %v5486_v13 = vcombine.low %v574_v63, %v578_v3 }
  0x58   : > { %2086 = vmatprep.subr.bf16.mxu1 %v5541_v9  ;;  %2097 = vmatprep.subr.bf16.mxu0 %v5407_v18  ;;  %v566_v9 = vld [vmem:[%s8871_s2 + $0x408] sm:$0xff]  ;;  %v5351_v14 = vcombine.high %v438_v7, %v442_v8  ;;  %v5350_v20 = vcombine.low %v438_v7, %v442_v8 }
  0x59   : > { %2087 = vmatpush2.bf16.msra.mxu1 %v5540_v16  ;;  %v570_v11 = vld [vmem:[%s8871_s2 + $0x428] sm:$0xff] }
  0x5a   : > { %2138 = vmatprep.subr.bf16.mxu1 %v5535_v19  ;;  %2048 = vmatmul.mubr.bf16.vlgmr.msra.gmra.mxu0 %v6980_v22  ;;  %v558_v15 = vld [vmem:[%s8871_s2 + $0x3c8] sm:$0xff]  ;;  %v5479_v18 = vcombine.high %v566_v9, %v570_v11  ;;  %v5478_v21 = vcombine.low %v566_v9, %v570_v11 }
  0x5b   : > { %2098 = vmatpush1.bf16.msra.mxu0 %v5406_v26  ;;  %2129 = vmatprep.mubr.bf16.mxu0 %v6848_v0  ;;  %v562_v16 = vld [vmem:[%s8871_s2 + $0x3e8] sm:$0xff] }
  0x5c   : > { %2089 = vmatmul.mubr.bf16.vlgmr.msra.gmra.mxu1 %v6988_v25  ;;  %2099 = vmatprep.subr.bf16.mxu0 %v5399_v28  ;;  %v686_v17 = vld [vmem:[%s8871_s2 + $0x7c8] sm:$0xff]  ;;  %v5471_v23 = vcombine.high %v558_v15, %v562_v16  ;;  %v5470_v30 = vcombine.low %v558_v15, %v562_v16 }
  0x5d   : > { %2139 = vmatpush1.bf16.msra.mxu1 %v5534_v27  ;;  %2170 = vmatprep.mubr.bf16.mxu1 %v6850_v1  ;;  %v690_v19 = vld [vmem:[%s8871_s2 + $0x7e8] sm:$0xff] }
  0x5e   : > { %2140 = vmatprep.subr.bf16.mxu1 %v5527_v31  ;;  %v550_v24 = vld [vmem:[%s8871_s2 + $0x388] sm:$0xff]  ;;  %v5599_v28 = vcombine.high %v686_v17, %v690_v19  ;;  %v5598_v31 = vcombine.low %v686_v17, %v690_v19  ;;  %v495_v19 = vld [vmem:[%s8871_s2 + $0x1d0] sm:$0xff] }
  0x5f   : > { %2100 = vmatpush1.bf16.msra.mxu0 %v5398_v34  ;;  %v554_v26 = vld [vmem:[%s8871_s2 + $0x3a8] sm:$0xff] }
  0x60   : > { %2101 = vmatprep.subr.bf16.mxu0 %v5391_v36  ;;  %v678_v27 = vld [vmem:[%s8871_s2 + $0x788] sm:$0xff]  ;;  %v5463_v32 = vcombine.high %v550_v24, %v554_v26  ;;  %v5462_v38 = vcombine.low %v550_v24, %v554_v26  ;;  %v627_v24 = vld [vmem:[%s8871_s2 + $0x5f0] sm:$0xff] }
  0x61   : > { %2141 = vmatpush1.bf16.msra.mxu1 %v5526_v35  ;;  %v682_v29 = vld [vmem:[%s8871_s2 + $0x7a8] sm:$0xff] }
  0x62   : > { %2142 = vmatprep.subr.bf16.mxu1 %v5519_v40  ;;  %v542_v33 = vld [vmem:[%s8871_s2 + $0x348] sm:$0xff]  ;;  %v5591_v36 = vcombine.high %v678_v27, %v682_v29  ;;  %v5590_v39 = vcombine.low %v678_v27, %v682_v29  ;;  %v487_v29 = vld [vmem:[%s8871_s2 + $0x190] sm:$0xff] }
  0x63   : > { %2102 = vmatpush1.bf16.msra.mxu0 %v5390_v42  ;;  %v546_v34 = vld [vmem:[%s8871_s2 + $0x368] sm:$0xff] }
  0x64   : > { %2103 = vmatprep.subr.bf16.mxu0 %v5383_v44  ;;  %v670_v35 = vld [vmem:[%s8871_s2 + $0x748] sm:$0xff]  ;;  %v5455_v40 = vcombine.high %v542_v33, %v546_v34  ;;  %v5454_v46 = vcombine.low %v542_v33, %v546_v34  ;;  %v619_v33 = vld [vmem:[%s8871_s2 + $0x5b0] sm:$0xff] }
  0x65   : > { %2143 = vmatpush1.bf16.msra.mxu1 %v5518_v43  ;;  %v674_v37 = vld [vmem:[%s8871_s2 + $0x768] sm:$0xff] }
  0x66   : > { %2144 = vmatprep.subr.bf16.mxu1 %v5511_v48  ;;  %v534_v41 = vld [vmem:[%s8871_s2 + $0x308] sm:$0xff]  ;;  %v5583_v44 = vcombine.high %v670_v35, %v674_v37  ;;  %v5582_v47 = vcombine.low %v670_v35, %v674_v37 }
  0x67   : > { %2104 = vmatpush1.bf16.msra.mxu0 %v5382_v50  ;;  %v538_v42 = vld [vmem:[%s8871_s2 + $0x328] sm:$0xff] }
  0x68   : > { %2105 = vmatprep.subr.bf16.mxu0 %v5375_v52  ;;  %v662_v43 = vld [vmem:[%s8871_s2 + $0x708] sm:$0xff]  ;;  %v5447_v48 = vcombine.high %v534_v41, %v538_v42  ;;  %v5446_v54 = vcombine.low %v534_v41, %v538_v42  ;;  %v611_v41 = vld [vmem:[%s8871_s2 + $0x570] sm:$0xff] }
  0x69   : > { %2145 = vmatpush1.bf16.msra.mxu1 %v5510_v51  ;;  %v666_v45 = vld [vmem:[%s8871_s2 + $0x728] sm:$0xff] }
  0x6a   : > { %2146 = vmatprep.subr.bf16.mxu1 %v5503_v56  ;;  %v526_v49 = vld [vmem:[%s8871_s2 + $0x2c8] sm:$0xff]  ;;  %v5575_v52 = vcombine.high %v662_v43, %v666_v45  ;;  %v5574_v55 = vcombine.low %v662_v43, %v666_v45 }
  0x6b   : > { %2106 = vmatpush1.bf16.msra.mxu0 %v5374_v58  ;;  %v530_v50 = vld [vmem:[%s8871_s2 + $0x2e8] sm:$0xff] }
  0x6c   : > { %2107 = vmatprep.subr.bf16.mxu0 %v5367_v60  ;;  %v654_v51 = vld [vmem:[%s8871_s2 + $0x6c8] sm:$0xff]  ;;  %v5439_v56 = vcombine.high %v526_v49, %v530_v50  ;;  %v5438_v62 = vcombine.low %v526_v49, %v530_v50  ;;  %v603_v49 = vld [vmem:[%s8871_s2 + $0x530] sm:$0xff] }
  0x6d   : > { %2147 = vmatpush1.bf16.msra.mxu1 %v5502_v59  ;;  %v658_v53 = vld [vmem:[%s8871_s2 + $0x6e8] sm:$0xff] }
  0x6e   : > { %2148 = vmatprep.subr.bf16.mxu1 %v5495_v2  ;;  %v518_v57 = vld [vmem:[%s8871_s2 + $0x288] sm:$0xff]  ;;  %v5567_v60 = vcombine.high %v654_v51, %v658_v53  ;;  %v5566_v63 = vcombine.low %v654_v51, %v658_v53 }
  0x6f   : > { %2108 = vmatpush1.bf16.msra.mxu0 %v5366_v4  ;;  %v522_v58 = vld [vmem:[%s8871_s2 + $0x2a8] sm:$0xff] }
  0x70   : > { %2109 = vmatprep.subr.bf16.mxu0 %v5359_v6  ;;  %v646_v59 = vld [vmem:[%s8871_s2 + $0x688] sm:$0xff]  ;;  %v5431_v2 = vcombine.high %v518_v57, %v522_v58  ;;  %v5430_v8 = vcombine.low %v518_v57, %v522_v58  ;;  %v595_v57 = vld [vmem:[%s8871_s2 + $0x4f0] sm:$0xff] }
  0x71   : > { %2149 = vmatpush1.bf16.msra.mxu1 %v5494_v5  ;;  %v650_v61 = vld [vmem:[%s8871_s2 + $0x6a8] sm:$0xff] }
  0x72   : > { %2150 = vmatprep.subr.bf16.mxu1 %v5487_v10  ;;  %v510_v3 = vld [vmem:[%s8871_s2 + $0x248] sm:$0xff]  ;;  %v5559_v6 = vcombine.high %v646_v59, %v650_v61  ;;  %v5558_v9 = vcombine.low %v646_v59, %v650_v61  ;;  %v455_v61 = vld [vmem:[%s8871_s2 + $0x90] sm:$0xff] }
  0x73   : > { %2110 = vmatpush1.bf16.msra.mxu0 %v5358_v12  ;;  %v514_v4 = vld [vmem:[%s8871_s2 + $0x268] sm:$0xff] }
  0x74   : > { %2111 = vmatprep.subr.bf16.mxu0 %v5351_v14  ;;  %v638_v5 = vld [vmem:[%s8871_s2 + $0x648] sm:$0xff]  ;;  %v5423_v10 = vcombine.high %v510_v3, %v514_v4  ;;  %v5422_v16 = vcombine.low %v510_v3, %v514_v4  ;;  %v587_v3 = vld [vmem:[%s8871_s2 + $0x4b0] sm:$0xff] }
  0x75   : > { %2151 = vmatpush1.bf16.msra.mxu1 %v5486_v13  ;;  %v642_v7 = vld [vmem:[%s8871_s2 + $0x668] sm:$0xff] }
  0x76   : > { %2152 = vmatprep.subr.bf16.mxu1 %v5479_v18  ;;  %v502_v11 = vld [vmem:[%s8871_s2 + $0x208] sm:$0xff]  ;;  %v5551_v14 = vcombine.high %v638_v5, %v642_v7  ;;  %v5550_v17 = vcombine.low %v638_v5, %v642_v7  ;;  %v447_v7 = vld [vmem:[%s8871_s2 + $0x50] sm:$0xff] }
  0x77   : > { %2112 = vmatpush1.bf16.msra.mxu0 %v5350_v20  ;;  %v506_v12 = vld [vmem:[%s8871_s2 + $0x228] sm:$0xff]  ;;  %v499_v20 = vld [vmem:[%s8871_s2 + $0x1f0] sm:$0xff] }
  0x78   : > { %2113 = vmatprep.subr.bf16.mxu0 %v5471_v23  ;;  %v630_v13 = vld [vmem:[%s8871_s2 + $0x608] sm:$0xff]  ;;  %v5415_v18 = vcombine.high %v502_v11, %v506_v12  ;;  %v5414_v26 = vcombine.low %v502_v11, %v506_v12  ;;  %v5408_v34 = vcombine.low %v495_v19, %v499_v20  ;;  %v579_v11 = vld [vmem:[%s8871_s2 + $0x470] sm:$0xff] }
  0x79   : > { %2153 = vmatpush1.bf16.msra.mxu1 %v5478_v21  ;;  %v634_v15 = vld [vmem:[%s8871_s2 + $0x628] sm:$0xff]  ;;  %v623_v21 = vld [vmem:[%s8871_s2 + $0x5d0] sm:$0xff] }
  0x7a   : > { %2154 = vmatprep.subr.bf16.mxu1 %v5599_v28  ;;  %v5543_v23 = vcombine.high %v630_v13, %v634_v15  ;;  %v5542_v27 = vcombine.low %v630_v13, %v634_v15  ;;  %v5409_v28 = vcombine.high %v495_v19, %v499_v20  ;;  %v5536_v35 = vcombine.low %v623_v21, %v627_v24  ;;  %v439_v15 = vld [vmem:[%s8871_s2 + $0x10] sm:$0xff] }
  0x7b   : > { %2114 = vmatpush2.bf16.msra.mxu0 %v5470_v30  ;;  %v491_v30 = vld [vmem:[%s8871_s2 + $0x1b0] sm:$0xff] }
  0x7c   : > { %2115 = vmatprep.subr.bf16.mxu0 %v5463_v32  ;;  %v5537_v32 = vcombine.high %v623_v21, %v627_v24  ;;  %v5400_v42 = vcombine.low %v487_v29, %v491_v30  ;;  %v571_v19 = vld [vmem:[%s8871_s2 + $0x430] sm:$0xff] }
  0x7d   : > { %2155 = vmatpush2.bf16.msra.mxu1 %v5598_v31  ;;  %v615_v31 = vld [vmem:[%s8871_s2 + $0x590] sm:$0xff] }
  0x7e   : > { %2156 = vmatprep.subr.bf16.mxu1 %v5591_v36  ;;  %v5401_v36 = vcombine.high %v487_v29, %v491_v30  ;;  %v5529_v37 = vcombine.high %v615_v31, %v619_v33  ;;  %v5528_v43 = vcombine.low %v615_v31, %v619_v33  ;;  %v559_v24 = vld [vmem:[%s8871_s2 + $0x3d0] sm:$0xff] }
  0x7f   : > { %2116 = vmatpush2.bf16.msra.mxu0 %v5462_v38  ;;  %v479_v38 = vld [vmem:[%s8871_s2 + $0x150] sm:$0xff] }
  0x80   : > { %2117 = vmatprep.subr.bf16.mxu0 %v5455_v40  ;;  %v607_v40 = vld [vmem:[%s8871_s2 + $0x550] sm:$0xff] }
  0x81   : > { %2157 = vmatpush2.bf16.msra.mxu1 %v5590_v39  ;;  %v483_v39 = vld [vmem:[%s8871_s2 + $0x170] sm:$0xff]  ;;  %v5521_v45 = vcombine.high %v607_v40, %v611_v41  ;;  %v5520_v51 = vcombine.low %v607_v40, %v611_v41 }
  0x82   : > { %2158 = vmatprep.subr.bf16.mxu1 %v5583_v44  ;;  %v5393_v44 = vcombine.high %v479_v38, %v483_v39  ;;  %v5392_v50 = vcombine.low %v479_v38, %v483_v39  ;;  %v691_v29 = vld [vmem:[%s8871_s2 + $0x7f0] sm:$0xff] }
  0x83   : > { %2118 = vmatpush2.bf16.msra.mxu0 %v5454_v46  ;;  %v471_v46 = vld [vmem:[%s8871_s2 + $0x110] sm:$0xff] }
  0x84   : > { %2119 = vmatprep.subr.bf16.mxu0 %v5447_v48  ;;  %v599_v48 = vld [vmem:[%s8871_s2 + $0x510] sm:$0xff] }
  0x85   : > { %2159 = vmatpush2.bf16.msra.mxu1 %v5582_v47  ;;  %v475_v47 = vld [vmem:[%s8871_s2 + $0x130] sm:$0xff]  ;;  %v5513_v53 = vcombine.high %v599_v48, %v603_v49  ;;  %v5512_v59 = vcombine.low %v599_v48, %v603_v49 }
  0x86   : > { %2160 = vmatprep.subr.bf16.mxu1 %v5575_v52  ;;  %v5385_v52 = vcombine.high %v471_v46, %v475_v47  ;;  %v5384_v58 = vcombine.low %v471_v46, %v475_v47  ;;  %v551_v33 = vld [vmem:[%s8871_s2 + $0x390] sm:$0xff] }
  0x87   : > { %2120 = vmatpush2.bf16.msra.mxu0 %v5446_v54  ;;  %v463_v54 = vld [vmem:[%s8871_s2 + $0xd0] sm:$0xff] }
  0x88   : > { %2121 = vmatprep.subr.bf16.mxu0 %v5439_v56  ;;  %v591_v56 = vld [vmem:[%s8871_s2 + $0x4d0] sm:$0xff] }
  0x89   : > { %2161 = vmatpush2.bf16.msra.mxu1 %v5574_v55  ;;  %v467_v55 = vld [vmem:[%s8871_s2 + $0xf0] sm:$0xff]  ;;  %v5504_v5 = vcombine.low %v591_v56, %v595_v57 }
  0x8a   : > { %2162 = vmatprep.subr.bf16.mxu1 %v5567_v60  ;;  %v5377_v60 = vcombine.high %v463_v54, %v467_v55  ;;  %v5376_v4 = vcombine.low %v463_v54, %v467_v55  ;;  %v543_v41 = vld [vmem:[%s8871_s2 + $0x350] sm:$0xff] }
  0x8b   : > { %2122 = vmatpush2.bf16.msra.mxu0 %v5438_v62  ;;  %v459_v62 = vld [vmem:[%s8871_s2 + $0xb0] sm:$0xff] }
  0x8c   : > { %2123 = vmatprep.subr.bf16.mxu0 %v5431_v2  ;;  %v5505_v2 = vcombine.high %v591_v56, %v595_v57  ;;  %v5368_v12 = vcombine.low %v455_v61, %v459_v62  ;;  %v535_v49 = vld [vmem:[%s8871_s2 + $0x310] sm:$0xff] }
  0x8d   : > { %2163 = vmatpush2.bf16.msra.mxu1 %v5566_v63  ;;  %v583_v63 = vld [vmem:[%s8871_s2 + $0x490] sm:$0xff] }
  0x8e   : > { %2164 = vmatprep.subr.bf16.mxu1 %v5559_v6  ;;  %v5369_v6 = vcombine.high %v455_v61, %v459_v62  ;;  %v5496_v13 = vcombine.low %v583_v63, %v587_v3  ;;  %v527_v57 = vld [vmem:[%s8871_s2 + $0x2d0] sm:$0xff] }
  0x8f   : > { %2124 = vmatpush2.bf16.msra.mxu0 %v5430_v8  ;;  %v451_v8 = vld [vmem:[%s8871_s2 + $0x70] sm:$0xff] }
  0x90   : > { %2125 = vmatprep.subr.bf16.mxu0 %v5423_v10  ;;  %v5497_v10 = vcombine.high %v583_v63, %v587_v3  ;;  %v5360_v20 = vcombine.low %v447_v7, %v451_v8  ;;  %v659_v61 = vld [vmem:[%s8871_s2 + $0x6f0] sm:$0xff] }
  0x91   : > { %2165 = vmatpush2.bf16.msra.mxu1 %v5558_v9  ;;  %v575_v9 = vld [vmem:[%s8871_s2 + $0x450] sm:$0xff] }
  0x92   : > { %2166 = vmatprep.subr.bf16.mxu1 %v5551_v14  ;;  %v5361_v14 = vcombine.high %v447_v7, %v451_v8  ;;  %v5488_v21 = vcombine.low %v575_v9, %v579_v11  ;;  %v519_v3 = vld [vmem:[%s8871_s2 + $0x290] sm:$0xff] }
  0x93   : > { %2126 = vmatpush2.bf16.msra.mxu0 %v5422_v16  ;;  %v443_v16 = vld [vmem:[%s8871_s2 + $0x30] sm:$0xff] }
  0x94   : > { %2127 = vmatprep.subr.bf16.mxu0 %v5415_v18  ;;  %v5489_v18 = vcombine.high %v575_v9, %v579_v11  ;;  %v5352_v30 = vcombine.low %v439_v15, %v443_v16  ;;  %v651_v7 = vld [vmem:[%s8871_s2 + $0x6b0] sm:$0xff] }
  0x95   : > { %2167 = vmatpush2.bf16.msra.mxu1 %v5550_v17  ;;  %v567_v17 = vld [vmem:[%s8871_s2 + $0x410] sm:$0xff] }
  0x96   : > { %2168 = vmatprep.subr.bf16.mxu1 %v5543_v23  ;;  %v5353_v23 = vcombine.high %v439_v15, %v443_v16  ;;  %v5480_v31 = vcombine.low %v567_v17, %v571_v19  ;;  %v511_v11 = vld [vmem:[%s8871_s2 + $0x250] sm:$0xff] }
  0x97   : > { %2128 = vmatpush2.bf16.msra.mxu0 %v5414_v26  ;;  %v563_v26 = vld [vmem:[%s8871_s2 + $0x3f0] sm:$0xff] }
  0x98   : > { %2179 = vmatprep.subr.bf16.mxu0 %v5409_v28  ;;  %v5481_v28 = vcombine.high %v567_v17, %v571_v19  ;;  %v5472_v38 = vcombine.low %v559_v24, %v563_v26  ;;  %v643_v15 = vld [vmem:[%s8871_s2 + $0x670] sm:$0xff] }
  0x99   : > { %2169 = vmatpush2.bf16.msra.mxu1 %v5542_v27  ;;  %v687_v27 = vld [vmem:[%s8871_s2 + $0x7d0] sm:$0xff] }
  0x9a   : > { %2220 = vmatprep.subr.bf16.mxu1 %v5537_v32  ;;  %2130 = vmatmul.mubr.bf16.vlgmr.msra.gmra.mxu0 %v6980_v22  ;;  %v5473_v32 = vcombine.high %v559_v24, %v563_v26  ;;  %v5600_v39 = vcombine.low %v687_v27, %v691_v29  ;;  %v503_v19 = vld [vmem:[%s8871_s2 + $0x210] sm:$0xff] }
  0x9b   : > { %2180 = vmatpush1.bf16.msra.mxu0 %v5408_v34  ;;  %2211 = vmatprep.mubr.bf16.mxu0 %v6848_v0  ;;  %v555_v34 = vld [vmem:[%s8871_s2 + $0x3b0] sm:$0xff] }
  0x9c   : > { %2171 = vmatmul.mubr.bf16.vlgmr.msra.gmra.mxu1 %v6988_v25  ;;  %2181 = vmatprep.subr.bf16.mxu0 %v5401_v36  ;;  %v5601_v36 = vcombine.high %v687_v27, %v691_v29  ;;  %v5465_v40 = vcombine.high %v551_v33, %v555_v34  ;;  %v5464_v46 = vcombine.low %v551_v33, %v555_v34  ;;  %v635_v24 = vld [vmem:[%s8871_s2 + $0x630] sm:$0xff]  ;;  %v496_v29 = vld [vmem:[%s8871_s2 + $0x1d8] sm:$0xff] }
  0x9d   : > { %2221 = vmatpush1.bf16.msra.mxu1 %v5536_v35  ;;  %2252 = vmatprep.mubr.bf16.mxu1 %v6850_v1  ;;  %v679_v35 = vld [vmem:[%s8871_s2 + $0x790] sm:$0xff]  ;;  %v628_v33 = vld [vmem:[%s8871_s2 + $0x5f8] sm:$0xff] }
  0x9e   : > { %2222 = vmatprep.subr.bf16.mxu1 %v5529_v37  ;;  %v683_v37 = vld [vmem:[%s8871_s2 + $0x7b0] sm:$0xff] }
  0x9f   : > { %2182 = vmatpush1.bf16.msra.mxu0 %v5400_v42  ;;  %v547_v42 = vld [vmem:[%s8871_s2 + $0x370] sm:$0xff]  ;;  %v5592_v47 = vcombine.low %v679_v35, %v683_v37 }
  0xa0   : > { %2183 = vmatprep.subr.bf16.mxu0 %v5393_v44  ;;  %v5593_v44 = vcombine.high %v679_v35, %v683_v37  ;;  %v5457_v48 = vcombine.high %v543_v41, %v547_v42  ;;  %v5456_v54 = vcombine.low %v543_v41, %v547_v42  ;;  %v488_v37 = vld [vmem:[%s8871_s2 + $0x198] sm:$0xff] }
  0xa1   : > { %2223 = vmatpush1.bf16.msra.mxu1 %v5528_v43  ;;  %v671_v43 = vld [vmem:[%s8871_s2 + $0x750] sm:$0xff]  ;;  %v620_v41 = vld [vmem:[%s8871_s2 + $0x5b8] sm:$0xff] }
  0xa2   : > { %2224 = vmatprep.subr.bf16.mxu1 %v5521_v45  ;;  %v675_v45 = vld [vmem:[%s8871_s2 + $0x770] sm:$0xff] }
  0xa3   : > { %2184 = vmatpush1.bf16.msra.mxu0 %v5392_v50  ;;  %v539_v50 = vld [vmem:[%s8871_s2 + $0x330] sm:$0xff]  ;;  %v5584_v55 = vcombine.low %v671_v43, %v675_v45 }
  0xa4   : > { %2185 = vmatprep.subr.bf16.mxu0 %v5385_v52  ;;  %v5585_v52 = vcombine.high %v671_v43, %v675_v45  ;;  %v5449_v56 = vcombine.high %v535_v49, %v539_v50  ;;  %v5448_v62 = vcombine.low %v535_v49, %v539_v50  ;;  %v612_v49 = vld [vmem:[%s8871_s2 + $0x578] sm:$0xff] }
  0xa5   : > { %2225 = vmatpush1.bf16.msra.mxu1 %v5520_v51  ;;  %v663_v51 = vld [vmem:[%s8871_s2 + $0x710] sm:$0xff] }
  0xa6   : > { %2226 = vmatprep.subr.bf16.mxu1 %v5513_v53  ;;  %v667_v53 = vld [vmem:[%s8871_s2 + $0x730] sm:$0xff] }
  0xa7   : > { %2186 = vmatpush1.bf16.msra.mxu0 %v5384_v58  ;;  %v531_v58 = vld [vmem:[%s8871_s2 + $0x2f0] sm:$0xff]  ;;  %v5576_v63 = vcombine.low %v663_v51, %v667_v53 }
  0xa8   : > { %2187 = vmatprep.subr.bf16.mxu0 %v5377_v60  ;;  %v5577_v60 = vcombine.high %v663_v51, %v667_v53  ;;  %v5440_v8 = vcombine.low %v527_v57, %v531_v58 }
  0xa9   : > { %2227 = vmatpush1.bf16.msra.mxu1 %v5512_v59  ;;  %v655_v59 = vld [vmem:[%s8871_s2 + $0x6d0] sm:$0xff] }
  0xaa   : > { %2228 = vmatprep.subr.bf16.mxu1 %v5505_v2  ;;  %v5441_v2 = vcombine.high %v527_v57, %v531_v58  ;;  %v5568_v9 = vcombine.low %v655_v59, %v659_v61  ;;  %v604_v57 = vld [vmem:[%s8871_s2 + $0x538] sm:$0xff] }
  0xab   : > { %2188 = vmatpush1.bf16.msra.mxu0 %v5376_v4  ;;  %v523_v4 = vld [vmem:[%s8871_s2 + $0x2b0] sm:$0xff] }
  0xac   : > { %2189 = vmatprep.subr.bf16.mxu0 %v5369_v6  ;;  %v5569_v6 = vcombine.high %v655_v59, %v659_v61  ;;  %v5432_v16 = vcombine.low %v519_v3, %v523_v4 }
  0xad   : > { %2229 = vmatpush1.bf16.msra.mxu1 %v5504_v5  ;;  %v647_v5 = vld [vmem:[%s8871_s2 + $0x690] sm:$0xff] }
  0xae   : > { %2230 = vmatprep.subr.bf16.mxu1 %v5497_v10  ;;  %v5433_v10 = vcombine.high %v519_v3, %v523_v4  ;;  %v5560_v17 = vcombine.low %v647_v5, %v651_v7 }
  0xaf   : > { %2190 = vmatpush1.bf16.msra.mxu0 %v5368_v12  ;;  %v515_v12 = vld [vmem:[%s8871_s2 + $0x270] sm:$0xff] }
  0xb0   : > { %2191 = vmatprep.subr.bf16.mxu0 %v5361_v14  ;;  %v5561_v14 = vcombine.high %v647_v5, %v651_v7  ;;  %v5424_v26 = vcombine.low %v511_v11, %v515_v12  ;;  %v456_v5 = vld [vmem:[%s8871_s2 + $0x98] sm:$0xff] }
  0xb1   : > { %2231 = vmatpush1.bf16.msra.mxu1 %v5496_v13  ;;  %v639_v13 = vld [vmem:[%s8871_s2 + $0x650] sm:$0xff]  ;;  %v584_v7 = vld [vmem:[%s8871_s2 + $0x498] sm:$0xff] }
  0xb2   : > { %2232 = vmatprep.subr.bf16.mxu1 %v5489_v18  ;;  %v5425_v18 = vcombine.high %v511_v11, %v515_v12  ;;  %v5552_v27 = vcombine.low %v639_v13, %v643_v15 }
  0xb3   : > { %2192 = vmatpush1.bf16.msra.mxu0 %v5360_v20  ;;  %v507_v20 = vld [vmem:[%s8871_s2 + $0x230] sm:$0xff] }
  0xb4   : > { %2193 = vmatprep.subr.bf16.mxu0 %v5353_v23  ;;  %v5553_v23 = vcombine.high %v639_v13, %v643_v15  ;;  %v5416_v34 = vcombine.low %v503_v19, %v507_v20  ;;  %v448_v13 = vld [vmem:[%s8871_s2 + $0x58] sm:$0xff] }
  0xb5   : > { %2233 = vmatpush1.bf16.msra.mxu1 %v5488_v21  ;;  %v631_v21 = vld [vmem:[%s8871_s2 + $0x610] sm:$0xff]  ;;  %v576_v15 = vld [vmem:[%s8871_s2 + $0x458] sm:$0xff] }
  0xb6   : > { %2234 = vmatprep.subr.bf16.mxu1 %v5481_v28  ;;  %v5417_v28 = vcombine.high %v503_v19, %v507_v20  ;;  %v5544_v35 = vcombine.low %v631_v21, %v635_v24 }
  0xb7   : > { %2194 = vmatpush1.bf16.msra.mxu0 %v5352_v30  ;;  %v500_v30 = vld [vmem:[%s8871_s2 + $0x1f8] sm:$0xff] }
  0xb8   : > { %2195 = vmatprep.subr.bf16.mxu0 %v5473_v32  ;;  %v5545_v32 = vcombine.high %v631_v21, %v635_v24  ;;  %v5410_v42 = vcombine.low %v496_v29, %v500_v30  ;;  %v440_v21 = vld [vmem:[%s8871_s2 + $0x18] sm:$0xff] }
  0xb9   : > { %2235 = vmatpush1.bf16.msra.mxu1 %v5480_v31  ;;  %v624_v31 = vld [vmem:[%s8871_s2 + $0x5d8] sm:$0xff] }
  0xba   : > { %2236 = vmatprep.subr.bf16.mxu1 %v5601_v36  ;;  %v5411_v36 = vcombine.high %v496_v29, %v500_v30  ;;  %v5538_v43 = vcombine.low %v624_v31, %v628_v33  ;;  %v568_v24 = vld [vmem:[%s8871_s2 + $0x418] sm:$0xff] }
  0xbb   : > { %2196 = vmatpush2.bf16.msra.mxu0 %v5472_v38  ;;  %v492_v38 = vld [vmem:[%s8871_s2 + $0x1b8] sm:$0xff] }
  0xbc   : > { %2197 = vmatprep.subr.bf16.mxu0 %v5465_v40  ;;  %v5539_v40 = vcombine.high %v624_v31, %v628_v33  ;;  %v5402_v50 = vcombine.low %v488_v37, %v492_v38  ;;  %v560_v31 = vld [vmem:[%s8871_s2 + $0x3d8] sm:$0xff] }
  0xbd   : > { %2237 = vmatpush2.bf16.msra.mxu1 %v5600_v39  ;;  %v616_v39 = vld [vmem:[%s8871_s2 + $0x598] sm:$0xff] }
  0xbe   : > { %2238 = vmatprep.subr.bf16.mxu1 %v5593_v44  ;;  %v5403_v44 = vcombine.high %v488_v37, %v492_v38  ;;  %v5531_v45 = vcombine.high %v616_v39, %v620_v41  ;;  %v5530_v51 = vcombine.low %v616_v39, %v620_v41  ;;  %v688_v33 = vld [vmem:[%s8871_s2 + $0x7d8] sm:$0xff] }
  0xbf   : > { %2198 = vmatpush2.bf16.msra.mxu0 %v5464_v46  ;;  %v480_v46 = vld [vmem:[%s8871_s2 + $0x158] sm:$0xff] }
  0xc0   : > { %2199 = vmatprep.subr.bf16.mxu0 %v5457_v48  ;;  %v608_v48 = vld [vmem:[%s8871_s2 + $0x558] sm:$0xff] }
  0xc1   : > { %2239 = vmatpush2.bf16.msra.mxu1 %v5592_v47  ;;  %v484_v47 = vld [vmem:[%s8871_s2 + $0x178] sm:$0xff]  ;;  %v5523_v53 = vcombine.high %v608_v48, %v612_v49  ;;  %v5522_v59 = vcombine.low %v608_v48, %v612_v49 }
  0xc2   : > { %2240 = vmatprep.subr.bf16.mxu1 %v5585_v52  ;;  %v5395_v52 = vcombine.high %v480_v46, %v484_v47  ;;  %v5394_v58 = vcombine.low %v480_v46, %v484_v47  ;;  %v552_v39 = vld [vmem:[%s8871_s2 + $0x398] sm:$0xff] }
  0xc3   : > { %2200 = vmatpush2.bf16.msra.mxu0 %v5456_v54  ;;  %v472_v54 = vld [vmem:[%s8871_s2 + $0x118] sm:$0xff] }
  0xc4   : > { %2201 = vmatprep.subr.bf16.mxu0 %v5449_v56  ;;  %v600_v56 = vld [vmem:[%s8871_s2 + $0x518] sm:$0xff] }
  0xc5   : > { %2241 = vmatpush2.bf16.msra.mxu1 %v5584_v55  ;;  %v476_v55 = vld [vmem:[%s8871_s2 + $0x138] sm:$0xff]  ;;  %v5515_v61 = vcombine.high %v600_v56, %v604_v57  ;;  %v5514_v3 = vcombine.low %v600_v56, %v604_v57 }
  0xc6   : > { %2242 = vmatprep.subr.bf16.mxu1 %v5577_v60  ;;  %v5387_v60 = vcombine.high %v472_v54, %v476_v55  ;;  %v680_v41 = vld [vmem:[%s8871_s2 + $0x798] sm:$0xff] }
  0xc7   : > { %2202 = vmatpush2.bf16.msra.mxu0 %v5448_v62  ;;  %v468_v62 = vld [vmem:[%s8871_s2 + $0xf8] sm:$0xff] }
  0xc8   : > { %2203 = vmatprep.subr.bf16.mxu0 %v5441_v2  ;;  %v5386_v2 = vcombine.low %v472_v54, %v476_v55  ;;  %v544_v47 = vld [vmem:[%s8871_s2 + $0x358] sm:$0xff] }
  0xc9   : > { %2243 = vmatpush2.bf16.msra.mxu1 %v5576_v63  ;;  %v596_v63 = vld [vmem:[%s8871_s2 + $0x4f8] sm:$0xff] }
  0xca   : > { %2244 = vmatprep.subr.bf16.mxu1 %v5569_v6  ;;  %v460_v6 = vld [vmem:[%s8871_s2 + $0xb8] sm:$0xff] }
  0xcb   : > { %2204 = vmatpush2.bf16.msra.mxu0 %v5440_v8  ;;  %v5371_v12 = vcombine.high %v456_v5, %v460_v6  ;;  %v548_v48 = vld [vmem:[%s8871_s2 + $0x378] sm:$0xff] }
  0xcc   : > { %2205 = vmatprep.subr.bf16.mxu0 %v5433_v10  ;;  %v672_v49 = vld [vmem:[%s8871_s2 + $0x758] sm:$0xff]  ;;  %v5459_v54 = vcombine.high %v544_v47, %v548_v48 }
  0xcd   : > { %2245 = vmatpush2.bf16.msra.mxu1 %v5568_v9  ;;  %v588_v9 = vld [vmem:[%s8871_s2 + $0x4b8] sm:$0xff] }
  0xce   : > { %2246 = vmatprep.subr.bf16.mxu1 %v5561_v14  ;;  %v452_v14 = vld [vmem:[%s8871_s2 + $0x78] sm:$0xff]  ;;  %v5498_v19 = vcombine.low %v584_v7, %v588_v9 }
  0xcf   : > { %2206 = vmatpush2.bf16.msra.mxu0 %v5432_v16  ;;  %v5499_v16 = vcombine.high %v584_v7, %v588_v9  ;;  %v5363_v20 = vcombine.high %v448_v13, %v452_v14  ;;  %v536_v55 = vld [vmem:[%s8871_s2 + $0x318] sm:$0xff] }
  0xd0   : > { %2207 = vmatprep.subr.bf16.mxu0 %v5425_v18  ;;  %v5370_v18 = vcombine.low %v456_v5, %v460_v6  ;;  %v540_v56 = vld [vmem:[%s8871_s2 + $0x338] sm:$0xff] }
  0xd1   : > { %2247 = vmatpush2.bf16.msra.mxu1 %v5560_v17  ;;  %v580_v17 = vld [vmem:[%s8871_s2 + $0x478] sm:$0xff] }
  0xd2   : > { %2248 = vmatprep.subr.bf16.mxu1 %v5553_v23  ;;  %v444_v23 = vld [vmem:[%s8871_s2 + $0x38] sm:$0xff]  ;;  %v5490_v29 = vcombine.low %v576_v15, %v580_v17 }
  0xd3   : > { %2208 = vmatpush2.bf16.msra.mxu0 %v5424_v26  ;;  %v5491_v26 = vcombine.high %v576_v15, %v580_v17  ;;  %v5355_v30 = vcombine.high %v440_v21, %v444_v23  ;;  %v664_v57 = vld [vmem:[%s8871_s2 + $0x718] sm:$0xff] }
  0xd4   : > { %2209 = vmatprep.subr.bf16.mxu0 %v5417_v28  ;;  %v5362_v28 = vcombine.low %v448_v13, %v452_v14  ;;  %v520_v7 = vld [vmem:[%s8871_s2 + $0x298] sm:$0xff] }
  0xd5   : > { %2249 = vmatpush2.bf16.msra.mxu1 %v5552_v27  ;;  %v572_v27 = vld [vmem:[%s8871_s2 + $0x438] sm:$0xff] }
  0xd6   : > { %2250 = vmatprep.subr.bf16.mxu1 %v5545_v32  ;;  %v564_v32 = vld [vmem:[%s8871_s2 + $0x3f8] sm:$0xff]  ;;  %v5482_v37 = vcombine.low %v568_v24, %v572_v27 }
  0xd7   : > { %2210 = vmatpush2.bf16.msra.mxu0 %v5416_v34  ;;  %v5483_v34 = vcombine.high %v568_v24, %v572_v27  ;;  %v5475_v38 = vcombine.high %v560_v31, %v564_v32  ;;  %v648_v9 = vld [vmem:[%s8871_s2 + $0x698] sm:$0xff] }
  0xd8   : > { %2261 = vmatprep.subr.bf16.mxu0 %v5411_v36  ;;  %v5354_v36 = vcombine.low %v440_v21, %v444_v23  ;;  %v512_v15 = vld [vmem:[%s8871_s2 + $0x258] sm:$0xff]  ;;  %v695_v21 = vlaneseq }
  0xd9   : > { %2251 = vmatpush2.bf16.msra.mxu1 %v5544_v35  ;;  %v692_v35 = vld [vmem:[%s8871_s2 + $0x7f8] sm:$0xff] }
  0xda   : > { %2302 = vmatprep.subr.bf16.mxu1 %v5539_v40  ;;  %2212 = vmatmul.mubr.bf16.vlgmr.msra.gmra.mxu0 %v6980_v22  ;;  %v556_v40 = vld [vmem:[%s8871_s2 + $0x3b8] sm:$0xff] }
  0xdb   : > { %2262 = vmatpush1.bf16.msra.mxu0 %v5410_v42  ;;  %2293 = vmatprep.mubr.bf16.mxu0 %v6848_v0  ;;  %v464_v0 = vld [vmem:[%s8871_s2 + $0xd8] sm:$0xff]  ;;  %v5603_v42 = vcombine.high %v688_v33, %v692_v35  ;;  %v5467_v46 = vcombine.high %v552_v39, %v556_v40 }
  0xdc   : > { %2253 = vmatmul.mubr.bf16.vlgmr.msra.gmra.mxu1 %v6988_v25  ;;  %2263 = vmatprep.subr.bf16.mxu0 %v5403_v44  ;;  %v5379_v4 = vcombine.high %v464_v0, %v468_v62  ;;  %v5378_v10 = vcombine.low %v464_v0, %v468_v62  ;;  %v5474_v44 = vcombine.low %v560_v31, %v564_v32  ;;  %v528_v62 = vld [vmem:[%s8871_s2 + $0x2d8] sm:$0xff]  ;;  %v7554_v32 = vshrl.u32 %v695_v21, 7  ;;  %v6064_v21 = vld [vmem:[%s8873_s4 + $0x4] ss:$16 sps:$4 sm:$0xff]  }
  0xdd   : > { %2303 = vmatpush1.bf16.msra.mxu1 %v5538_v43  ;;  %2334 = vmatprep.mubr.bf16.mxu1 %v6850_v1  ;;  %v592_v1 = vld [vmem:[%s8871_s2 + $0x4d8] sm:$0xff]  ;;  %v5451_v0 = vcombine.high %v536_v55, %v540_v56 }
  0xde   : > { %2304 = vmatprep.subr.bf16.mxu1 %v5531_v45  ;;  %v5507_v8 = vcombine.high %v592_v1, %v596_v63  ;;  %v5506_v11 = vcombine.low %v592_v1, %v596_v63  ;;  %v684_v43 = vld [vmem:[%s8871_s2 + $0x7b8] sm:$0xff]  ;;  %v5602_v45 = vcombine.low %v688_v33, %v692_v35 }
  0xdf   : > { %2264 = vmatpush1.bf16.msra.mxu0 %v5402_v50  ;;  %v5595_v50 = vcombine.high %v680_v41, %v684_v43  ;;  %v532_v1 = vld [vmem:[%s8871_s2 + $0x2f8] sm:$0xff] }
  0xe0   : > { %2265 = vmatprep.subr.bf16.mxu0 %v5395_v52  ;;  %v5466_v52 = vcombine.low %v552_v39, %v556_v40  ;;  %v656_v63 = vld [vmem:[%s8871_s2 + $0x6d8] sm:$0xff]  ;;  %v5443_v6 = vcombine.high %v528_v62, %v532_v1  ;;  %v6022_v40 = vld [vmem:[%s8873_s4 + $0xe4] ss:$16 sps:$4 sm:$0xff]  }
  0xe1   : > { %2305 = vmatpush1.bf16.msra.mxu1 %v5530_v51  ;;  %v676_v51 = vld [vmem:[%s8871_s2 + $0x778] sm:$0xff] }
  0xe2   : > { %2306 = vmatprep.subr.bf16.mxu1 %v5523_v53  ;;  %v5594_v53 = vcombine.low %v680_v41, %v684_v43  ;;  %v640_v17 = vld [vmem:[%s8871_s2 + $0x658] sm:$0xff]  ;;  %v6025_v41 = vld [vmem:[%s8873_s4 + $0x2e4] ss:$16 sps:$4 sm:$0xff]   ;;  %v6020_v43 = vld [vmem:[%s8873_s4 + $0xe0] ss:$16 sps:$4 sm:$0xff]  }
  0xe3   : > { %2266 = vmatpush1.bf16.msra.mxu0 %v5394_v58  ;;  %v5587_v58 = vcombine.high %v672_v49, %v676_v51  ;;  %v508_v27 = vld [vmem:[%s8871_s2 + $0x238] sm:$0xff] }
  0xe4   : > { %2267 = vmatprep.subr.bf16.mxu0 %v5387_v60  ;;  %v5458_v60 = vcombine.low %v544_v47, %v548_v48  ;;  %v6028_v47 = vld [vmem:[%s8873_s4 + $0xc4] ss:$16 sps:$4 sm:$0xff]  }
  0xe5   : > { %2307 = vmatpush1.bf16.msra.mxu1 %v5522_v59  ;;  %v668_v59 = vld [vmem:[%s8871_s2 + $0x738] sm:$0xff] }
  0xe6   : > { %2308 = vmatprep.subr.bf16.mxu1 %v5515_v61  ;;  %v5586_v61 = vcombine.low %v672_v49, %v676_v51  ;;  %v5578_v5 = vcombine.low %v664_v57, %v668_v59 }
  0xe7   : > { %2268 = vmatpush1.bf16.msra.mxu0 %v5386_v2  ;;  %v5579_v2 = vcombine.high %v664_v57, %v668_v59 }
  0xe8   : > { %2269 = vmatprep.subr.bf16.mxu0 %v5379_v4  ;;  %v5450_v4 = vcombine.low %v536_v55, %v540_v56  ;;  %v6026_v56 = vld [vmem:[%s8873_s4 + $0xc0] ss:$16 sps:$4 sm:$0xff]  }
  0xe9   : > { %2309 = vmatpush1.bf16.msra.mxu1 %v5514_v3  ;;  %v660_v3 = vld [vmem:[%s8871_s2 + $0x6f8] sm:$0xff] }
  0xea   : > { %2310 = vmatprep.subr.bf16.mxu1 %v5507_v8  ;;  %v524_v8 = vld [vmem:[%s8871_s2 + $0x2b8] sm:$0xff]  ;;  %v5570_v13 = vcombine.low %v656_v63, %v660_v3 }
  0xeb   : > { %2270 = vmatpush1.bf16.msra.mxu0 %v5378_v10  ;;  %v5571_v10 = vcombine.high %v656_v63, %v660_v3  ;;  %v5435_v14 = vcombine.high %v520_v7, %v524_v8  ;;  %v6032_v63 = vld [vmem:[%s8873_s4 + $0xa0] ss:$16 sps:$4 sm:$0xff]  }
  0xec   : > { %2271 = vmatprep.subr.bf16.mxu0 %v5371_v12  ;;  %v5442_v12 = vcombine.low %v528_v62, %v532_v1  ;;  %v6035_v3 = vld [vmem:[%s8873_s4 + $0x2a0] ss:$16 sps:$4 sm:$0xff]  }
  0xed   : > { %2311 = vmatpush1.bf16.msra.mxu1 %v5506_v11  ;;  %v652_v11 = vld [vmem:[%s8871_s2 + $0x6b8] sm:$0xff] }
  0xee   : > { %2312 = vmatprep.subr.bf16.mxu1 %v5499_v16  ;;  %v516_v16 = vld [vmem:[%s8871_s2 + $0x278] sm:$0xff]  ;;  %v5562_v23 = vcombine.low %v648_v9, %v652_v11 }
  0xef   : > { %2272 = vmatpush1.bf16.msra.mxu0 %v5370_v18  ;;  %v5563_v18 = vcombine.high %v648_v9, %v652_v11  ;;  %v5427_v24 = vcombine.high %v512_v15, %v516_v16  ;;  %v5426_v31 = vcombine.low %v512_v15, %v516_v16  ;;  %v6046_v9 = vld [vmem:[%s8873_s4 + $0x64] ss:$16 sps:$4 sm:$0xff]   ;;  %v6044_v11 = vld [vmem:[%s8873_s4 + $0x60] ss:$16 sps:$4 sm:$0xff]  }
  0xf0   : > { %2273 = vmatprep.subr.bf16.mxu0 %v5363_v20  ;;  %v5434_v20 = vcombine.low %v520_v7, %v524_v8  ;;  %v6038_v7 = vld [vmem:[%s8873_s4 + $0x80] ss:$16 sps:$4 sm:$0xff]  }
  0xf1   : > { %2313 = vmatpush1.bf16.msra.mxu1 %v5498_v19  ;;  %v644_v19 = vld [vmem:[%s8871_s2 + $0x678] sm:$0xff]  ;;  %v6041_v8 = vld [vmem:[%s8873_s4 + $0x280] ss:$16 sps:$4 sm:$0xff]  }
  0xf2   : > { %2314 = vmatprep.subr.bf16.mxu1 %v5491_v26  ;;  %v504_v26 = vld [vmem:[%s8871_s2 + $0x218] sm:$0xff]  ;;  %v5554_v33 = vcombine.low %v640_v17, %v644_v19  ;;  %v6050_v15 = vld [vmem:[%s8873_s4 + $0x40] ss:$16 sps:$4 sm:$0xff]  }
  0xf3   : > { %2274 = vmatpush1.bf16.msra.mxu0 %v5362_v28  ;;  %v632_v28 = vld [vmem:[%s8871_s2 + $0x618] sm:$0xff]  ;;  %v6053_v16 = vld [vmem:[%s8873_s4 + $0x240] ss:$16 sps:$4 sm:$0xff]  }
  0xf4   : > { %2275 = vmatprep.subr.bf16.mxu0 %v5355_v30  ;;  %v636_v30 = vld [vmem:[%s8871_s2 + $0x638] sm:$0xff] }
  0xf5   : > { %2315 = vmatpush1.bf16.msra.mxu1 %v5490_v29  ;;  %v5555_v29 = vcombine.high %v640_v17, %v644_v19  ;;  %v5547_v35 = vcombine.high %v632_v28, %v636_v30  ;;  %v5546_v39 = vcombine.low %v632_v28, %v636_v30  ;;  %v6058_v17 = vld [vmem:[%s8873_s4 + $0x24] ss:$16 sps:$4 sm:$0xff]   ;;  %v6056_v19 = vld [vmem:[%s8873_s4 + $0x20] ss:$16 sps:$4 sm:$0xff]  }
  0xf6   : > { %2316 = vmatprep.subr.bf16.mxu1 %v5483_v34  ;;  %v5419_v34 = vcombine.high %v504_v26, %v508_v27  ;;  %v6073_v28 = vld [vmem:[%s8873_s4 + $0x3e4] ss:$16 sps:$4 sm:$0xff]   ;;  %v6071_v30 = vld [vmem:[%s8873_s4 + $0x3e0] ss:$16 sps:$4 sm:$0xff]  }
  0xf7   : > { %2276 = vmatpush1.bf16.msra.mxu0 %v5354_v36  ;;  %v7559_v36 = vld [vmem:[%s8872_s3] sm:$0xff] }
  0xf8   : > { %2277 = vmatprep.subr.bf16.mxu0 %v5475_v38  ;;  %v7562_v38 = vsub.s32 0, %v7554_v32 }
  0xf9   : > { %2317 = vmatpush1.bf16.msra.mxu1 %v5482_v37  ;;  %v5418_v37 = vcombine.low %v504_v26, %v508_v27  ;;  %v6065_v26 = vld [vmem:[%s8873_s4 + $0x200] ss:$16 sps:$4 sm:$0xff]   ;;  %v6070_v27 = vld [vmem:[%s8873_s4 + $0x1e4] ss:$16 sps:$4 sm:$0xff]  }
  0xfa   : > { %2318 = vmatprep.subr.bf16.mxu1 %v5603_v42  ;;  %v7571_v42 = vld [vmem:[%s6732_s21] sm:$0xff]  ;;  %v698_v48 = vrot.slane %v7559_v36, %v7562_v38 }
  0xfb   : > { %2278 = vmatpush2.bf16.msra.mxu0 %v5474_v44  ;;  %v7577_v44 = vsub.s32 1, %v7554_v32  ;;  %v7597_v51 = vcombine.high %v7571_v42, %v7571_v42 }
  0xfc   : > { %2279 = vmatprep.subr.bf16.mxu0 %v5467_v46  ;;  %v6023_v46 = vld [vmem:[%s8873_s4 + $0x2e0] ss:$16 sps:$4 sm:$0xff]  }
  0xfd   : > { %2319 = vmatpush2.bf16.msra.mxu1 %v5602_v45  ;;  %v7580_v45 = vld [vmem:[%s6732_s21 + $0x8] sm:$0xff]  ;;  %v702_v49 = vrot.slane %v7559_v36, %v7577_v44 }
  0xfe   : > { %2320 = vmatprep.subr.bf16.mxu1 %v5595_v50  ;;  %v6031_v50 = vld [vmem:[%s8873_s4 + $0x2c4] ss:$16 sps:$4 sm:$0xff]  }
  0xff   : > { %2280 = vmatpush2.bf16.msra.mxu0 %v5466_v52 }
 0x100   : > { %2281 = vmatprep.subr.bf16.mxu0 %v5459_v54 }
 0x101   : > { %2321 = vmatpush2.bf16.msra.mxu1 %v5594_v53  ;;  %v7602_v53 = vcombine.high %v7580_v45, %v7580_v45 }
 0x102   : > { %2322 = vmatprep.subr.bf16.mxu1 %v5587_v58  ;;  %v6034_v58 = vld [vmem:[%s8873_s4 + $0xa4] ss:$16 sps:$4 sm:$0xff]  }
 0x103   : > { %2282 = vmatpush2.bf16.msra.mxu0 %v5458_v60 }
 0x104   : > { %2283 = vmatprep.subr.bf16.mxu0 %v5451_v0 }
 0x105   : > { %2323 = vmatpush2.bf16.msra.mxu1 %v5586_v61  ;;  %v6037_v61 = vld [vmem:[%s8873_s4 + $0x2a4] ss:$16 sps:$4 sm:$0xff]  }
 0x106   : > { %2324 = vmatprep.subr.bf16.mxu1 %v5579_v2 }
 0x107   : > { %2284 = vmatpush2.bf16.msra.mxu0 %v5450_v4  ;;  %v6040_v4 = vld [vmem:[%s8873_s4 + $0x84] ss:$16 sps:$4 sm:$0xff]  }
 0x108   : > { %2285 = vmatprep.subr.bf16.mxu0 %v5443_v6  ;;  %v6043_v6 = vld [vmem:[%s8873_s4 + $0x284] ss:$16 sps:$4 sm:$0xff]  }
 0x109   : > { %2325 = vmatpush2.bf16.msra.mxu1 %v5578_v5 }
 0x10a   : > { %2326 = vmatprep.subr.bf16.mxu1 %v5571_v10  ;;  %v6049_v10 = vld [vmem:[%s8873_s4 + $0x264] ss:$16 sps:$4 sm:$0xff]  }
 0x10b   : > { %2286 = vmatpush2.bf16.msra.mxu0 %v5442_v12  ;;  %v6047_v12 = vld [vmem:[%s8873_s4 + $0x260] ss:$16 sps:$4 sm:$0xff]  }
 0x10c   : > { %2287 = vmatprep.subr.bf16.mxu0 %v5435_v14  ;;  %v6055_v14 = vld [vmem:[%s8873_s4 + $0x244] ss:$16 sps:$4 sm:$0xff]  }
 0x10d   : > { %2327 = vmatpush2.bf16.msra.mxu1 %v5570_v13  ;;  %v6052_v13 = vld [vmem:[%s8873_s4 + $0x44] ss:$16 sps:$4 sm:$0xff]  }
 0x10e   : > { %2328 = vmatprep.subr.bf16.mxu1 %v5563_v18  ;;  %v6061_v18 = vld [vmem:[%s8873_s4 + $0x224] ss:$16 sps:$4 sm:$0xff]  }
 0x10f   : > { %2288 = vmatpush2.bf16.msra.mxu0 %v5434_v20  ;;  %v6059_v20 = vld [vmem:[%s8873_s4 + $0x220] ss:$16 sps:$4 sm:$0xff]  }
 0x110   : > { %2289 = vmatprep.subr.bf16.mxu0 %v5427_v24  ;;  %v6062_v24 = vld [vmem:[%s8873_s4] ss:$16 sps:$4 sm:$0xff]  }
 0x111   : > { %2329 = vmatpush2.bf16.msra.mxu1 %v5562_v23  ;;  %v6067_v23 = vld [vmem:[%s8873_s4 + $0x204] ss:$16 sps:$4 sm:$0xff]  }
 0x112   : > { %2330 = vmatprep.subr.bf16.mxu1 %v5555_v29  ;;  %v6068_v29 = vld [vmem:[%s8873_s4 + $0x1e0] ss:$16 sps:$4 sm:$0xff]  }
 0x113   : > { %2290 = vmatpush2.bf16.msra.mxu0 %v5426_v31  ;;  %v6076_v31 = vld [vmem:[%s8873_s4 + $0x1c4] ss:$16 sps:$4 sm:$0xff]  }
 0x114   : > { %2291 = vmatprep.subr.bf16.mxu0 %v5419_v34  ;;  %v6074_v34 = vld [vmem:[%s8873_s4 + $0x1c0] ss:$16 sps:$4 sm:$0xff]  }
 0x115   : > { %2331 = vmatpush2.bf16.msra.mxu1 %v5554_v33  ;;  %v6079_v33 = vld [vmem:[%s8873_s4 + $0x3c4] ss:$16 sps:$4 sm:$0xff]  }
 0x116   : > { %2332 = vmatprep.subr.bf16.mxu1 %v5547_v35  ;;  %v6077_v35 = vld [vmem:[%s8873_s4 + $0x3c0] ss:$16 sps:$4 sm:$0xff]  }
 0x117   : > { %2292 = vmatpush2.bf16.msra.mxu0 %v5418_v37  ;;  %v6082_v37 = vld [vmem:[%s8873_s4 + $0x1a4] ss:$16 sps:$4 sm:$0xff]  }
 0x118   : > { %3151 = vmatprep.subr.bf16.mxu0 %v6022_v40  ;;  %v6080_v40 = vld [vmem:[%s8873_s4 + $0x1a0] ss:$16 sps:$4 sm:$0xff]  }
 0x119   : > { %2333 = vmatpush2.bf16.msra.mxu1 %v5546_v39  ;;  %v6085_v39 = vld [vmem:[%s8873_s4 + $0x3a4] ss:$16 sps:$4 sm:$0xff]  }
 0x11a   : > { %3192 = vmatprep.subr.bf16.mxu1 %v6025_v41  ;;  %v2049_v52 = vpop.f32.mrf.mxu0  ;;  %2294 = vmatmul.mubr.bf16.vlgmr.msra.gmra.mxu0 %v6980_v22  ;;  %v6029_v22 = vld [vmem:[%s8873_s4 + $0x2c0] ss:$16 sps:$4 sm:$0xff]  }
 0x11b   : > { %v2050_v54 = vadd.f32 %v2049_v52, %v698_v48  ;;  %3152 = vmatpush1.bf16.msra.mxu0 %v6020_v43  ;;  %3183 = vmatprep.mubr.bf16.mxu0 %v7597_v51  ;;  %v6083_v41 = vld [vmem:[%s8873_s4 + $0x3a0] ss:$16 sps:$4 sm:$0xff]   ;;  %v6088_v43 = vld [vmem:[%s8873_s4 + $0x184] ss:$16 sps:$4 sm:$0xff]  }
 0x11c   : > { %v2090_v55 = vpop.f32.mrf.mxu1  ;;  %2335 = vmatmul.mubr.bf16.vlgmr.msra.gmra.mxu1 %v6988_v25  ;;  %v2051_v57 = vpop.f32.mrf.mxu0  ;;  %3153 = vmatprep.subr.bf16.mxu0 %v6028_v47  ;;  %v6086_v47 = vld [vmem:[%s8873_s4 + $0x180] ss:$16 sps:$4 sm:$0xff]  }
 0x11d   : > { %3193 = vmatpush1.bf16.msra.mxu1 %v6023_v46  ;;  %v7614_v59 = vadd.f32 %v2090_v55, %v2050_v54  ;;  %v2052_v60 = vadd.f32 %v2051_v57, %v702_v49  ;;  %3224 = vmatprep.mubr.bf16.mxu1 %v7602_v53  ;;  %v6091_v46 = vld [vmem:[%s8873_s4 + $0x384] ss:$16 sps:$4 sm:$0xff]   ;;  %v6089_v48 = vld [vmem:[%s8873_s4 + $0x380] ss:$16 sps:$4 sm:$0xff]  }
 0x11e   : > { %v2092_v25 = vpop.f32.mrf.mxu1  ;;  %3194 = vmatprep.subr.bf16.mxu1 %v6031_v50  ;;  %v2053_v0 = vpop.f32.mrf.mxu0  ;;  %v6094_v49 = vld [vmem:[%s8873_s4 + $0x164] ss:$16 sps:$4 sm:$0xff]   ;;  %v6092_v52 = vld [vmem:[%s8873_s4 + $0x160] ss:$16 sps:$4 sm:$0xff]  }
 0x11f   : > { %v7621_v62 = vadd.f32 %v2092_v25, %v2052_v60  ;;  %3154 = vmatpush1.bf16.msra.mxu0 %v6026_v56  ;;  %v6097_v50 = vld [vmem:[%s8873_s4 + $0x364] ss:$16 sps:$4 sm:$0xff]   ;;  %v6095_v54 = vld [vmem:[%s8873_s4 + $0x360] ss:$16 sps:$4 sm:$0xff]  }
 0x120   : > { %v2094_v1 = vpop.f32.mrf.mxu1  ;;  %v2054_v2 = vpop.f32.mrf.mxu0  ;;  %3155 = vmatprep.subr.bf16.mxu0 %v6034_v58  ;;  %v6100_v55 = vld [vmem:[%s8873_s4 + $0x144] ss:$16 sps:$4 sm:$0xff]   ;;  %v6098_v57 = vld [vmem:[%s8873_s4 + $0x140] ss:$16 sps:$4 sm:$0xff]  }
 0x121   : > { %3195 = vmatpush1.bf16.msra.mxu1 %v6029_v22  ;;  %v6103_v56 = vld [vmem:[%s8873_s4 + $0x344] ss:$16 sps:$4 sm:$0xff]   ;;  %v6101_v22 = vld [vmem:[%s8873_s4 + $0x340] ss:$16 sps:$4 sm:$0xff]   ;;  %v7783_v2 = vsub.s32 2, %v7554_v32 }
 0x122   : > { %v2095_v5 = vpop.f32.mrf.mxu1  ;;  %3196 = vmatprep.subr.bf16.mxu1 %v6037_v61  ;;  %v6106_v58 = vld [vmem:[%s8873_s4 + $0x124] ss:$16 sps:$4 sm:$0xff]   ;;  %v6104_v25 = vld [vmem:[%s8873_s4 + $0x120] ss:$16 sps:$4 sm:$0xff]  }
 0x123   : > { %3156 = vmatpush1.bf16.msra.mxu0 %v6032_v63  ;;  %v6109_v60 = vld [vmem:[%s8873_s4 + $0x324] ss:$16 sps:$4 sm:$0xff]   ;;  %v6107_v61 = vld [vmem:[%s8873_s4 + $0x320] ss:$16 sps:$4 sm:$0xff]   ;;  %v6125_v5 = vld [vmem:[%s8873_s4 + $0x2ec] ss:$16 sps:$4 sm:$0xff]  }
 0x124   : > { %3157 = vmatprep.subr.bf16.mxu0 %v6040_v4  ;;  %v6112_v0 = vld [vmem:[%s8873_s4 + $0x104] ss:$16 sps:$4 sm:$0xff]   ;;  %v6110_v63 = vld [vmem:[%s8873_s4 + $0x100] ss:$16 sps:$4 sm:$0xff]   ;;  %v6122_v4 = vld [vmem:[%s8873_s4 + $0xec] ss:$16 sps:$4 sm:$0xff]  }
 0x125   : > { %3197 = vmatpush1.bf16.msra.mxu1 %v6035_v3  ;;  %v6115_v1 = vld [vmem:[%s8873_s4 + $0x304] ss:$16 sps:$4 sm:$0xff]   ;;  %v6113_v3 = vld [vmem:[%s8873_s4 + $0x300] ss:$16 sps:$4 sm:$0xff]  }
 0x126   : > { %3198 = vmatprep.subr.bf16.mxu1 %v6043_v6  ;;  %v7795_v6 = vsub.s32 3, %v7554_v32 }
 0x127   : > { %3158 = vmatpush1.bf16.msra.mxu0 %v6038_v7  ;;  %v7799_v7 = vcombine.low %v7571_v42, %v7571_v42  ;;  %v6128_v42 = vld [vmem:[%s8873_s4 + $0xcc] ss:$16 sps:$4 sm:$0xff]  }
 0x128   : > { %3159 = vmatprep.subr.bf16.mxu0 %v6046_v9  ;;  %v706_v9 = vrot.slane %v7559_v36, %v7783_v2 }
 0x129   : > { %3199 = vmatpush1.bf16.msra.mxu1 %v6041_v8  ;;  %v7803_v8 = vcombine.low %v7580_v45, %v7580_v45  ;;  %v710_v45 = vrot.slane %v7559_v36, %v7795_v6 }
 0x12a   : > { %3200 = vmatprep.subr.bf16.mxu1 %v6049_v10  ;;  %v6120_v10 = vld [vmem:[%s8873_s4 + $0xe8] ss:$16 sps:$4 sm:$0xff]  }
 0x12b   : > { %3160 = vmatpush1.bf16.msra.mxu0 %v6044_v11  ;;  %v6123_v11 = vld [vmem:[%s8873_s4 + $0x2e8] ss:$16 sps:$4 sm:$0xff]  }
 0x12c   : > { %3161 = vmatprep.subr.bf16.mxu0 %v6052_v13 }
 0x12d   : > { %3201 = vmatpush1.bf16.msra.mxu1 %v6047_v12  ;;  %v6131_v12 = vld [vmem:[%s8873_s4 + $0x2cc] ss:$16 sps:$4 sm:$0xff]  }
 0x12e   : > { %3202 = vmatprep.subr.bf16.mxu1 %v6055_v14 }
 0x12f   : > { %3162 = vmatpush1.bf16.msra.mxu0 %v6050_v15 }
 0x130   : > { %3163 = vmatprep.subr.bf16.mxu0 %v6058_v17 }
 0x131   : > { %3203 = vmatpush1.bf16.msra.mxu1 %v6053_v16  ;;  %v6126_v16 = vld [vmem:[%s8873_s4 + $0xc8] ss:$16 sps:$4 sm:$0xff]  }
 0x132   : > { %3204 = vmatprep.subr.bf16.mxu1 %v6061_v18  ;;  %v6129_v18 = vld [vmem:[%s8873_s4 + $0x2c8] ss:$16 sps:$4 sm:$0xff]  }
 0x133   : > { %3164 = vmatpush1.bf16.msra.mxu0 %v6056_v19  ;;  %v6134_v19 = vld [vmem:[%s8873_s4 + $0xac] ss:$16 sps:$4 sm:$0xff]  }
 0x134   : > { %3165 = vmatprep.subr.bf16.mxu0 %v6064_v21 }
 0x135   : > { %3205 = vmatpush1.bf16.msra.mxu1 %v6059_v20 }
 0x136   : > { %3206 = vmatprep.subr.bf16.mxu1 %v6067_v23 }
 0x137   : > { %3166 = vmatpush1.bf16.msra.mxu0 %v6062_v24  ;;  %v6137_v24 = vld [vmem:[%s8873_s4 + $0x2ac] ss:$16 sps:$4 sm:$0xff]  }
 0x138   : > { %3167 = vmatprep.subr.bf16.mxu0 %v6070_v27 }
 0x139   : > { %3207 = vmatpush1.bf16.msra.mxu1 %v6065_v26 }
 0x13a   : > { %3208 = vmatprep.subr.bf16.mxu1 %v6073_v28 }
 0x13b   : > { %3168 = vmatpush2.bf16.msra.mxu0 %v6068_v29  ;;  %v6132_v29 = vld [vmem:[%s8873_s4 + $0xa8] ss:$16 sps:$4 sm:$0xff]  }
 0x13c   : > { %3169 = vmatprep.subr.bf16.mxu0 %v6076_v31  ;;  %v6135_v31 = vld [vmem:[%s8873_s4 + $0x2a8] ss:$16 sps:$4 sm:$0xff]  }
 0x13d   : > { %3209 = vmatpush2.bf16.msra.mxu1 %v6071_v30 }
 0x13e   : > { %3210 = vmatprep.subr.bf16.mxu1 %v6079_v33  ;;  %v6143_v33 = vld [vmem:[%s8873_s4 + $0x28c] ss:$16 sps:$4 sm:$0xff]  }
 0x13f   : > { %3170 = vmatpush2.bf16.msra.mxu0 %v6074_v34  ;;  %v6138_v34 = vld [vmem:[%s8873_s4 + $0x88] ss:$16 sps:$4 sm:$0xff]  }
 0x140   : > { %3171 = vmatprep.subr.bf16.mxu0 %v6082_v37  ;;  %v6146_v37 = vld [vmem:[%s8873_s4 + $0x6c] ss:$16 sps:$4 sm:$0xff]  }
 0x141   : > { %3211 = vmatpush2.bf16.msra.mxu1 %v6077_v35  ;;  %v6141_v35 = vld [vmem:[%s8873_s4 + $0x288] ss:$16 sps:$4 sm:$0xff]  }
 0x142   : > { %3212 = vmatprep.subr.bf16.mxu1 %v6085_v39  ;;  %v6149_v39 = vld [vmem:[%s8873_s4 + $0x26c] ss:$16 sps:$4 sm:$0xff]  }
 0x143   : > { %3172 = vmatpush2.bf16.msra.mxu0 %v6080_v40  ;;  %v6144_v40 = vld [vmem:[%s8873_s4 + $0x68] ss:$16 sps:$4 sm:$0xff]  }
 0x144   : > { %3173 = vmatprep.subr.bf16.mxu0 %v6088_v43  ;;  %v6152_v43 = vld [vmem:[%s8873_s4 + $0x4c] ss:$16 sps:$4 sm:$0xff]  }
 0x145   : > { %3213 = vmatpush2.bf16.msra.mxu1 %v6083_v41  ;;  %v6147_v41 = vld [vmem:[%s8873_s4 + $0x268] ss:$16 sps:$4 sm:$0xff]  }
 0x146   : > { %3214 = vmatprep.subr.bf16.mxu1 %v6091_v46  ;;  %v6155_v46 = vld [vmem:[%s8873_s4 + $0x24c] ss:$16 sps:$4 sm:$0xff]  }
 0x147   : > { %3174 = vmatpush2.bf16.msra.mxu0 %v6086_v47  ;;  %v6150_v47 = vld [vmem:[%s8873_s4 + $0x48] ss:$16 sps:$4 sm:$0xff]  }
 0x148   : > { %3175 = vmatprep.subr.bf16.mxu0 %v6094_v49  ;;  %v6158_v49 = vld [vmem:[%s8873_s4 + $0x2c] ss:$16 sps:$4 sm:$0xff]  }
 0x149   : > { %3215 = vmatpush2.bf16.msra.mxu1 %v6089_v48  ;;  %v6153_v48 = vld [vmem:[%s8873_s4 + $0x248] ss:$16 sps:$4 sm:$0xff]  }
 0x14a   : > { %3216 = vmatprep.subr.bf16.mxu1 %v6097_v50  ;;  %v6161_v50 = vld [vmem:[%s8873_s4 + $0x22c] ss:$16 sps:$4 sm:$0xff]  }
 0x14b   : > { %3176 = vmatpush2.bf16.msra.mxu0 %v6092_v52  ;;  %v6156_v52 = vld [vmem:[%s8873_s4 + $0x28] ss:$16 sps:$4 sm:$0xff]  }
 0x14c   : > { %3177 = vmatprep.subr.bf16.mxu0 %v6100_v55  ;;  %v6164_v55 = vld [vmem:[%s8873_s4 + $0xc] ss:$16 sps:$4 sm:$0xff]  }
 0x14d   : > { %3217 = vmatpush2.bf16.msra.mxu1 %v6095_v54  ;;  %v6159_v54 = vld [vmem:[%s8873_s4 + $0x228] ss:$16 sps:$4 sm:$0xff]  }
 0x14e   : > { %3218 = vmatprep.subr.bf16.mxu1 %v6103_v56  ;;  %v6167_v56 = vld [vmem:[%s8873_s4 + $0x20c] ss:$16 sps:$4 sm:$0xff]  }
 0x14f   : > { %3178 = vmatpush2.bf16.msra.mxu0 %v6098_v57  ;;  %v6162_v57 = vld [vmem:[%s8873_s4 + $0x8] ss:$16 sps:$4 sm:$0xff]  }
 0x150   : > { %3179 = vmatprep.subr.bf16.mxu0 %v6106_v58  ;;  %v6170_v58 = vld [vmem:[%s8873_s4 + $0x1ec] ss:$16 sps:$4 sm:$0xff]  }
 0x151   : > { %3219 = vmatpush2.bf16.msra.mxu1 %v6101_v22  ;;  %v6165_v22 = vld [vmem:[%s8873_s4 + $0x208] ss:$16 sps:$4 sm:$0xff]  }
 0x152   : > { %3220 = vmatprep.subr.bf16.mxu1 %v6109_v60  ;;  %v6173_v60 = vld [vmem:[%s8873_s4 + $0x3ec] ss:$16 sps:$4 sm:$0xff]  }
 0x153   : > { %3180 = vmatpush2.bf16.msra.mxu0 %v6104_v25  ;;  %v6168_v25 = vld [vmem:[%s8873_s4 + $0x1e8] ss:$16 sps:$4 sm:$0xff]  }
 0x154   : > { %3181 = vmatprep.subr.bf16.mxu0 %v6112_v0  ;;  %v6176_v0 = vld [vmem:[%s8873_s4 + $0x1cc] ss:$16 sps:$4 sm:$0xff]  }
 0x155   : > { %3221 = vmatpush2.bf16.msra.mxu1 %v6107_v61  ;;  %v6171_v61 = vld [vmem:[%s8873_s4 + $0x3e8] ss:$16 sps:$4 sm:$0xff]  }
 0x156   : > { %3222 = vmatprep.subr.bf16.mxu1 %v6115_v1  ;;  %v6179_v1 = vld [vmem:[%s8873_s4 + $0x3cc] ss:$16 sps:$4 sm:$0xff]  }
 0x157   : > { %3182 = vmatpush2.bf16.msra.mxu0 %v6110_v63  ;;  %v6174_v63 = vld [vmem:[%s8873_s4 + $0x1c8] ss:$16 sps:$4 sm:$0xff]  }
 0x158   : > { %3233 = vmatprep.subr.bf16.mxu0 %v6122_v4  ;;  %v6182_v4 = vld [vmem:[%s8873_s4 + $0x1ac] ss:$16 sps:$4 sm:$0xff]  }
 0x159   : > { %3223 = vmatpush2.bf16.msra.mxu1 %v6113_v3  ;;  %v6177_v3 = vld [vmem:[%s8873_s4 + $0x3c8] ss:$16 sps:$4 sm:$0xff]  }
 0x15a   : > { %3274 = vmatprep.subr.bf16.mxu1 %v6125_v5  ;;  %v2131_v13 = vpop.f32.mrf.mxu0  ;;  %3184 = vmatmul.mubr.bf16.vlgmr.msra.gmra.mxu0 %v7799_v7  ;;  %v6185_v5 = vld [vmem:[%s8873_s4 + $0x3ac] ss:$16 sps:$4 sm:$0xff]  }
 0x15b   : > { %v2132_v14 = vadd.f32 %v2131_v13, %v706_v9  ;;  %3234 = vmatpush1.bf16.msra.mxu0 %v6120_v10  ;;  %3265 = vmatprep.mubr.bf16.mxu0 %v7597_v51  ;;  %v6140_v51 = vld [vmem:[%s8873_s4 + $0x8c] ss:$16 sps:$4 sm:$0xff]   ;;  %v6180_v9 = vld [vmem:[%s8873_s4 + $0x1a8] ss:$16 sps:$4 sm:$0xff]  }
 0x15c   : > { %v2172_v15 = vpop.f32.mrf.mxu1  ;;  %3225 = vmatmul.mubr.bf16.vlgmr.msra.gmra.mxu1 %v7803_v8  ;;  %v2133_v17 = vpop.f32.mrf.mxu0  ;;  %3235 = vmatprep.subr.bf16.mxu0 %v6128_v42  ;;  %v6183_v10 = vld [vmem:[%s8873_s4 + $0x3a8] ss:$16 sps:$4 sm:$0xff]   ;;  %v6191_v42 = vld [vmem:[%s8873_s4 + $0x38c] ss:$16 sps:$4 sm:$0xff]  }
 0x15d   : > { %3275 = vmatpush1.bf16.msra.mxu1 %v6123_v11  ;;  %v7832_v20 = vadd.f32 %v2172_v15, %v2132_v14  ;;  %v2134_v21 = vadd.f32 %v2133_v17, %v710_v45  ;;  %3306 = vmatprep.mubr.bf16.mxu1 %v7602_v53  ;;  %v6188_v11 = vld [vmem:[%s8873_s4 + $0x18c] ss:$16 sps:$4 sm:$0xff]   ;;  %v6186_v45 = vld [vmem:[%s8873_s4 + $0x188] ss:$16 sps:$4 sm:$0xff]  }
 0x15e   : > { %v2174_v23 = vpop.f32.mrf.mxu1  ;;  %3276 = vmatprep.subr.bf16.mxu1 %v6131_v12  ;;  %v2135_v26 = vpop.f32.mrf.mxu0  ;;  %v6189_v12 = vld [vmem:[%s8873_s4 + $0x388] ss:$16 sps:$4 sm:$0xff]   ;;  %v6194_v13 = vld [vmem:[%s8873_s4 + $0x16c] ss:$16 sps:$4 sm:$0xff]  }
 0x15f   : > { %v7839_v27 = vadd.f32 %v2174_v23, %v2134_v21  ;;  %3236 = vmatpush1.bf16.msra.mxu0 %v6126_v16  ;;  %v6197_v14 = vld [vmem:[%s8873_s4 + $0x36c] ss:$16 sps:$4 sm:$0xff]   ;;  %v6192_v15 = vld [vmem:[%s8873_s4 + $0x168] ss:$16 sps:$4 sm:$0xff]  }
 0x160   : > { %v2176_v28 = vpop.f32.mrf.mxu1  ;;  %v2136_v30 = vpop.f32.mrf.mxu0  ;;  %3237 = vmatprep.subr.bf16.mxu0 %v6134_v19  ;;  %v6195_v16 = vld [vmem:[%s8873_s4 + $0x368] ss:$16 sps:$4 sm:$0xff]   ;;  %v6200_v17 = vld [vmem:[%s8873_s4 + $0x14c] ss:$16 sps:$4 sm:$0xff]  }
 0x161   : > { %3277 = vmatpush1.bf16.msra.mxu1 %v6129_v18  ;;  %v6203_v18 = vld [vmem:[%s8873_s4 + $0x34c] ss:$16 sps:$4 sm:$0xff]   ;;  %v6198_v19 = vld [vmem:[%s8873_s4 + $0x148] ss:$16 sps:$4 sm:$0xff]  }
 0x162   : > { %v2177_v53 = vpop.f32.mrf.mxu1  ;;  %3278 = vmatprep.subr.bf16.mxu1 %v6137_v24  ;;  %v6201_v21 = vld [vmem:[%s8873_s4 + $0x348] ss:$16 sps:$4 sm:$0xff]   ;;  %v6206_v23 = vld [vmem:[%s8873_s4 + $0x12c] ss:$16 sps:$4 sm:$0xff]  }
 0x163   : > { %3238 = vmatpush1.bf16.msra.mxu0 %v6132_v29  ;;  %v6209_v24 = vld [vmem:[%s8873_s4 + $0x32c] ss:$16 sps:$4 sm:$0xff]   ;;  %v6204_v26 = vld [vmem:[%s8873_s4 + $0x128] ss:$16 sps:$4 sm:$0xff]   ;;  %v6218_v53 = vld [vmem:[%s8875_s6 + $0xe4] ss:$16 sps:$4 sm:$0xff]  }
 0x164   : > { %3239 = vmatprep.subr.bf16.mxu0 %v6140_v51  ;;  %v6207_v28 = vld [vmem:[%s8873_s4 + $0x328] ss:$16 sps:$4 sm:$0xff]   ;;  %v6212_v29 = vld [vmem:[%s8873_s4 + $0x10c] ss:$16 sps:$4 sm:$0xff]  }
 0x165   : > { %3279 = vmatpush1.bf16.msra.mxu1 %v6135_v31  ;;  %v6215_v30 = vld [vmem:[%s8873_s4 + $0x30c] ss:$16 sps:$4 sm:$0xff]   ;;  %v6210_v31 = vld [vmem:[%s8873_s4 + $0x108] ss:$16 sps:$4 sm:$0xff]  }
 0x166   : > { %3280 = vmatprep.subr.bf16.mxu1 %v6143_v33  ;;  %v6213_v51 = vld [vmem:[%s8873_s4 + $0x308] ss:$16 sps:$4 sm:$0xff]   ;;  %v717_v33 = vsub.s32 5, %v7554_v32 }
 0x167   : > { %3240 = vmatpush1.bf16.msra.mxu0 %v6138_v34  ;;  %v6236_v34 = vld [vmem:[%s8875_s6 + $0x2e4] ss:$16 sps:$4 sm:$0xff]  }
 0x168   : > { %3241 = vmatprep.subr.bf16.mxu0 %v6146_v37  ;;  %v6221_v37 = vld [vmem:[%s8875_s6 + $0xc4] ss:$16 sps:$4 sm:$0xff]  }
 0x169   : > { %3281 = vmatpush1.bf16.msra.mxu1 %v6141_v35  ;;  %v6216_v35 = vld [vmem:[%s8875_s6 + $0xe0] ss:$16 sps:$4 sm:$0xff]  }
 0x16a   : > { %3282 = vmatprep.subr.bf16.mxu1 %v6149_v39  ;;  %v6234_v39 = vld [vmem:[%s8875_s6 + $0x2e0] ss:$16 sps:$4 sm:$0xff]  }
 0x16b   : > { %3242 = vmatpush1.bf16.msra.mxu0 %v6144_v40  ;;  %v718_v40 = vrot.slane %v7559_v36, %v717_v33  ;;  %v6263_v33 = vld [vmem:[%s8875_s6 + $0x1a4] ss:$16 sps:$4 sm:$0xff]  }
 0x16c   : > { %3243 = vmatprep.subr.bf16.mxu0 %v6152_v43 }
 0x16d   : > { %3283 = vmatpush1.bf16.msra.mxu1 %v6147_v41  ;;  %v6242_v41 = vld [vmem:[%s8875_s6 + $0x2c4] ss:$16 sps:$4 sm:$0xff]  }
 0x16e   : > { %3284 = vmatprep.subr.bf16.mxu1 %v6155_v46 }
 0x16f   : > { %3244 = vmatpush1.bf16.msra.mxu0 %v6150_v47  ;;  %v6219_v47 = vld [vmem:[%s8875_s6 + $0xc0] ss:$16 sps:$4 sm:$0xff]  }
 0x170   : > { %3245 = vmatprep.subr.bf16.mxu0 %v6158_v49  ;;  %v6224_v49 = vld [vmem:[%s8875_s6 + $0xa4] ss:$16 sps:$4 sm:$0xff]  }
 0x171   : > { %3285 = vmatpush1.bf16.msra.mxu1 %v6153_v48 }
 0x172   : > { %3286 = vmatprep.subr.bf16.mxu1 %v6161_v50 }
 0x173   : > { %3246 = vmatpush1.bf16.msra.mxu0 %v6156_v52 }
 0x174   : > { %3247 = vmatprep.subr.bf16.mxu0 %v6164_v55 }
 0x175   : > { %3287 = vmatpush1.bf16.msra.mxu1 %v6159_v54 }
 0x176   : > { %3288 = vmatprep.subr.bf16.mxu1 %v6167_v56 }
 0x177   : > { %3248 = vmatpush1.bf16.msra.mxu0 %v6162_v57  ;;  %v6222_v57 = vld [vmem:[%s8875_s6 + $0xa0] ss:$16 sps:$4 sm:$0xff]  }
 0x178   : > { %3249 = vmatprep.subr.bf16.mxu0 %v6170_v58  ;;  %v6227_v58 = vld [vmem:[%s8875_s6 + $0x84] ss:$16 sps:$4 sm:$0xff]  }
 0x179   : > { %3289 = vmatpush1.bf16.msra.mxu1 %v6165_v22 }
 0x17a   : > { %3290 = vmatprep.subr.bf16.mxu1 %v6173_v60  ;;  %v6246_v60 = vld [vmem:[%s8875_s6 + $0x2a0] ss:$16 sps:$4 sm:$0xff]  }
 0x17b   : > { %3250 = vmatpush2.bf16.msra.mxu0 %v6168_v25 }
 0x17c   : > { %3251 = vmatprep.subr.bf16.mxu0 %v6176_v0  ;;  %v6225_v0 = vld [vmem:[%s8875_s6 + $0x80] ss:$16 sps:$4 sm:$0xff]  }
 0x17d   : > { %3291 = vmatpush2.bf16.msra.mxu1 %v6171_v61  ;;  %v6254_v61 = vld [vmem:[%s8875_s6 + $0x284] ss:$16 sps:$4 sm:$0xff]  }
 0x17e   : > { %3292 = vmatprep.subr.bf16.mxu1 %v6179_v1  ;;  %v6230_v1 = vld [vmem:[%s8875_s6 + $0x64] ss:$16 sps:$4 sm:$0xff]  }
 0x17f   : > { %3252 = vmatpush2.bf16.msra.mxu0 %v6174_v63  ;;  %v6252_v63 = vld [vmem:[%s8875_s6 + $0x280] ss:$16 sps:$4 sm:$0xff]  }
 0x180   : > { %3253 = vmatprep.subr.bf16.mxu0 %v6182_v4  ;;  %v6228_v4 = vld [vmem:[%s8875_s6 + $0x60] ss:$16 sps:$4 sm:$0xff]  }
 0x181   : > { %3293 = vmatpush2.bf16.msra.mxu1 %v6177_v3  ;;  %v6260_v3 = vld [vmem:[%s8875_s6 + $0x264] ss:$16 sps:$4 sm:$0xff]  }
 0x182   : > { %3294 = vmatprep.subr.bf16.mxu1 %v6185_v5  ;;  %v6233_v5 = vld [vmem:[%s8875_s6 + $0x44] ss:$16 sps:$4 sm:$0xff]  }
 0x183   : > { %3254 = vmatpush2.bf16.msra.mxu0 %v6180_v9  ;;  %v6258_v9 = vld [vmem:[%s8875_s6 + $0x260] ss:$16 sps:$4 sm:$0xff]  }
 0x184   : > { %3255 = vmatprep.subr.bf16.mxu0 %v6188_v11  ;;  %v6231_v11 = vld [vmem:[%s8875_s6 + $0x40] ss:$16 sps:$4 sm:$0xff]  }
 0x185   : > { %3295 = vmatpush2.bf16.msra.mxu1 %v6183_v10  ;;  %v6266_v10 = vld [vmem:[%s8875_s6 + $0x244] ss:$16 sps:$4 sm:$0xff]  }
 0x186   : > { %3296 = vmatprep.subr.bf16.mxu1 %v6191_v42  ;;  %v6239_v42 = vld [vmem:[%s8875_s6 + $0x24] ss:$16 sps:$4 sm:$0xff]  }
 0x187   : > { %3256 = vmatpush2.bf16.msra.mxu0 %v6186_v45  ;;  %v6264_v45 = vld [vmem:[%s8875_s6 + $0x240] ss:$16 sps:$4 sm:$0xff]  }
 0x188   : > { %3257 = vmatprep.subr.bf16.mxu0 %v6194_v13 }
 0x189   : > { %3297 = vmatpush2.bf16.msra.mxu1 %v6189_v12  ;;  %v6272_v12 = vld [vmem:[%s8875_s6 + $0x224] ss:$16 sps:$4 sm:$0xff]  }
 0x18a   : > { %3298 = vmatprep.subr.bf16.mxu1 %v6197_v14 }
 0x18b   : > { %3258 = vmatpush2.bf16.msra.mxu0 %v6192_v15  ;;  %v6237_v15 = vld [vmem:[%s8875_s6 + $0x20] ss:$16 sps:$4 sm:$0xff]  }
 0x18c   : > { %3259 = vmatprep.subr.bf16.mxu0 %v6200_v17  ;;  %v6270_v17 = vld [vmem:[%s8875_s6 + $0x220] ss:$16 sps:$4 sm:$0xff]  }
 0x18d   : > { %3299 = vmatpush2.bf16.msra.mxu1 %v6195_v16  ;;  %v6245_v16 = vld [vmem:[%s8875_s6 + $0x4] ss:$16 sps:$4 sm:$0xff]  }
 0x18e   : > { %3300 = vmatprep.subr.bf16.mxu1 %v6203_v18  ;;  %v6278_v18 = vld [vmem:[%s8875_s6 + $0x204] ss:$16 sps:$4 sm:$0xff]  }
 0x18f   : > { %3260 = vmatpush2.bf16.msra.mxu0 %v6198_v19  ;;  %v6243_v19 = vld [vmem:[%s8875_s6] ss:$16 sps:$4 sm:$0xff]  }
 0x190   : > { %3261 = vmatprep.subr.bf16.mxu0 %v6206_v23  ;;  %v6276_v23 = vld [vmem:[%s8875_s6 + $0x200] ss:$16 sps:$4 sm:$0xff]  }
 0x191   : > { %3301 = vmatpush2.bf16.msra.mxu1 %v6201_v21  ;;  %v6251_v21 = vld [vmem:[%s8875_s6 + $0x1e4] ss:$16 sps:$4 sm:$0xff]  }
 0x192   : > { %3302 = vmatprep.subr.bf16.mxu1 %v6209_v24  ;;  %v6284_v24 = vld [vmem:[%s8875_s6 + $0x3e4] ss:$16 sps:$4 sm:$0xff]  }
 0x193   : > { %3262 = vmatpush2.bf16.msra.mxu0 %v6204_v26  ;;  %v6249_v26 = vld [vmem:[%s8875_s6 + $0x1e0] ss:$16 sps:$4 sm:$0xff]  }
 0x194   : > { %3263 = vmatprep.subr.bf16.mxu0 %v6212_v29  ;;  %v6257_v29 = vld [vmem:[%s8875_s6 + $0x1c4] ss:$16 sps:$4 sm:$0xff]  }
 0x195   : > { %3303 = vmatpush2.bf16.msra.mxu1 %v6207_v28  ;;  %v713_v28 = vsub.s32 4, %v7554_v32 }
 0x196   : > { %3304 = vmatprep.subr.bf16.mxu1 %v6215_v30  ;;  %v6282_v30 = vld [vmem:[%s8875_s6 + $0x3e0] ss:$16 sps:$4 sm:$0xff]  }
 0x197   : > { %3264 = vmatpush2.bf16.msra.mxu0 %v6210_v31  ;;  %v6290_v31 = vld [vmem:[%s8875_s6 + $0x3c4] ss:$16 sps:$4 sm:$0xff]  }
 0x198   : > { %4113 = vmatprep.subr.bf16.mxu0 %v6218_v53  ;;  %v714_v53 = vrot.slane %v7559_v36, %v713_v28 }
 0x199   : > { %3305 = vmatpush2.bf16.msra.mxu1 %v6213_v51  ;;  %v6255_v51 = vld [vmem:[%s8875_s6 + $0x1c0] ss:$16 sps:$4 sm:$0xff]  }
 0x19a   : > { %4154 = vmatprep.subr.bf16.mxu1 %v6236_v34  ;;  %v8023_v43 = vpop.f32.mrf.mxu0  ;;  %3266 = vmatmul.mubr.bf16.vlgmr.msra.gmra.mxu0 %v7799_v7  ;;  %v6240_v7 = vld [vmem:[%s8875_s6 + $0x2c0] ss:$16 sps:$4 sm:$0xff]  }
 0x19b   : > { %4114 = vmatpush1.bf16.msra.mxu0 %v6216_v35  ;;  %v6288_v34 = vld [vmem:[%s8875_s6 + $0x3c0] ss:$16 sps:$4 sm:$0xff]   ;;  %v6296_v35 = vld [vmem:[%s8875_s6 + $0x3a4] ss:$16 sps:$4 sm:$0xff]  }
 0x19c   : > { %v8026_v46 = vpop.f32.mrf.mxu1  ;;  %3307 = vmatmul.mubr.bf16.vlgmr.msra.gmra.mxu1 %v7803_v8  ;;  %v2215_v48 = vpop.f32.mrf.mxu0  ;;  %4115 = vmatprep.subr.bf16.mxu0 %v6221_v37  ;;  %v6248_v8 = vld [vmem:[%s8875_s6 + $0x2a4] ss:$16 sps:$4 sm:$0xff]   ;;  %v6261_v37 = vld [vmem:[%s8875_s6 + $0x1a0] ss:$16 sps:$4 sm:$0xff]  }
 0x19d   : > { %4155 = vmatpush1.bf16.msra.mxu1 %v6234_v39  ;;  %v2216_v50 = vadd.f32 %v2215_v48, %v718_v40  ;;  %v2214_v39 = vadd.f32 %v8023_v43, %v714_v53  ;;  %v6269_v40 = vld [vmem:[%s8875_s6 + $0x184] ss:$16 sps:$4 sm:$0xff]   ;;  %v6267_v43 = vld [vmem:[%s8875_s6 + $0x180] ss:$16 sps:$4 sm:$0xff]   ;;  %v6321_v53 = vld [vmem:[%s8875_s6 + $0x68] ss:$16 sps:$4 sm:$0xff]  }
 0x19e   : > { %v2256_v52 = vpop.f32.mrf.mxu1  ;;  %4156 = vmatprep.subr.bf16.mxu1 %v6242_v41  ;;  %v2217_v54 = vpop.f32.mrf.mxu0  ;;  %v6294_v41 = vld [vmem:[%s8875_s6 + $0x3a0] ss:$16 sps:$4 sm:$0xff]  }
 0x19f   : > { %v2257_v55 = vadd.f32 %v2256_v52, %v2216_v50  ;;  %4116 = vmatpush1.bf16.msra.mxu0 %v6219_v47  ;;  %v6302_v47 = vld [vmem:[%s8875_s6 + $0x384] ss:$16 sps:$4 sm:$0xff]   ;;  %v2255_v48 = vadd.f32 %v8026_v46, %v2214_v39  ;;  %v6273_v46 = vld [vmem:[%s8875_s6 + $0x160] ss:$16 sps:$4 sm:$0xff]  }
 0x1a0   : > { %v2258_v56 = vpop.f32.mrf.mxu1  ;;  %v2218_v22 = vpop.f32.mrf.mxu0  ;;  %4117 = vmatprep.subr.bf16.mxu0 %v6224_v49  ;;  %v6275_v49 = vld [vmem:[%s8875_s6 + $0x164] ss:$16 sps:$4 sm:$0xff]  }
 0x1a1   : > { %4157 = vmatpush1.bf16.msra.mxu1 %v6240_v7  ;;  %6600 = vtanh.f32 %v2257_v55  ;;  %v6300_v7 = vld [vmem:[%s8875_s6 + $0x380] ss:$16 sps:$4 sm:$0xff]   ;;  %v6308_v50 = vld [vmem:[%s8875_s6 + $0x364] ss:$16 sps:$4 sm:$0xff]  }
 0x1a2   : > { %v2259_v25 = vpop.f32.mrf.mxu1  ;;  %4158 = vmatprep.subr.bf16.mxu1 %v6248_v8  ;;  %6602 = vtanh.f32 %v2255_v48  ;;  %v6281_v52 = vld [vmem:[%s8875_s6 + $0x144] ss:$16 sps:$4 sm:$0xff]   ;;  %v6306_v8 = vld [vmem:[%s8875_s6 + $0x360] ss:$16 sps:$4 sm:$0xff]   ;;  %v6338_v48 = vld [vmem:[%s8875_s6 + $0x2cc] ss:$16 sps:$4 sm:$0xff]  }
 0x1a3   : > { %4118 = vmatpush1.bf16.msra.mxu0 %v6222_v57  ;;  %v6314_v54 = vld [vmem:[%s8875_s6 + $0x344] ss:$16 sps:$4 sm:$0xff]   ;;  %v6279_v55 = vld [vmem:[%s8875_s6 + $0x140] ss:$16 sps:$4 sm:$0xff]  }
 0x1a4   : > { %4119 = vmatprep.subr.bf16.mxu0 %v6227_v58  ;;  %v6287_v56 = vld [vmem:[%s8875_s6 + $0x124] ss:$16 sps:$4 sm:$0xff]   ;;  %v6312_v57 = vld [vmem:[%s8875_s6 + $0x340] ss:$16 sps:$4 sm:$0xff]  }
 0x1a5   : > { %4159 = vmatpush1.bf16.msra.mxu1 %v6246_v60  ;;  %v6320_v22 = vld [vmem:[%s8875_s6 + $0x324] ss:$16 sps:$4 sm:$0xff]   ;;  %v6285_v58 = vld [vmem:[%s8875_s6 + $0x120] ss:$16 sps:$4 sm:$0xff]  }
 0x1a6   : > { %4160 = vmatprep.subr.bf16.mxu1 %v6254_v61  ;;  %v6293_v60 = vld [vmem:[%s8875_s6 + $0x104] ss:$16 sps:$4 sm:$0xff]   ;;  %v6318_v25 = vld [vmem:[%s8875_s6 + $0x320] ss:$16 sps:$4 sm:$0xff]  }
 0x1a7   : > { %4120 = vmatpush1.bf16.msra.mxu0 %v6225_v0  ;;  %v6326_v61 = vld [vmem:[%s8875_s6 + $0x304] ss:$16 sps:$4 sm:$0xff]   ;;  %v6291_v0 = vld [vmem:[%s8875_s6 + $0x100] ss:$16 sps:$4 sm:$0xff]  }
 0x1a8   : > { %4121 = vmatprep.subr.bf16.mxu0 %v6230_v1  ;;  %v721_v1 = vsub.s32 6, %v7554_v32 }
 0x1a9   : > { %4161 = vmatpush1.bf16.msra.mxu1 %v6252_v63  ;;  %v6299_v63 = vld [vmem:[%s8875_s6 + $0xec] ss:$16 sps:$4 sm:$0xff]  }
 0x1aa   : > { %4162 = vmatprep.subr.bf16.mxu1 %v6260_v3  ;;  %v6324_v3 = vld [vmem:[%s8875_s6 + $0x300] ss:$16 sps:$4 sm:$0xff]  }
 0x1ab   : > { %4122 = vmatpush1.bf16.msra.mxu0 %v6228_v4 }
 0x1ac   : > { %4123 = vmatprep.subr.bf16.mxu0 %v6233_v5  ;;  %v725_v5 = vsub.s32 7, %v7554_v32 }
 0x1ad   : > { %4163 = vmatpush1.bf16.msra.mxu1 %v6258_v9  ;;  %v6332_v9 = vld [vmem:[%s8875_s6 + $0x2ec] ss:$16 sps:$4 sm:$0xff]  }
 0x1ae   : > { %4164 = vmatprep.subr.bf16.mxu1 %v6266_v10  ;;  %v6601_v13 = vpop.eup %6600  ;;  %v722_v10 = vrot.slane %v7559_v36, %v721_v1  ;;  %v726_v32 = vrot.slane %v7559_v36, %v725_v5  ;;  %v6365_v1 = vld [vmem:[%s8875_s6 + $0x18c] ss:$16 sps:$4 sm:$0xff]  }
 0x1af   : > { %4124 = vmatpush1.bf16.msra.mxu0 %v6231_v11  ;;  %v8089_v14 = vpack.c.bf16 %v6601_v13, %v6601_v13  ;;  %v6603_v4 = vpop.eup %6602  ;;  %v6297_v11 = vld [vmem:[%s8875_s6 + $0xe8] ss:$16 sps:$4 sm:$0xff]   ;;  %v6371_v5 = vld [vmem:[%s8875_s6 + $0x16c] ss:$16 sps:$4 sm:$0xff]  }
 0x1b0   : > { %4125 = vmatprep.subr.bf16.mxu0 %v6239_v42  ;;  %v8222_v42 = vpack.c.bf16 %v6603_v4, %v6603_v4  ;;  %v6368_v4 = vld [vmem:[%s8875_s6 + $0x22c] ss:$16 sps:$4 sm:$0xff]  }
 0x1b1   : > { %4165 = vmatpush1.bf16.msra.mxu1 %v6264_v45  ;;  %4145 = vmatprep.mubr.bf16.mxu0 %v8089_v14  ;;  %v6305_v45 = vld [vmem:[%s8875_s6 + $0xcc] ss:$16 sps:$4 sm:$0xff]  }
 0x1b2   : > { %4166 = vmatprep.subr.bf16.mxu1 %v6272_v12 }
 0x1b3   : > { %4126 = vmatpush1.bf16.msra.mxu0 %v6237_v15 }
 0x1b4   : > { %4127 = vmatprep.subr.bf16.mxu0 %v6245_v16  ;;  %v6303_v16 = vld [vmem:[%s8875_s6 + $0xc8] ss:$16 sps:$4 sm:$0xff]  }
 0x1b5   : > { %4167 = vmatpush1.bf16.msra.mxu1 %v6270_v17 }
 0x1b6   : > { %4168 = vmatprep.subr.bf16.mxu1 %v6278_v18  ;;  %v6311_v18 = vld [vmem:[%s8875_s6 + $0xac] ss:$16 sps:$4 sm:$0xff]  }
 0x1b7   : > { %4128 = vmatpush1.bf16.msra.mxu0 %v6243_v19 }
 0x1b8   : > { %4129 = vmatprep.subr.bf16.mxu0 %v6251_v21 }
 0x1b9   : > { %4169 = vmatpush1.bf16.msra.mxu1 %v6276_v23 }
 0x1ba   : > { %4170 = vmatprep.subr.bf16.mxu1 %v6284_v24 }
 0x1bb   : > { %4130 = vmatpush2.bf16.msra.mxu0 %v6249_v26 }
 0x1bc   : > { %4131 = vmatprep.subr.bf16.mxu0 %v6257_v29  ;;  %v6317_v29 = vld [vmem:[%s8875_s6 + $0x8c] ss:$16 sps:$4 sm:$0xff]  }
 0x1bd   : > { %4171 = vmatpush2.bf16.msra.mxu1 %v6282_v30 }
 0x1be   : > { %4172 = vmatprep.subr.bf16.mxu1 %v6290_v31  ;;  %v6315_v31 = vld [vmem:[%s8875_s6 + $0x88] ss:$16 sps:$4 sm:$0xff]  }
 0x1bf   : > { %4132 = vmatpush2.bf16.msra.mxu0 %v6255_v51  ;;  %v6323_v51 = vld [vmem:[%s8875_s6 + $0x6c] ss:$16 sps:$4 sm:$0xff]  }
 0x1c0   : > { %4133 = vmatprep.subr.bf16.mxu0 %v6263_v33  ;;  %v6329_v33 = vld [vmem:[%s8875_s6 + $0x4c] ss:$16 sps:$4 sm:$0xff]  }
 0x1c1   : > { %4173 = vmatpush2.bf16.msra.mxu1 %v6288_v34  ;;  %v6327_v34 = vld [vmem:[%s8875_s6 + $0x48] ss:$16 sps:$4 sm:$0xff]  }
 0x1c2   : > { %4174 = vmatprep.subr.bf16.mxu1 %v6296_v35  ;;  %v6335_v35 = vld [vmem:[%s8875_s6 + $0x2c] ss:$16 sps:$4 sm:$0xff]  }
 0x1c3   : > { %4134 = vmatpush2.bf16.msra.mxu0 %v6261_v37 }
 0x1c4   : > { %4135 = vmatprep.subr.bf16.mxu0 %v6269_v40 }
 0x1c5   : > { %4175 = vmatpush2.bf16.msra.mxu1 %v6294_v41  ;;  %v6330_v41 = vld [vmem:[%s8875_s6 + $0x2e8] ss:$16 sps:$4 sm:$0xff]  }
 0x1c6   : > { %4176 = vmatprep.subr.bf16.mxu1 %v6302_v47  ;;  %v6333_v47 = vld [vmem:[%s8875_s6 + $0x28] ss:$16 sps:$4 sm:$0xff]  }
 0x1c7   : > { %4136 = vmatpush2.bf16.msra.mxu0 %v6267_v43 }
 0x1c8   : > { %4137 = vmatprep.subr.bf16.mxu0 %v6275_v49  ;;  %v6341_v49 = vld [vmem:[%s8875_s6 + $0xc] ss:$16 sps:$4 sm:$0xff]  }
 0x1c9   : > { %4177 = vmatpush2.bf16.msra.mxu1 %v6300_v7  ;;  %v6336_v7 = vld [vmem:[%s8875_s6 + $0x2c8] ss:$16 sps:$4 sm:$0xff]  }
 0x1ca   : > { %4178 = vmatprep.subr.bf16.mxu1 %v6308_v50  ;;  %v6339_v50 = vld [vmem:[%s8875_s6 + $0x8] ss:$16 sps:$4 sm:$0xff]  }
 0x1cb   : > { %4138 = vmatpush2.bf16.msra.mxu0 %v6273_v46  ;;  %v6344_v46 = vld [vmem:[%s8875_s6 + $0x2ac] ss:$16 sps:$4 sm:$0xff]  }
 0x1cc   : > { %4139 = vmatprep.subr.bf16.mxu0 %v6281_v52  ;;  %v6347_v52 = vld [vmem:[%s8875_s6 + $0x1ec] ss:$16 sps:$4 sm:$0xff]  }
 0x1cd   : > { %4179 = vmatpush2.bf16.msra.mxu1 %v6306_v8  ;;  %v6342_v8 = vld [vmem:[%s8875_s6 + $0x2a8] ss:$16 sps:$4 sm:$0xff]  }
 0x1ce   : > { %4180 = vmatprep.subr.bf16.mxu1 %v6314_v54  ;;  %v6345_v54 = vld [vmem:[%s8875_s6 + $0x1e8] ss:$16 sps:$4 sm:$0xff]  }
 0x1cf   : > { %4140 = vmatpush2.bf16.msra.mxu0 %v6279_v55  ;;  %v6350_v55 = vld [vmem:[%s8875_s6 + $0x28c] ss:$16 sps:$4 sm:$0xff]  }
 0x1d0   : > { %4141 = vmatprep.subr.bf16.mxu0 %v6287_v56  ;;  %v6353_v56 = vld [vmem:[%s8875_s6 + $0x1cc] ss:$16 sps:$4 sm:$0xff]  }
 0x1d1   : > { %4181 = vmatpush2.bf16.msra.mxu1 %v6312_v57  ;;  %v6348_v57 = vld [vmem:[%s8875_s6 + $0x288] ss:$16 sps:$4 sm:$0xff]  }
 0x1d2   : > { %4182 = vmatprep.subr.bf16.mxu1 %v6320_v22  ;;  %v6351_v22 = vld [vmem:[%s8875_s6 + $0x1c8] ss:$16 sps:$4 sm:$0xff]  }
 0x1d3   : > { %4142 = vmatpush2.bf16.msra.mxu0 %v6285_v58  ;;  %v6356_v58 = vld [vmem:[%s8875_s6 + $0x26c] ss:$16 sps:$4 sm:$0xff]  }
 0x1d4   : > { %4143 = vmatprep.subr.bf16.mxu0 %v6293_v60  ;;  %v6359_v60 = vld [vmem:[%s8875_s6 + $0x1ac] ss:$16 sps:$4 sm:$0xff]  }
 0x1d5   : > { %4183 = vmatpush2.bf16.msra.mxu1 %v6318_v25  ;;  %v6354_v25 = vld [vmem:[%s8875_s6 + $0x268] ss:$16 sps:$4 sm:$0xff]  }
 0x1d6   : > { %4184 = vmatprep.subr.bf16.mxu1 %v6326_v61  ;;  %v6357_v61 = vld [vmem:[%s8875_s6 + $0x1a8] ss:$16 sps:$4 sm:$0xff]  }
 0x1d7   : > { %4144 = vmatpush2.bf16.msra.mxu0 %v6291_v0  ;;  %v6362_v0 = vld [vmem:[%s8875_s6 + $0x24c] ss:$16 sps:$4 sm:$0xff]  }
 0x1d8   : > { %4195 = vmatprep.subr.bf16.mxu0 %v6299_v63  ;;  %v6360_v63 = vld [vmem:[%s8875_s6 + $0x248] ss:$16 sps:$4 sm:$0xff]  }
 0x1d9   : > { %4185 = vmatpush2.bf16.msra.mxu1 %v6324_v3  ;;  %v6363_v3 = vld [vmem:[%s8875_s6 + $0x188] ss:$16 sps:$4 sm:$0xff]  }
 0x1da   : > { %4236 = vmatprep.subr.bf16.mxu1 %v6332_v9  ;;  %v2295_v12 = vpop.f32.mrf.mxu0  ;;  %4146 = vmatmul.mubr.bf16.vlgmr.msra.gmra.mxu0 %v8222_v42  ;;  %v6366_v9 = vld [vmem:[%s8875_s6 + $0x228] ss:$16 sps:$4 sm:$0xff]  }
 0x1db   : > { %v2296_v13 = vadd.f32 %v2295_v12, %v722_v10  ;;  %4196 = vmatpush1.bf16.msra.mxu0 %v6297_v11  ;;  %4227 = vmatprep.mubr.bf16.mxu0 %v8089_v14  ;;  %v6309_v14 = vld [vmem:[%s8875_s6 + $0xa8] ss:$16 sps:$4 sm:$0xff]   ;;  %v6374_v11 = vld [vmem:[%s8875_s6 + $0x20c] ss:$16 sps:$4 sm:$0xff]  }
 0x1dc   : > { %v2336_v15 = vpop.f32.mrf.mxu1  ;;  %v2297_v17 = vpop.f32.mrf.mxu0  ;;  %4197 = vmatprep.subr.bf16.mxu0 %v6305_v45  ;;  %v6369_v10 = vld [vmem:[%s8875_s6 + $0x168] ss:$16 sps:$4 sm:$0xff]   ;;  %v6377_v45 = vld [vmem:[%s8875_s6 + $0x14c] ss:$16 sps:$4 sm:$0xff]  }
 0x1dd   : > { %v2337_v36 = vadd.f32 %v2336_v15, %v2296_v13  ;;  %v2298_v19 = vadd.f32 %v2297_v17, %v726_v32  ;;  %v6372_v32 = vld [vmem:[%s8875_s6 + $0x208] ss:$16 sps:$4 sm:$0xff]   ;;  %v6380_v13 = vld [vmem:[%s8875_s6 + $0x3ec] ss:$16 sps:$4 sm:$0xff]  }
 0x1de   : > { %v2338_v21 = vpop.f32.mrf.mxu1  ;;  %v2299_v23 = vpop.f32.mrf.mxu0  ;;  %v6375_v12 = vld [vmem:[%s8875_s6 + $0x148] ss:$16 sps:$4 sm:$0xff]   ;;  %v6383_v15 = vld [vmem:[%s8875_s6 + $0x12c] ss:$16 sps:$4 sm:$0xff]  }
 0x1df   : > { %v2339_v24 = vadd.f32 %v2338_v21, %v2298_v19  ;;  %4198 = vmatpush1.bf16.msra.mxu0 %v6303_v16  ;;  %6604 = vtanh.f32 %v2337_v36  ;;  %v6378_v16 = vld [vmem:[%s8875_s6 + $0x3e8] ss:$16 sps:$4 sm:$0xff]   ;;  %v6389_v36 = vld [vmem:[%s8875_s6 + $0x10c] ss:$16 sps:$4 sm:$0xff]  }
 0x1e0   : > { %v2340_v26 = vpop.f32.mrf.mxu1  ;;  %v2300_v28 = vpop.f32.mrf.mxu0  ;;  %4199 = vmatprep.subr.bf16.mxu0 %v6311_v18  ;;  %v6381_v17 = vld [vmem:[%s8875_s6 + $0x128] ss:$16 sps:$4 sm:$0xff]   ;;  %v6386_v18 = vld [vmem:[%s8875_s6 + $0x3cc] ss:$16 sps:$4 sm:$0xff]  }
 0x1e1   : > { %6606 = vtanh.f32 %v2339_v24  ;;  %v6384_v19 = vld [vmem:[%s8875_s6 + $0x3c8] ss:$16 sps:$4 sm:$0xff]   ;;  %v6392_v23 = vld [vmem:[%s8875_s6 + $0x3ac] ss:$16 sps:$4 sm:$0xff]   ;;  %v6395_v24 = vld [vmem:[%s8877_s8 + $0xe4] ss:$16 sps:$4 sm:$0xff]  }
 0x1e2   : > { %v2341_v30 = vpop.f32.mrf.mxu1  ;;  %v6387_v21 = vld [vmem:[%s8875_s6 + $0x108] ss:$16 sps:$4 sm:$0xff]   ;;  %v8386_v26 = vld [vmem:[%s8874_s5] sm:$0xf] }
 0x1e3   : > { %4200 = vmatpush1.bf16.msra.mxu0 %v6309_v14  ;;  %v6390_v14 = vld [vmem:[%s8875_s6 + $0x3a8] ss:$16 sps:$4 sm:$0xff]   ;;  %v6393_v28 = vld [vmem:[%s8877_s8 + $0xe0] ss:$16 sps:$4 sm:$0xff]   ;;  %v6401_v30 = vld [vmem:[%s8877_s8 + $0xc4] ss:$16 sps:$4 sm:$0xff]  }
 0x1e4   : > { %4201 = vmatprep.subr.bf16.mxu0 %v6317_v29  ;;  %v6398_v29 = vld [vmem:[%s8875_s6 + $0x38c] ss:$16 sps:$4 sm:$0xff]  }
 0x1e7   : > { %4202 = vmatpush1.bf16.msra.mxu0 %v6315_v31  ;;  %v2484_v31 = vrot.slane %v8386_v26, %v7577_v44 }
 0x1e8   : > { %4203 = vmatprep.subr.bf16.mxu0 %v6323_v51 }
 0x1eb   : > { %4204 = vmatpush1.bf16.msra.mxu0 %v6321_v53 }
 0x1ec   : > { %4205 = vmatprep.subr.bf16.mxu0 %v6329_v33  ;;  %v6605_v37 = vpop.eup %6604  ;;  %v6396_v33 = vld [vmem:[%s8875_s6 + $0x388] ss:$16 sps:$4 sm:$0xff]  }
 0x1ed   : > { %v8266_v43 = vpack.c.bf16 %v6605_v37, %v6605_v37  ;;  %v6404_v37 = vld [vmem:[%s8875_s6 + $0x36c] ss:$16 sps:$4 sm:$0xff]  }
 0x1ee   : > { %v6607_v39 = vpop.eup %6606 }
 0x1ef   : > { %4206 = vmatpush1.bf16.msra.mxu0 %v6327_v34  ;;  %v3322_v40 = vpack.c.bf16 %v6607_v39, %v6607_v39  ;;  %v6399_v34 = vld [vmem:[%s8877_s8 + $0xc0] ss:$16 sps:$4 sm:$0xff]  }
 0x1f0   : > { %4207 = vmatprep.subr.bf16.mxu0 %v6335_v35 }
 0x1f1   : > { %4186 = vmatprep.mubr.bf16.mxu1 %v3322_v40 }
 0x1f2   : > { %4187 = vmatmul.mubr.bf16.vlgmr.msra.gmra.mxu1 %v8266_v43 }
 0x1f3   : > { %4237 = vmatpush1.bf16.msra.mxu1 %v6330_v41  ;;  %4208 = vmatpush1.bf16.msra.mxu0 %v6333_v47 }
 0x1f4   : > { %4268 = vmatprep.mubr.bf16.mxu1 %v3322_v40  ;;  %4238 = vmatprep.subr.bf16.mxu1 %v6338_v48 }
 0x1f5   : > { %4209 = vmatprep.subr.bf16.mxu0 %v6341_v49  ;;  %v6402_v49 = vld [vmem:[%s8875_s6 + $0x368] ss:$16 sps:$4 sm:$0xff]  }
 0x1f7   : > { %4239 = vmatpush1.bf16.msra.mxu1 %v6336_v7  ;;  %4210 = vmatpush1.bf16.msra.mxu0 %v6339_v50  ;;  %v6405_v7 = vld [vmem:[%s8877_s8 + $0xa0] ss:$16 sps:$4 sm:$0xff]  }
 0x1f8   : > { %4240 = vmatprep.subr.bf16.mxu1 %v6344_v46  ;;  %4211 = vmatprep.subr.bf16.mxu0 %v6347_v52  ;;  %v6410_v46 = vld [vmem:[%s8875_s6 + $0x34c] ss:$16 sps:$4 sm:$0xff]   ;;  %v6413_v52 = vld [vmem:[%s8877_s8 + $0x84] ss:$16 sps:$4 sm:$0xff]  }
 0x1fb   : > { %4241 = vmatpush1.bf16.msra.mxu1 %v6342_v8  ;;  %4212 = vmatpush2.bf16.msra.mxu0 %v6345_v54  ;;  %v6408_v54 = vld [vmem:[%s8875_s6 + $0x348] ss:$16 sps:$4 sm:$0xff]  }
 0x1fc   : > { %4242 = vmatprep.subr.bf16.mxu1 %v6350_v55  ;;  %4213 = vmatprep.subr.bf16.mxu0 %v6353_v56  ;;  %v6411_v55 = vld [vmem:[%s8877_s8 + $0x80] ss:$16 sps:$4 sm:$0xff]   ;;  %v6416_v56 = vld [vmem:[%s8875_s6 + $0x32c] ss:$16 sps:$4 sm:$0xff]  }
 0x1ff   : > { %4243 = vmatpush1.bf16.msra.mxu1 %v6348_v57  ;;  %4214 = vmatpush2.bf16.msra.mxu0 %v6351_v22  ;;  %v6419_v57 = vld [vmem:[%s8877_s8 + $0x64] ss:$16 sps:$4 sm:$0xff]   ;;  %v6414_v22 = vld [vmem:[%s8875_s6 + $0x328] ss:$16 sps:$4 sm:$0xff]  }
 0x200   : > { %4244 = vmatprep.subr.bf16.mxu1 %v6356_v58  ;;  %4215 = vmatprep.subr.bf16.mxu0 %v6359_v60  ;;  %v6417_v58 = vld [vmem:[%s8877_s8 + $0x60] ss:$16 sps:$4 sm:$0xff]   ;;  %v6422_v60 = vld [vmem:[%s8875_s6 + $0x30c] ss:$16 sps:$4 sm:$0xff]  }
 0x203   : > { %4245 = vmatpush1.bf16.msra.mxu1 %v6354_v25  ;;  %4216 = vmatpush2.bf16.msra.mxu0 %v6357_v61  ;;  %v6425_v25 = vld [vmem:[%s8877_s8 + $0x44] ss:$16 sps:$4 sm:$0xff]   ;;  %v6420_v61 = vld [vmem:[%s8875_s6 + $0x308] ss:$16 sps:$4 sm:$0xff]  }
 0x204   : > { %4246 = vmatprep.subr.bf16.mxu1 %v6362_v0  ;;  %4217 = vmatprep.subr.bf16.mxu0 %v6365_v1  ;;  %v6423_v0 = vld [vmem:[%s8877_s8 + $0x40] ss:$16 sps:$4 sm:$0xff]   ;;  %v6428_v1 = vld [vmem:[%s8877_s8 + $0x2e4] ss:$16 sps:$4 sm:$0xff]  }
 0x207   : > { %4247 = vmatpush1.bf16.msra.mxu1 %v6360_v63  ;;  %4218 = vmatpush2.bf16.msra.mxu0 %v6363_v3  ;;  %v6431_v63 = vld [vmem:[%s8877_s8 + $0x24] ss:$16 sps:$4 sm:$0xff]  }
 0x208   : > { %4248 = vmatprep.subr.bf16.mxu1 %v6368_v4  ;;  %4219 = vmatprep.subr.bf16.mxu0 %v6371_v5  ;;  %v6426_v5 = vld [vmem:[%s8877_s8 + $0x2e0] ss:$16 sps:$4 sm:$0xff]  }
 0x20b   : > { %4249 = vmatpush1.bf16.msra.mxu1 %v6366_v9  ;;  %4220 = vmatpush2.bf16.msra.mxu0 %v6369_v10  ;;  %v6429_v9 = vld [vmem:[%s8877_s8 + $0x20] ss:$16 sps:$4 sm:$0xff]   ;;  %v6434_v10 = vld [vmem:[%s8877_s8 + $0x2c4] ss:$16 sps:$4 sm:$0xff]  }
 0x20c   : > { %4250 = vmatprep.subr.bf16.mxu1 %v6374_v11  ;;  %4221 = vmatprep.subr.bf16.mxu0 %v6377_v45  ;;  %v6437_v11 = vld [vmem:[%s8877_s8 + $0x4] ss:$16 sps:$4 sm:$0xff]   ;;  %v6432_v45 = vld [vmem:[%s8877_s8 + $0x2c0] ss:$16 sps:$4 sm:$0xff]  }
 0x20f   : > { %4251 = vmatpush1.bf16.msra.mxu1 %v6372_v32  ;;  %4222 = vmatpush2.bf16.msra.mxu0 %v6375_v12  ;;  %v6435_v32 = vld [vmem:[%s8877_s8] ss:$16 sps:$4 sm:$0xff]   ;;  %v6440_v12 = vld [vmem:[%s8877_s8 + $0x2a4] ss:$16 sps:$4 sm:$0xff]  }
 0x210   : > { %4252 = vmatprep.subr.bf16.mxu1 %v6380_v13  ;;  %4223 = vmatprep.subr.bf16.mxu0 %v6383_v15  ;;  %v6438_v13 = vld [vmem:[%s8877_s8 + $0x2a0] ss:$16 sps:$4 sm:$0xff]  }
 0x211   : > { %v6441_v15 = vld [vmem:[%s8877_s8 + $0x1e0] ss:$16 sps:$4 sm:$0xff]  }
 0x213   : > { %4253 = vmatpush2.bf16.msra.mxu1 %v6378_v16  ;;  %4224 = vmatpush2.bf16.msra.mxu0 %v6381_v17  ;;  %v6446_v16 = vld [vmem:[%s8877_s8 + $0x284] ss:$16 sps:$4 sm:$0xff]  }
 0x214   : > { %4254 = vmatprep.subr.bf16.mxu1 %v6386_v18  ;;  %4225 = vmatprep.subr.bf16.mxu0 %v6389_v36  ;;  %v6449_v17 = vld [vmem:[%s8877_s8 + $0x1c4] ss:$16 sps:$4 sm:$0xff]   ;;  %v6444_v18 = vld [vmem:[%s8877_s8 + $0x280] ss:$16 sps:$4 sm:$0xff]  }
 0x215   : > { %v6447_v36 = vld [vmem:[%s8877_s8 + $0x1c0] ss:$16 sps:$4 sm:$0xff]  }
 0x217   : > { %4255 = vmatpush2.bf16.msra.mxu1 %v6384_v19  ;;  %4226 = vmatpush2.bf16.msra.mxu0 %v6387_v21  ;;  %v2480_v19 = vrot.slane %v8386_v26, %v7562_v38  ;;  %v6452_v21 = vld [vmem:[%s8877_s8 + $0x264] ss:$16 sps:$4 sm:$0xff]  }
 0x218   : > { %4256 = vmatprep.subr.bf16.mxu1 %v6392_v23  ;;  %5075 = vmatprep.subr.bf16.mxu0 %v6395_v24  ;;  %v6455_v23 = vld [vmem:[%s8877_s8 + $0x1a4] ss:$16 sps:$4 sm:$0xff]   ;;  %v6450_v24 = vld [vmem:[%s8877_s8 + $0x260] ss:$16 sps:$4 sm:$0xff]  }
 0x21a   : > { %v8402_v51 = vpop.f32.mrf.mxu0  ;;  %4228 = vmatmul.mubr.bf16.vlgmr.msra.gmra.mxu0 %v8222_v42  ;;  %v6407_v42 = vld [vmem:[%s8877_s8 + $0xa4] ss:$16 sps:$4 sm:$0xff]  }
 0x21b   : > { %4257 = vmatpush2.bf16.msra.mxu1 %v6390_v14  ;;  %5076 = vmatpush1.bf16.msra.mxu0 %v6393_v28  ;;  %v6453_v14 = vld [vmem:[%s8877_s8 + $0x1a0] ss:$16 sps:$4 sm:$0xff]   ;;  %v3186_v28 = vadd.f32 %v8402_v51, %v2480_v19 }
 0x21c   : > { %v8405_v53 = vpop.f32.mrf.mxu1  ;;  %v3187_v35 = vpop.f32.mrf.mxu0  ;;  %4258 = vmatprep.subr.bf16.mxu1 %v6398_v29  ;;  %5077 = vmatprep.subr.bf16.mxu0 %v6401_v30  ;;  %v6458_v29 = vld [vmem:[%s8877_s8 + $0x244] ss:$16 sps:$4 sm:$0xff]   ;;  %v6459_v51 = vld [vmem:[%s8877_s8 + $0x180] ss:$16 sps:$4 sm:$0xff]  }
 0x21d   : > { %v3188_v39 = vadd.f32 %v3187_v35, %v2484_v31  ;;  %v6461_v30 = vld [vmem:[%s8877_s8 + $0x184] ss:$16 sps:$4 sm:$0xff]   ;;  %v6456_v31 = vld [vmem:[%s8877_s8 + $0x240] ss:$16 sps:$4 sm:$0xff]  }
 0x21e   : > { %v3228_v40 = vpop.f32.mrf.mxu1  ;;  %v3189_v41 = vpop.f32.mrf.mxu0  ;;  %v6467_v35 = vld [vmem:[%s8877_s8 + $0x164] ss:$16 sps:$4 sm:$0xff]  }
 0x21f   : > { %v3229_v47 = vadd.f32 %v3228_v40, %v3188_v39  ;;  %4259 = vmatpush2.bf16.msra.mxu1 %v6396_v33  ;;  %5078 = vmatpush1.bf16.msra.mxu0 %v6399_v34  ;;  %v3227_v33 = vadd.f32 %v8405_v53, %v3186_v28  ;;  %v6464_v34 = vld [vmem:[%s8877_s8 + $0x224] ss:$16 sps:$4 sm:$0xff]   ;;  %v6465_v53 = vld [vmem:[%s8877_s8 + $0x160] ss:$16 sps:$4 sm:$0xff]  }
 0x220   : > { %v3230_v48 = vpop.f32.mrf.mxu1  ;;  %v3190_v50 = vpop.f32.mrf.mxu0  ;;  %4260 = vmatprep.subr.bf16.mxu1 %v6404_v37  ;;  %5079 = vmatprep.subr.bf16.mxu0 %v6407_v42  ;;  %v6462_v37 = vld [vmem:[%s8877_s8 + $0x220] ss:$16 sps:$4 sm:$0xff]   ;;  %v6470_v42 = vld [vmem:[%s8877_s8 + $0x204] ss:$16 sps:$4 sm:$0xff]  }
 0x221   : > { %6608 = vtanh.f32 %v3229_v47  ;;  %v6473_v39 = vld [vmem:[%s8877_s8 + $0x144] ss:$16 sps:$4 sm:$0xff]   ;;  %v6468_v40 = vld [vmem:[%s8877_s8 + $0x200] ss:$16 sps:$4 sm:$0xff]  }
 0x222   : > { %v3231_v8 = vpop.f32.mrf.mxu1  ;;  %6610 = vtanh.f32 %v3227_v33  ;;  %v6471_v41 = vld [vmem:[%s8877_s8 + $0x140] ss:$16 sps:$4 sm:$0xff]   ;;  %v6476_v47 = vld [vmem:[%s8877_s8 + $0x3e4] ss:$16 sps:$4 sm:$0xff]   ;;  %v6519_v33 = vld [vmem:[%s8877_s8 + $0x48] ss:$16 sps:$4 sm:$0xff]  }
 0x223   : > { %4261 = vmatpush2.bf16.msra.mxu1 %v6402_v49  ;;  %5080 = vmatpush1.bf16.msra.mxu0 %v6405_v7  ;;  %v6479_v48 = vld [vmem:[%s8877_s8 + $0x124] ss:$16 sps:$4 sm:$0xff]   ;;  %v6474_v49 = vld [vmem:[%s8877_s8 + $0x3e0] ss:$16 sps:$4 sm:$0xff]  }
 0x224   : > { %4262 = vmatprep.subr.bf16.mxu1 %v6410_v46  ;;  %5081 = vmatprep.subr.bf16.mxu0 %v6413_v52  ;;  %v6477_v7 = vld [vmem:[%s8877_s8 + $0x120] ss:$16 sps:$4 sm:$0xff]   ;;  %v6482_v50 = vld [vmem:[%s8877_s8 + $0x3c4] ss:$16 sps:$4 sm:$0xff]  }
 0x225   : > { %v6485_v46 = vld [vmem:[%s8877_s8 + $0x104] ss:$16 sps:$4 sm:$0xff]   ;;  %v6480_v52 = vld [vmem:[%s8877_s8 + $0x3c0] ss:$16 sps:$4 sm:$0xff]  }
 0x226   : > { %v6483_v8 = vld [vmem:[%s8877_s8 + $0x100] ss:$16 sps:$4 sm:$0xff]  }
 0x227   : > { %4263 = vmatpush2.bf16.msra.mxu1 %v6408_v54  ;;  %5082 = vmatpush1.bf16.msra.mxu0 %v6411_v55  ;;  %v6488_v54 = vld [vmem:[%s8877_s8 + $0x3a4] ss:$16 sps:$4 sm:$0xff]   ;;  %v6491_v55 = vld [vmem:[%s8877_s8 + $0xec] ss:$16 sps:$4 sm:$0xff]   ;;  %v6510_v28 = vld [vmem:[%s8877_s8 + $0x320] ss:$16 sps:$4 sm:$0xff]  }
 0x228   : > { %4264 = vmatprep.subr.bf16.mxu1 %v6416_v56  ;;  %5083 = vmatprep.subr.bf16.mxu0 %v6419_v57  ;;  %v6486_v57 = vld [vmem:[%s8877_s8 + $0x3a0] ss:$16 sps:$4 sm:$0xff]  }
 0x22b   : > { %4265 = vmatpush2.bf16.msra.mxu1 %v6414_v22  ;;  %5084 = vmatpush1.bf16.msra.mxu0 %v6417_v58  ;;  %v2488_v22 = vrot.slane %v8386_v26, %v7783_v2  ;;  %v6489_v58 = vld [vmem:[%s8877_s8 + $0xe8] ss:$16 sps:$4 sm:$0xff]  }
 0x22c   : > { %4266 = vmatprep.subr.bf16.mxu1 %v6422_v60  ;;  %5085 = vmatprep.subr.bf16.mxu0 %v6425_v25  ;;  %v6494_v25 = vld [vmem:[%s8877_s8 + $0x384] ss:$16 sps:$4 sm:$0xff]  }
 0x22e   : > { %v6609_v3 = vpop.eup %6608 }
 0x22f   : > { %4267 = vmatpush2.bf16.msra.mxu1 %v6420_v61  ;;  %5086 = vmatpush1.bf16.msra.mxu0 %v6423_v0  ;;  %v8467_v4 = vpack.c.bf16 %v6609_v3, %v6609_v3  ;;  %v6611_v56 = vpop.eup %6610  ;;  %v2492_v61 = vrot.slane %v8386_v26, %v7795_v6  ;;  %v6497_v0 = vld [vmem:[%s8877_s8 + $0xcc] ss:$16 sps:$4 sm:$0xff]  }
 0x230   : > { %5116 = vmatprep.subr.bf16.mxu1 %v6428_v1  ;;  %5087 = vmatprep.subr.bf16.mxu0 %v6431_v63  ;;  %v8603_v60 = vpack.c.bf16 %v6611_v56, %v6611_v56  ;;  %v6540_v56 = vld [vmem:[%s8877_s8 + $0x288] ss:$16 sps:$4 sm:$0xff]  }
 0x231   : > { %5107 = vmatprep.mubr.bf16.mxu0 %v8467_v4 }
 0x232   : > { %4269 = vmatmul.mubr.bf16.vlgmr.msra.gmra.mxu1 %v8266_v43  ;;  %v6443_v43 = vld [vmem:[%s8877_s8 + $0x1e4] ss:$16 sps:$4 sm:$0xff]  }
 0x233   : > { %5117 = vmatpush1.bf16.msra.mxu1 %v6426_v5  ;;  %5088 = vmatpush1.bf16.msra.mxu0 %v6429_v9  ;;  %v6492_v5 = vld [vmem:[%s8877_s8 + $0x380] ss:$16 sps:$4 sm:$0xff]   ;;  %v6495_v9 = vld [vmem:[%s8877_s8 + $0xc8] ss:$16 sps:$4 sm:$0xff]  }
 0x234   : > { %5118 = vmatprep.subr.bf16.mxu1 %v6434_v10  ;;  %5089 = vmatprep.subr.bf16.mxu0 %v6437_v11  ;;  %v6500_v10 = vld [vmem:[%s8877_s8 + $0x364] ss:$16 sps:$4 sm:$0xff]   ;;  %v6503_v11 = vld [vmem:[%s8877_s8 + $0xac] ss:$16 sps:$4 sm:$0xff]  }
 0x237   : > { %5119 = vmatpush1.bf16.msra.mxu1 %v6432_v45  ;;  %5090 = vmatpush1.bf16.msra.mxu0 %v6435_v32 }
 0x238   : > { %5120 = vmatprep.subr.bf16.mxu1 %v6440_v12  ;;  %5091 = vmatprep.subr.bf16.mxu0 %v6443_v43 }
 0x23b   : > { %5121 = vmatpush1.bf16.msra.mxu1 %v6438_v13  ;;  %5092 = vmatpush2.bf16.msra.mxu0 %v6441_v15 }
 0x23c   : > { %5122 = vmatprep.subr.bf16.mxu1 %v6446_v16  ;;  %5093 = vmatprep.subr.bf16.mxu0 %v6449_v17  ;;  %v6501_v16 = vld [vmem:[%s8877_s8 + $0xa8] ss:$16 sps:$4 sm:$0xff]  }
 0x23f   : > { %5123 = vmatpush1.bf16.msra.mxu1 %v6444_v18  ;;  %5094 = vmatpush2.bf16.msra.mxu0 %v6447_v36  ;;  %v6506_v18 = vld [vmem:[%s8877_s8 + $0x344] ss:$16 sps:$4 sm:$0xff]   ;;  %v6509_v36 = vld [vmem:[%s8877_s8 + $0x8c] ss:$16 sps:$4 sm:$0xff]  }
 0x240   : > { %5124 = vmatprep.subr.bf16.mxu1 %v6452_v21  ;;  %5095 = vmatprep.subr.bf16.mxu0 %v6455_v23  ;;  %v6504_v21 = vld [vmem:[%s8877_s8 + $0x340] ss:$16 sps:$4 sm:$0xff]   ;;  %v6507_v23 = vld [vmem:[%s8877_s8 + $0x88] ss:$16 sps:$4 sm:$0xff]  }
 0x243   : > { %5125 = vmatpush1.bf16.msra.mxu1 %v6450_v24  ;;  %5096 = vmatpush2.bf16.msra.mxu0 %v6453_v14  ;;  %v6512_v24 = vld [vmem:[%s8877_s8 + $0x324] ss:$16 sps:$4 sm:$0xff]   ;;  %v6515_v14 = vld [vmem:[%s8877_s8 + $0x6c] ss:$16 sps:$4 sm:$0xff]  }
 0x244   : > { %5126 = vmatprep.subr.bf16.mxu1 %v6458_v29  ;;  %5097 = vmatprep.subr.bf16.mxu0 %v6461_v30  ;;  %v6513_v29 = vld [vmem:[%s8877_s8 + $0x68] ss:$16 sps:$4 sm:$0xff]   ;;  %v6518_v30 = vld [vmem:[%s8877_s8 + $0x304] ss:$16 sps:$4 sm:$0xff]  }
 0x247   : > { %5127 = vmatpush1.bf16.msra.mxu1 %v6456_v31  ;;  %5098 = vmatpush2.bf16.msra.mxu0 %v6459_v51  ;;  %v6521_v31 = vld [vmem:[%s8877_s8 + $0x4c] ss:$16 sps:$4 sm:$0xff]   ;;  %v6516_v51 = vld [vmem:[%s8877_s8 + $0x300] ss:$16 sps:$4 sm:$0xff]  }
 0x248   : > { %5128 = vmatprep.subr.bf16.mxu1 %v6464_v34  ;;  %5099 = vmatprep.subr.bf16.mxu0 %v6467_v35  ;;  %v6524_v34 = vld [vmem:[%s8877_s8 + $0x2ec] ss:$16 sps:$4 sm:$0xff]  }
 0x249   : > { %v6527_v35 = vld [vmem:[%s8877_s8 + $0x2c] ss:$16 sps:$4 sm:$0xff]  }
 0x24b   : > { %5129 = vmatpush1.bf16.msra.mxu1 %v6462_v37  ;;  %5100 = vmatpush2.bf16.msra.mxu0 %v6465_v53 }
 0x24c   : > { %5130 = vmatprep.subr.bf16.mxu1 %v6470_v42  ;;  %5101 = vmatprep.subr.bf16.mxu0 %v6473_v39  ;;  %v6522_v39 = vld [vmem:[%s8877_s8 + $0x2e8] ss:$16 sps:$4 sm:$0xff]  }
 0x24f   : > { %5131 = vmatpush1.bf16.msra.mxu1 %v6468_v40  ;;  %5102 = vmatpush2.bf16.msra.mxu0 %v6471_v41  ;;  %v6525_v40 = vld [vmem:[%s8877_s8 + $0x28] ss:$16 sps:$4 sm:$0xff]  }
 0x250   : > { %5132 = vmatprep.subr.bf16.mxu1 %v6476_v47  ;;  %5103 = vmatprep.subr.bf16.mxu0 %v6479_v48  ;;  %v6530_v47 = vld [vmem:[%s8877_s8 + $0x2cc] ss:$16 sps:$4 sm:$0xff]  }
 0x251   : > { %v6533_v48 = vld [vmem:[%s8877_s8 + $0xc] ss:$16 sps:$4 sm:$0xff]  }
 0x253   : > { %5133 = vmatpush2.bf16.msra.mxu1 %v6474_v49  ;;  %5104 = vmatpush2.bf16.msra.mxu0 %v6477_v7  ;;  %v6528_v49 = vld [vmem:[%s8877_s8 + $0x2c8] ss:$16 sps:$4 sm:$0xff]  }
 0x254   : > { %5134 = vmatprep.subr.bf16.mxu1 %v6482_v50  ;;  %5105 = vmatprep.subr.bf16.mxu0 %v6485_v46  ;;  %v6531_v7 = vld [vmem:[%s8877_s8 + $0x8] ss:$16 sps:$4 sm:$0xff]   ;;  %v6536_v50 = vld [vmem:[%s8877_s8 + $0x2ac] ss:$16 sps:$4 sm:$0xff]  }
 0x255   : > { %v6539_v46 = vld [vmem:[%s8877_s8 + $0x1ec] ss:$16 sps:$4 sm:$0xff]  }
 0x257   : > { %5135 = vmatpush2.bf16.msra.mxu1 %v6480_v52  ;;  %5106 = vmatpush2.bf16.msra.mxu0 %v6483_v8  ;;  %v6534_v52 = vld [vmem:[%s8877_s8 + $0x2a8] ss:$16 sps:$4 sm:$0xff]  }
 0x258   : > { %5136 = vmatprep.subr.bf16.mxu1 %v6488_v54  ;;  %5157 = vmatprep.subr.bf16.mxu0 %v6491_v55  ;;  %v6537_v8 = vld [vmem:[%s8877_s8 + $0x1e8] ss:$16 sps:$4 sm:$0xff]   ;;  %v6542_v54 = vld [vmem:[%s8877_s8 + $0x28c] ss:$16 sps:$4 sm:$0xff]  }
 0x259   : > { %v6545_v55 = vld [vmem:[%s8877_s8 + $0x1cc] ss:$16 sps:$4 sm:$0xff]  }
 0x25a   : > { %v3267_v1 = vpop.f32.mrf.mxu0  ;;  %5108 = vmatmul.mubr.bf16.vlgmr.msra.gmra.mxu0 %v8603_v60 }
 0x25b   : > { %v3268_v63 = vadd.f32 %v3267_v1, %v2488_v22  ;;  %5137 = vmatpush2.bf16.msra.mxu1 %v6486_v57  ;;  %5158 = vmatpush1.bf16.msra.mxu0 %v6489_v58  ;;  %v6543_v57 = vld [vmem:[%s8877_s8 + $0x1c8] ss:$16 sps:$4 sm:$0xff]   ;;  %v6548_v22 = vld [vmem:[%s8877_s8 + $0x26c] ss:$16 sps:$4 sm:$0xff]  }
 0x25c   : > { %v3308_v3 = vpop.f32.mrf.mxu1  ;;  %5189 = vmatprep.mubr.bf16.mxu0 %v8467_v4  ;;  %v3269_v26 = vpop.f32.mrf.mxu0  ;;  %5138 = vmatprep.subr.bf16.mxu1 %v6494_v25  ;;  %v6498_v4 = vld [vmem:[%s8877_s8 + $0x360] ss:$16 sps:$4 sm:$0xff]   ;;  %v6551_v58 = vld [vmem:[%s8877_s8 + $0x1ac] ss:$16 sps:$4 sm:$0xff]   ;;  %v6546_v25 = vld [vmem:[%s8877_s8 + $0x268] ss:$16 sps:$4 sm:$0xff]  }
 0x25d   : > { %v3309_v45 = vadd.f32 %v3308_v3, %v3268_v63  ;;  %v3270_v32 = vadd.f32 %v3269_v26, %v2492_v61  ;;  %5159 = vmatprep.subr.bf16.mxu0 %v6497_v0  ;;  %v6549_v61 = vld [vmem:[%s8877_s8 + $0x1a8] ss:$16 sps:$4 sm:$0xff]   ;;  %v6554_v0 = vld [vmem:[%s8877_s8 + $0x24c] ss:$16 sps:$4 sm:$0xff]  }
 0x25e   : > { %v3310_v12 = vpop.f32.mrf.mxu1  ;;  %v3271_v43 = vpop.f32.mrf.mxu0  ;;  %v6557_v1 = vld [vmem:[%s8877_s8 + $0x18c] ss:$16 sps:$4 sm:$0xff]   ;;  %v6552_v63 = vld [vmem:[%s8877_s8 + $0x248] ss:$16 sps:$4 sm:$0xff]  }
 0x25f   : > { %v3311_v13 = vadd.f32 %v3310_v12, %v3270_v32  ;;  %5139 = vmatpush2.bf16.msra.mxu1 %v6492_v5  ;;  %5160 = vmatpush1.bf16.msra.mxu0 %v6495_v9  ;;  %6612 = vtanh.f32 %v3309_v45  ;;  %v6555_v3 = vld [vmem:[%s8877_s8 + $0x188] ss:$16 sps:$4 sm:$0xff]   ;;  %v6560_v5 = vld [vmem:[%s8877_s8 + $0x22c] ss:$16 sps:$4 sm:$0xff]  }
 0x260   : > { %v3312_v15 = vpop.f32.mrf.mxu1  ;;  %v3272_v17 = vpop.f32.mrf.mxu0  ;;  %5140 = vmatprep.subr.bf16.mxu1 %v6500_v10  ;;  %5161 = vmatprep.subr.bf16.mxu0 %v6503_v11  ;;  %v6563_v9 = vld [vmem:[%s8877_s8 + $0x16c] ss:$16 sps:$4 sm:$0xff]   ;;  %v6558_v26 = vld [vmem:[%s8877_s8 + $0x228] ss:$16 sps:$4 sm:$0xff]  }
 0x261   : > { %6614 = vtanh.f32 %v3311_v13  ;;  %v6561_v10 = vld [vmem:[%s8877_s8 + $0x168] ss:$16 sps:$4 sm:$0xff]   ;;  %v6566_v11 = vld [vmem:[%s8877_s8 + $0x20c] ss:$16 sps:$4 sm:$0xff]  }
 0x262   : > { %v3313_v19 = vpop.f32.mrf.mxu1  ;;  %v6569_v45 = vld [vmem:[%s8877_s8 + $0x14c] ss:$16 sps:$4 sm:$0xff]   ;;  %v6564_v32 = vld [vmem:[%s8877_s8 + $0x208] ss:$16 sps:$4 sm:$0xff]  }
 0x263   : > { %5141 = vmatpush2.bf16.msra.mxu1 %v6498_v4  ;;  %5162 = vmatpush1.bf16.msra.mxu0 %v6501_v16  ;;  %v6567_v12 = vld [vmem:[%s8877_s8 + $0x148] ss:$16 sps:$4 sm:$0xff]   ;;  %v6572_v43 = vld [vmem:[%s8877_s8 + $0x3ec] ss:$16 sps:$4 sm:$0xff]  }
 0x264   : > { %5142 = vmatprep.subr.bf16.mxu1 %v6506_v18  ;;  %5163 = vmatprep.subr.bf16.mxu0 %v6509_v36  ;;  %v6575_v13 = vld [vmem:[%s8877_s8 + $0x12c] ss:$16 sps:$4 sm:$0xff]   ;;  %v6570_v15 = vld [vmem:[%s8877_s8 + $0x3e8] ss:$16 sps:$4 sm:$0xff]  }
 0x265   : > { %v6573_v4 = vld [vmem:[%s8877_s8 + $0x128] ss:$16 sps:$4 sm:$0xff]   ;;  %v6578_v16 = vld [vmem:[%s8877_s8 + $0x3cc] ss:$16 sps:$4 sm:$0xff]  }
 0x266   : > { %v6581_v17 = vld [vmem:[%s8877_s8 + $0x10c] ss:$16 sps:$4 sm:$0xff]   ;;  %v6576_v18 = vld [vmem:[%s8877_s8 + $0x3c8] ss:$16 sps:$4 sm:$0xff]  }
 0x267   : > { %5143 = vmatpush2.bf16.msra.mxu1 %v6504_v21  ;;  %5164 = vmatpush1.bf16.msra.mxu0 %v6507_v23  ;;  %v6579_v36 = vld [vmem:[%s8877_s8 + $0x108] ss:$16 sps:$4 sm:$0xff]   ;;  %v6584_v19 = vld [vmem:[%s8877_s8 + $0x3ac] ss:$16 sps:$4 sm:$0xff]  }
 0x268   : > { %5144 = vmatprep.subr.bf16.mxu1 %v6512_v24  ;;  %5165 = vmatprep.subr.bf16.mxu0 %v6515_v14  ;;  %v6582_v21 = vld [vmem:[%s8877_s8 + $0x3a8] ss:$16 sps:$4 sm:$0xff]   ;;  %v6587_v23 = vld [vmem:[%s8877_s8 + $0x38c] ss:$16 sps:$4 sm:$0xff]  }
 0x269   : > { %v6585_v14 = vld [vmem:[%s8877_s8 + $0x388] ss:$16 sps:$4 sm:$0xff]  }
 0x26b   : > { %5145 = vmatpush2.bf16.msra.mxu1 %v6510_v28  ;;  %5166 = vmatpush1.bf16.msra.mxu0 %v6513_v29  ;;  %v6590_v29 = vld [vmem:[%s8877_s8 + $0x36c] ss:$16 sps:$4 sm:$0xff]  }
 0x26c   : > { %5146 = vmatprep.subr.bf16.mxu1 %v6518_v30  ;;  %5167 = vmatprep.subr.bf16.mxu0 %v6521_v31  ;;  %v6613_v37 = vpop.eup %6612  ;;  %v6588_v31 = vld [vmem:[%s8877_s8 + $0x368] ss:$16 sps:$4 sm:$0xff]  }
 0x26d   : > { %v8681_v41 = vpack.c.bf16 %v6613_v37, %v6613_v37  ;;  %v6599_v37 = vld [vmem:[%s8877_s8 + $0x30c] ss:$16 sps:$4 sm:$0xff]  }
 0x26e   : > { %v6615_v53 = vpop.eup %6614 }
 0x26f   : > { %5147 = vmatpush2.bf16.msra.mxu1 %v6516_v51  ;;  %5168 = vmatpush1.bf16.msra.mxu0 %v6519_v33  ;;  %v4284_v42 = vpack.c.bf16 %v6615_v53, %v6615_v53  ;;  %v6591_v33 = vld [vmem:[%s8877_s8 + $0x348] ss:$16 sps:$4 sm:$0xff]   ;;  %v3451_v53 = vld [vmem:[%s8876_s7] sm:$0xf] }
 0x270   : > { %5198 = vmatprep.subr.bf16.mxu1 %v6524_v34  ;;  %5169 = vmatprep.subr.bf16.mxu0 %v6527_v35  ;;  %v6596_v34 = vld [vmem:[%s8877_s8 + $0x32c] ss:$16 sps:$4 sm:$0xff]   ;;  %v6594_v35 = vld [vmem:[%s8877_s8 + $0x328] ss:$16 sps:$4 sm:$0xff]  }
 0x271   : > { %5148 = vmatprep.mubr.bf16.mxu1 %v4284_v42 }
 0x272   : > { %5149 = vmatmul.mubr.bf16.vlgmr.msra.gmra.mxu1 %v8681_v41 }
 0x273   : > { %5199 = vmatpush1.bf16.msra.mxu1 %v6522_v39  ;;  %5170 = vmatpush1.bf16.msra.mxu0 %v6525_v40  ;;  %v3456_v39 = vrot.slane %v3451_v53, %v7562_v38  ;;  %v3460_v40 = vrot.slane %v3451_v53, %v7577_v44 }
 0x274   : > { %5230 = vmatprep.mubr.bf16.mxu1 %v4284_v42  ;;  %5200 = vmatprep.subr.bf16.mxu1 %v6530_v47  ;;  %v6597_v42 = vld [vmem:[%s8877_s8 + $0x308] ss:$16 sps:$4 sm:$0xff]  }
 0x275   : > { %5171 = vmatprep.subr.bf16.mxu0 %v6533_v48 }
 0x277   : > { %5201 = vmatpush1.bf16.msra.mxu1 %v6528_v49  ;;  %5172 = vmatpush1.bf16.msra.mxu0 %v6531_v7 }
 0x278   : > { %5202 = vmatprep.subr.bf16.mxu1 %v6536_v50  ;;  %5173 = vmatprep.subr.bf16.mxu0 %v6539_v46 }
 0x27b   : > { %5203 = vmatpush1.bf16.msra.mxu1 %v6534_v52  ;;  %5174 = vmatpush2.bf16.msra.mxu0 %v6537_v8 }
 0x27c   : > { %5204 = vmatprep.subr.bf16.mxu1 %v6542_v54  ;;  %5175 = vmatprep.subr.bf16.mxu0 %v6545_v55 }
 0x27f   : > { %5205 = vmatpush1.bf16.msra.mxu1 %v6540_v56  ;;  %5176 = vmatpush2.bf16.msra.mxu0 %v6543_v57 }
 0x280   : > { %5206 = vmatprep.subr.bf16.mxu1 %v6548_v22  ;;  %5177 = vmatprep.subr.bf16.mxu0 %v6551_v58  ;;  %v3464_v22 = vrot.slane %v3451_v53, %v7783_v2  ;;  %v3468_v58 = vrot.slane %v3451_v53, %v7795_v6 }
 0x283   : > { %5207 = vmatpush1.bf16.msra.mxu1 %v6546_v25  ;;  %5178 = vmatpush2.bf16.msra.mxu0 %v6549_v61 }
 0x284   : > { %5208 = vmatprep.subr.bf16.mxu1 %v6554_v0  ;;  %5179 = vmatprep.subr.bf16.mxu0 %v6557_v1 }
 0x287   : > { %5209 = vmatpush1.bf16.msra.mxu1 %v6552_v63  ;;  %5180 = vmatpush2.bf16.msra.mxu0 %v6555_v3 }
 0x288   : > { %5210 = vmatprep.subr.bf16.mxu1 %v6560_v5  ;;  %5181 = vmatprep.subr.bf16.mxu0 %v6563_v9 }
 0x28b   : > { %5211 = vmatpush1.bf16.msra.mxu1 %v6558_v26  ;;  %5182 = vmatpush2.bf16.msra.mxu0 %v6561_v10 }
 0x28c   : > { %5212 = vmatprep.subr.bf16.mxu1 %v6566_v11  ;;  %5183 = vmatprep.subr.bf16.mxu0 %v6569_v45  ;;  %v4413_v45 = vld [vmem:[%s8878_s9] sm:$0xf] }
 0x28f   : > { %5213 = vmatpush1.bf16.msra.mxu1 %v6564_v32  ;;  %5184 = vmatpush2.bf16.msra.mxu0 %v6567_v12  ;;  %v4418_v32 = vrot.slane %v4413_v45, %v7562_v38  ;;  %v4422_v12 = vrot.slane %v4413_v45, %v7577_v44 }
 0x290   : > { %5214 = vmatprep.subr.bf16.mxu1 %v6572_v43  ;;  %5185 = vmatprep.subr.bf16.mxu0 %v6575_v13 }
 0x293   : > { %5215 = vmatpush2.bf16.msra.mxu1 %v6570_v15  ;;  %5186 = vmatpush2.bf16.msra.mxu0 %v6573_v4 }
 0x294   : > { %5216 = vmatprep.subr.bf16.mxu1 %v6578_v16  ;;  %5187 = vmatprep.subr.bf16.mxu0 %v6581_v17 }
 0x297   : > { %5217 = vmatpush2.bf16.msra.mxu1 %v6576_v18  ;;  %5188 = vmatpush2.bf16.msra.mxu0 %v6579_v36 }
 0x298   : > { %5218 = vmatprep.subr.bf16.mxu1 %v6584_v19 }
 0x29a   : > { %v4147_v24 = vpop.f32.mrf.mxu0  ;;  %5190 = vmatmul.mubr.bf16.vlgmr.msra.gmra.mxu0 %v8603_v60  ;;  %v6593_v60 = vld [vmem:[%s8877_s8 + $0x34c] ss:$16 sps:$4 sm:$0xff]  }
 0x29b   : > { %5219 = vmatpush2.bf16.msra.mxu1 %v6582_v21  ;;  %v4148_v47 = vadd.f32 %v4147_v24, %v3456_v39 }
 0x29c   : > { %v4149_v28 = vpop.f32.mrf.mxu0  ;;  %5220 = vmatprep.subr.bf16.mxu1 %v6587_v23 }
 0x29d   : > { %v4150_v49 = vadd.f32 %v4149_v28, %v3460_v40 }
 0x29e   : > { %v4151_v30 = vpop.f32.mrf.mxu0 }
 0x29f   : > { %5221 = vmatpush2.bf16.msra.mxu1 %v6585_v14 }
 0x2a0   : > { %v4152_v51 = vpop.f32.mrf.mxu0  ;;  %5222 = vmatprep.subr.bf16.mxu1 %v6590_v29 }
 0x2a3   : > { %5223 = vmatpush2.bf16.msra.mxu1 %v6588_v31 }
 0x2a4   : > { %5224 = vmatprep.subr.bf16.mxu1 %v6593_v60  ;;  %v4426_v60 = vrot.slane %v4413_v45, %v7783_v2 }
 0x2a7   : > { %5225 = vmatpush2.bf16.msra.mxu1 %v6591_v33  ;;  %v4430_v33 = vrot.slane %v4413_v45, %v7795_v6 }
 0x2a8   : > { %5226 = vmatprep.subr.bf16.mxu1 %v6596_v34 }
 0x2ab   : > { %5227 = vmatpush2.bf16.msra.mxu1 %v6594_v35 }
 0x2ac   : > { %5228 = vmatprep.subr.bf16.mxu1 %v6599_v37 }
 0x2af   : > { %5229 = vmatpush2.bf16.msra.mxu1 %v6597_v42 }
 0x2b2   : > { %5231 = vmatmul.mubr.bf16.vlgmr.msra.gmra.mxu1 %v8681_v41  ;;  %v4188_v48 = vpop.f32.mrf.mxu1 }
 0x2b3   : > { %v4189_v7 = vadd.f32 %v4188_v48, %v4148_v47 }
 0x2b4   : > { %v4190_v50 = vpop.f32.mrf.mxu1 }
 0x2b5   : > { %v4191_v46 = vadd.f32 %v4190_v50, %v4150_v49  ;;  %6616 = vtanh.f32 %v4189_v7 }
 0x2b6   : > { %v4192_v52 = vpop.f32.mrf.mxu1 }
 0x2b8   : > { %v4193_v8 = vpop.f32.mrf.mxu1 }
 0x2c2   : > { %v6617_v19 = vpop.eup %6616 }
 0x2da   : > { %v4229_v54 = vpop.f32.mrf.mxu0 }
 0x2db   : > { %v4230_v25 = vadd.f32 %v4229_v54, %v3464_v22 }
 0x2dc   : > { %v4231_v55 = vpop.f32.mrf.mxu0 }
 0x2dd   : > { %v4232_v0 = vadd.f32 %v4231_v55, %v3468_v58 }
 0x2de   : > { %v4233_v56 = vpop.f32.mrf.mxu0 }
 0x2e0   : > { %v4234_v57 = vpop.f32.mrf.mxu0 }
 0x2f2   : > { %v4270_v61 = vpop.f32.mrf.mxu1 }
 0x2f3   : > { %v4271_v1 = vadd.f32 %v4270_v61, %v4230_v25 }
 0x2f4   : > { %v4272_v41 = vpop.f32.mrf.mxu1 }
 0x2f5   : > { %v4273_v63 = vadd.f32 %v4272_v41, %v4232_v0 }
 0x2f6   : > { %v4274_v3 = vpop.f32.mrf.mxu1 }
 0x2f8   : > { %v4275_v5 = vpop.f32.mrf.mxu1 }
 0x31a   : > { %v5109_v9 = vpop.f32.mrf.mxu0 }
 0x31b   : > { %v5110_v43 = vadd.f32 %v5109_v9, %v4418_v32 }
 0x31c   : > { %v5111_v26 = vpop.f32.mrf.mxu0 }
 0x31d   : > { %v5112_v15 = vadd.f32 %v5111_v26, %v4422_v12 }
 0x31e   : > { %v5113_v10 = vpop.f32.mrf.mxu0 }
 0x320   : > { %v5114_v11 = vpop.f32.mrf.mxu0 }
 0x332   : > { %v5150_v13 = vpop.f32.mrf.mxu1 }
 0x333   : > { %v5151_v4 = vadd.f32 %v5150_v13, %v5110_v43 }
 0x334   : > { %v5152_v16 = vpop.f32.mrf.mxu1 }
 0x335   : > { %6618 = vtanh.f32 %v5151_v4  ;;  %v5153_v17 = vadd.f32 %v5152_v16, %v5112_v15 }
 0x336   : > { %6620 = vtanh.f32 %v4191_v46  ;;  %v5154_v18 = vpop.f32.mrf.mxu1 }
 0x337   : > { %6622 = vtanh.f32 %v5153_v17 }
 0x338   : > { %v5155_v36 = vpop.f32.mrf.mxu1  ;;  %6624 = vtanh.f32 %v4271_v1 }
 0x342   : > { %v6619_v21 = vpop.eup %6618 }
 0x343   : > { %v6621_v23 = vpop.eup %6620  ;;  %v5243_v24 = vmul.f32 %v6619_v21, %v6617_v19 }
 0x344   : > { %v6623_v14 = vpop.eup %6622 }
 0x345   : > { %v5247_v38 = vadd.f32 %v5243_v24, %v7614_v59  ;;  %v5244_v44 = vmul.f32 %v6623_v14, %v6621_v23  ;;  %v6625_v40 = vpop.eup %6624 }
 0x347   : > { %5251 = vst [vmem:[%s8879_s10] sm:$0xff] %v5247_v38  ;;  %v5248_v28 = vadd.f32 %v5244_v44, %v7621_v62 }
 0x349   : > { %5252 = vst [vmem:[%s8879_s10 + $0x8] sm:$0xff] %v5248_v28 }
 0x35a   : > { %v5191_v29 = vpop.f32.mrf.mxu0 }
 0x35b   : > { %v5192_v59 = vadd.f32 %v5191_v29, %v4426_v60 }
 0x35c   : > { %v5193_v30 = vpop.f32.mrf.mxu0 }
 0x35d   : > { %v5194_v35 = vadd.f32 %v5193_v30, %v4430_v33 }
 0x35e   : > { %v5195_v31 = vpop.f32.mrf.mxu0 }
 0x360   : > { %v5196_v51 = vpop.f32.mrf.mxu0 }
 0x372   : > { %v5232_v34 = vpop.f32.mrf.mxu1 }
 0x373   : > { %v5233_v37 = vadd.f32 %v5232_v34, %v5192_v59 }
 0x374   : > { %v5234_v53 = vpop.f32.mrf.mxu1 }
 0x375   : > { %6626 = vtanh.f32 %v5233_v37  ;;  %v5235_v62 = vadd.f32 %v5234_v53, %v5194_v35 }
 0x376   : > { %6628 = vtanh.f32 %v4273_v63  ;;  %v5236_v42 = vpop.f32.mrf.mxu1 }
 0x377   : > { %6630 = vtanh.f32 %v5235_v62 }
 0x378   : > { %v5237_v39 = vpop.f32.mrf.mxu1 }
 0x382   : > { %v6627_v47 = vpop.eup %6626 }
 0x383   : > { %v6629_v48 = vpop.eup %6628  ;;  %v5245_v49 = vmul.f32 %v6627_v47, %v6625_v40 }
 0x384   : > { %v6631_v7 = vpop.eup %6630 }
 0x385   : > { %v5249_v2 = vadd.f32 %v5245_v49, %v7832_v20  ;;  %v5246_v6 = vmul.f32 %v6631_v7, %v6629_v48 }
 0x387   : > { %5253 = vst [vmem:[%s8879_s10 + $0x10] sm:$0xff] %v5249_v2  ;;  %v5250_v50 = vadd.f32 %v5246_v6, %v7839_v27 }
 0x389   : > { %5254 = vst [vmem:[%s8879_s10 + $0x18] sm:$0xff] %v5250_v50 }
 0x38a PF: > { %s20_s15 = sadd.s32 1, %s6654_s15   ;;  %s8880_s13 = smov %s6650_s14 }
 0x38b   : > { %p17_p6 = scmp.ge.s32.totalorder %s20_s15, 4   ;;  %s8881_s14 = smov %s8883_s16 }
 0x38d   :  { %19 = sbr.rel (!%p17_p6) target bundleno = 2 (0x2), region = 97 }

</bundles_post_ra>
